<compile_context>
chip_gen: v5e
topology: v5e:2x2
jax: 0.10.0
libtpu: 0.0.40
codegen_flags: <defaults>
</compile_context>

<pallas_src>
import jax
import jax.numpy as jnp
from jax.experimental import pallas as pl
from jax.experimental.pallas import tpu as pltpu


def _round_up(x, m):
    return ((x + m - 1) // m) * m


# ----------------------------------------------------------------------------
# Pallas kernel: one LSTM layer, one time block (Tb timesteps) per grid step.
# ----------------------------------------------------------------------------
def _lstm_layer_kernel(x_ref, wih_ref, whh_ref, b_ref, y_ref, h_ref, c_ref):
    """
    x_ref:   [Tb*B, Dp]   time-major block of inputs (time flattened with batch)
    wih_ref: [Dp, 4*Hp]   transposed, gate-packed input weights (resident)
    whh_ref: [Hp, 4*Hp]   transposed, gate-packed recurrent weights (resident)
    b_ref:   [1, 4*Hp]    combined bias (b_ih + b_hh), gate-packed
    y_ref:   [Tb*B, Hp]   output block
    h_ref/c_ref: [B, Hp]  recurrent state carried across grid steps (VMEM)
    """
    @pl.when(pl.program_id(0) == 0)
    def _():
        h_ref[...] = jnp.zeros_like(h_ref)
        c_ref[...] = jnp.zeros_like(c_ref)

    B, Hp = h_ref.shape
    Tb = x_ref.shape[0] // B

    # ---- Hoisted input projection: one big MXU call with M = Tb*B rows. ----
    gx = jnp.dot(x_ref[...].astype(wih_ref.dtype), wih_ref[...],
                 preferred_element_type=jnp.float32) + b_ref[...]

    # ---- Serial recurrence over the Tb resident timesteps (full unroll). ----
    # Tb is a small static constant, so a Python loop gives static slice
    # offsets (no dynamic-slice work on the critical path).
    for t in range(Tb):
        gates = gx[t * B:(t + 1) * B, :] + jnp.dot(
            h_ref[...].astype(whh_ref.dtype), whh_ref[...],
            preferred_element_type=jnp.float32)

        # Gate order matches nn.LSTM: i, f, g, o — each slice 128-lane aligned.
        i_g = jax.nn.sigmoid(gates[:, 0 * Hp:1 * Hp])
        f_g = jax.nn.sigmoid(gates[:, 1 * Hp:2 * Hp])
        g_g = jnp.tanh(gates[:, 2 * Hp:3 * Hp])
        o_g = jax.nn.sigmoid(gates[:, 3 * Hp:4 * Hp])

        c = f_g * c_ref[...] + i_g * g_g
        h = o_g * jnp.tanh(c)
        c_ref[...] = c
        h_ref[...] = h
        y_ref[t * B:(t + 1) * B, :] = h


def _lstm_layer_pallas(x_flat, wih_t, whh_t, bias, *, B, Tb, Hp):
    """One LSTM layer. x_flat: [T_pad*B, Dp] f32 -> [T_pad*B, Hp] f32."""
    TB, Dp = x_flat.shape
    n_blocks = TB // (Tb * B)

    return pl.pallas_call(
        _lstm_layer_kernel,
        out_shape=jax.ShapeDtypeStruct((TB, Hp), jnp.float32),
        grid=(n_blocks,),
        in_specs=[
            pl.BlockSpec((Tb * B, Dp), lambda i: (i, 0)),     # x time-block slab
            pl.BlockSpec((Dp, 4 * Hp), lambda i: (0, 0)),     # W_ih^T (resident)
            pl.BlockSpec((Hp, 4 * Hp), lambda i: (0, 0)),     # W_hh^T (resident)
            pl.BlockSpec((1, 4 * Hp), lambda i: (0, 0)),      # bias   (resident)
        ],
        out_specs=pl.BlockSpec((Tb * B, Hp), lambda i: (i, 0)),
        scratch_shapes=[pltpu.VMEM((B, Hp), jnp.float32),     # h carry
                        pltpu.VMEM((B, Hp), jnp.float32)],    # c carry
        compiler_params=pltpu.CompilerParams(
            dimension_semantics=("arbitrary",)),              # time is sequential
    )(x_flat, wih_t, whh_t, bias)


# ----------------------------------------------------------------------------
# Weight packing: transpose + per-gate lane padding (gate order i, f, g, o).
# ----------------------------------------------------------------------------
def _pack_gate_weight(w, d_in_pad, hp):
    """w: [4H, d_in] -> [d_in_pad, 4*hp] transposed, each gate padded to hp lanes."""
    four_h, d_in = w.shape
    h = four_h // 4
    out = jnp.zeros((d_in_pad, 4 * hp), jnp.float32)
    for g in range(4):
        out = out.at[:d_in, g * hp:g * hp + h].set(
            jnp.transpose(w[g * h:(g + 1) * h, :]).astype(jnp.float32))
    return out


def _pack_gate_bias(b, hp):
    h = b.shape[0] // 4
    out = jnp.zeros((1, 4 * hp), jnp.float32)
    for g in range(4):
        out = out.at[0, g * hp:g * hp + h].set(b[g * h:(g + 1) * h].astype(jnp.float32))
    return out


# ----------------------------------------------------------------------------
# LstmBlockV1 wrapper (parameter init + multi-layer stack)
# ----------------------------------------------------------------------------
def init_lstm_block_params(key, input_dim, hidden_dim, num_layers, bias=True):
    """Deterministic init matching nn.LSTM shapes: U(-1/sqrt(H), 1/sqrt(H))."""
    params = []
    k = 1.0 / jnp.sqrt(jnp.float32(hidden_dim))
    for layer in range(num_layers):
        d_in = input_dim if layer == 0 else hidden_dim
        key, k1, k2, k3, k4 = jax.random.split(key, 5)
        w_ih = jax.random.uniform(k1, (4 * hidden_dim, d_in), jnp.float32, -k, k)
        w_hh = jax.random.uniform(k2, (4 * hidden_dim, hidden_dim), jnp.float32, -k, k)
        if bias:
            b_ih = jax.random.uniform(k3, (4 * hidden_dim,), jnp.float32, -k, k)
            b_hh = jax.random.uniform(k4, (4 * hidden_dim,), jnp.float32, -k, k)
        else:
            b_ih = jnp.zeros((4 * hidden_dim,), jnp.float32)
            b_hh = jnp.zeros((4 * hidden_dim,), jnp.float32)
        params.append((w_ih, w_hh, b_ih, b_hh))
    return params


def lstm_block_v1_forward(x_btf, seq_len, params, *, time_block=8,
                          matmul_dtype=jnp.float32):
    """
    :param x_btf: [B, T, input_dim] float32
    :param seq_len: [B] int32
    :param time_block: timesteps resident per grid step (rounded up to mult of 8)
    :param matmul_dtype: jnp.float32 (exact) or jnp.bfloat16 (v6e/v7x MXU win)
    :return: ([B, T, hidden_dim], seq_len)
    """
    B, T, D = x_btf.shape
    H = params[0][1].shape[1]          # w_hh: [4H, H]
    Tb = _round_up(max(time_block, 1), 8)
    T_pad = _round_up(T, Tb)
    Dp = _round_up(D, 128)
    Hp = _round_up(H, 128)

    # batch-first -> time-major, lane-pad features, pad time, flatten (T, B).
    x_tbf = jnp.transpose(x_btf, (1, 0, 2)).astype(jnp.float32)
    x_tbf = jnp.pad(x_tbf, ((0, T_pad - T), (0, 0), (0, Dp - D)))
    out = x_tbf.reshape(T_pad * B, Dp)

    d_in_pad = Dp
    for (w_ih, w_hh, b_ih, b_hh) in params:
        wih_t = _pack_gate_weight(w_ih, d_in_pad, Hp).astype(matmul_dtype)
        whh_t = _pack_gate_weight(w_hh, Hp, Hp).astype(matmul_dtype)
        bias = _pack_gate_bias(b_ih + b_hh, Hp)
        out = _lstm_layer_pallas(out, wih_t, whh_t, bias, B=B, Tb=Tb, Hp=Hp)
        d_in_pad = Hp   # activations stay lane-padded between layers

    y = out.reshape(T_pad, B, Hp)[:T, :, :H]                 # strip padding
    y = jnp.transpose(y, (1, 0, 2))                          # [B, T, H]
    # packed-sequence padding mask applied ONCE, outside the recurrence.
    mask = jnp.arange(T)[None, :, None] < seq_len[:, None, None]
    return jnp.where(mask, y, 0.0), seq_len


# ----------------------------------------------------------------------------
# Pure-JAX reference (for verification)
# ----------------------------------------------------------------------------
def lstm_block_v1_ref(x_btf, seq_len, params):
    B, T, _ = x_btf.shape
    out = x_btf.astype(jnp.float32)
    for (w_ih, w_hh, b_ih, b_hh) in params:
        H = w_hh.shape[1]

        def step(carry, x_t):
            h, c = carry
            gates = x_t @ w_ih.T + h @ w_hh.T + b_ih + b_hh
            i_g, f_g, g_g, o_g = jnp.split(gates, 4, axis=-1)
            i_g = jax.nn.sigmoid(i_g)
            f_g = jax.nn.sigmoid(f_g)
            g_g = jnp.tanh(g_g)
            o_g = jax.nn.sigmoid(o_g)
            c = f_g * c + i_g * g_g
            h = o_g * jnp.tanh(c)
            return (h, c), h

        h0 = jnp.zeros((B, H), jnp.float32)
        c0 = jnp.zeros((B, H), jnp.float32)
        _, ys = jax.lax.scan(step, (h0, c0), jnp.transpose(out, (1, 0, 2)))
        out = jnp.transpose(ys, (1, 0, 2))
    t_idx = jnp.arange(T)[None, :, None]
    mask = t_idx < seq_len[:, None, None]
    return jnp.where(mask, out, 0.0), seq_len


# ----------------------------------------------------------------------------
if __name__ == "__main__":
    # Config analogous to LstmBlockV1Config
    input_dim = 16
    hidden_dim = 32
    num_layers = 2
    bias = True
    dropout = 0.0          # train-time only; not applied here
    enforce_sorted = True  # no-op for masked formulation

    B, T = 2, 8
    key = jax.random.PRNGKey(0)
    key, kx = jax.random.split(key)
    x = jax.random.normal(kx, (B, T, input_dim), jnp.float32)
    seq_len = jnp.array([8, 5], dtype=jnp.int32)   # sorted descending

    params = init_lstm_block_params(key, input_dim, hidden_dim, num_layers, bias)

    y, out_len = lstm_block_v1_forward(x, seq_len, params, time_block=8)
    y = jax.block_until_ready(y)

    y_ref, _ = lstm_block_v1_ref(x, seq_len, params)
    assert y.shape == (B, T, hidden_dim)
    assert jnp.allclose(y, y_ref, atol=1e-5, rtol=1e-5), "mismatch vs reference"
    assert jnp.array_equal(out_len, seq_len)

    print("KERNEL_OK")
</pallas_src>

<mosaic_0001>
module attributes {stable_mosaic.version = 11 : i64} {
  func.func @_lstm_layer_kernel(%arg0: i32, %arg1: memref<16x128xf32, #tpu.memory_space<vmem>>, %arg2: memref<128x512xf32, #tpu.memory_space<vmem>>, %arg3: memref<128x512xf32, #tpu.memory_space<vmem>>, %arg4: memref<1x512xf32, #tpu.memory_space<vmem>>, %arg5: memref<16x128xf32, #tpu.memory_space<vmem>>, %arg6: memref<2x128xf32, #tpu.memory_space<vmem>>, %arg7: memref<2x128xf32, #tpu.memory_space<vmem>>) attributes {dimension_semantics = [#tpu.dimension_semantics<arbitrary>], iteration_bounds = array<i64: 1>, scalar_prefetch = 0 : i64, scratch_operands = 2 : i64, tpu.core_type = #tpu.core_type<tc>, window_params = [{transform_indices = @transform_0, window_bounds = array<i64: 16, 128>}, {pipeline_mode = #tpu.pipeline_mode<synchronous>, transform_indices = @transform_1, window_bounds = array<i64: 128, 512>}, {pipeline_mode = #tpu.pipeline_mode<synchronous>, transform_indices = @transform_2, window_bounds = array<i64: 128, 512>}, {pipeline_mode = #tpu.pipeline_mode<synchronous>, transform_indices = @transform_3, window_bounds = array<i64: 1, 512>}, {transform_indices = @transform_4, window_bounds = array<i64: 16, 128>}]} {
    %c0_i32 = arith.constant 0 : i32
    %0 = arith.cmpi eq, %arg0, %c0_i32 : i32
    %1 = arith.extui %0 : i1 to i32
    %c0_i32_0 = arith.constant 0 : i32
    %2 = arith.cmpi ne, %1, %c0_i32_0 : i32
    scf.if %2 {
      %cst_127 = arith.constant 0.000000e+00 : f32
      %281 = vector.broadcast %cst_127 : f32 to vector<2x128xf32>
      %c0_128 = arith.constant 0 : index
      %c0_129 = arith.constant 0 : index
      %282 = vector.load %arg6[%c0_128, %c0_129] : memref<2x128xf32, #tpu.memory_space<vmem>>, vector<2x128xf32>
      tpu.vector_store %arg6[%c0_128, %c0_129], %281 {strides = array<i32>} : memref<2x128xf32, #tpu.memory_space<vmem>>, vector<2x128xf32>,
      %cst_130 = arith.constant 0.000000e+00 : f32
      %283 = vector.broadcast %cst_130 : f32 to vector<2x128xf32>
      %c0_131 = arith.constant 0 : index
      %c0_132 = arith.constant 0 : index
      %284 = vector.load %arg7[%c0_131, %c0_132] : memref<2x128xf32, #tpu.memory_space<vmem>>, vector<2x128xf32>
      tpu.vector_store %arg7[%c0_131, %c0_132], %283 {strides = array<i32>} : memref<2x128xf32, #tpu.memory_space<vmem>>, vector<2x128xf32>,
    } else {
    }
    %c0 = arith.constant 0 : index
    %c0_1 = arith.constant 0 : index
    %3 = vector.load %arg1[%c0, %c0_1] : memref<16x128xf32, #tpu.memory_space<vmem>>, vector<16x128xf32>
    %c0_2 = arith.constant 0 : index
    %c0_3 = arith.constant 0 : index
    %4 = vector.load %arg2[%c0_2, %c0_3] : memref<128x512xf32, #tpu.memory_space<vmem>>, vector<128x512xf32>
    %cst = arith.constant dense<0.000000e+00> : vector<16x512xf32>
    %5 = tpu.matmul %3, %4, %cst {dimension_numbers = #tpu.dot_dimension_numbers<[1], [0], [0], [1], [0, 0, 1, 1], [], []>} : vector<16x128xf32>, vector<128x512xf32>, vector<16x512xf32> -> vector<16x512xf32>
    %c0_4 = arith.constant 0 : index
    %c0_5 = arith.constant 0 : index
    %6 = vector.load %arg4[%c0_4, %c0_5] : memref<1x512xf32, #tpu.memory_space<vmem>>, vector<1x512xf32>
    %7 = vector.broadcast %6 : vector<1x512xf32> to vector<16x512xf32>
    %8 = arith.addf %5, %7 : vector<16x512xf32>
    %9 = vector.extract_strided_slice %8 {offsets = [0, 0], sizes = [2, 512], strides = [1, 1]} : vector<16x512xf32> to vector<2x512xf32>
    %c0_6 = arith.constant 0 : index
    %c0_7 = arith.constant 0 : index
    %10 = vector.load %arg6[%c0_6, %c0_7] : memref<2x128xf32, #tpu.memory_space<vmem>>, vector<2x128xf32>
    %c0_8 = arith.constant 0 : index
    %c0_9 = arith.constant 0 : index
    %11 = vector.load %arg3[%c0_8, %c0_9] : memref<128x512xf32, #tpu.memory_space<vmem>>, vector<128x512xf32>
    %cst_10 = arith.constant dense<0.000000e+00> : vector<2x512xf32>
    %12 = tpu.matmul %10, %11, %cst_10 {dimension_numbers = #tpu.dot_dimension_numbers<[1], [0], [0], [1], [0, 0, 1, 1], [], []>} : vector<2x128xf32>, vector<128x512xf32>, vector<2x512xf32> -> vector<2x512xf32>
    %13 = arith.addf %9, %12 : vector<2x512xf32>
    %14 = vector.extract_strided_slice %13 {offsets = [0, 0], sizes = [2, 128], strides = [1, 1]} : vector<2x512xf32> to vector<2x128xf32>
    %15 = arith.negf %14 : vector<2x128xf32>
    %16 = math.exp %15 : vector<2x128xf32>
    %cst_11 = arith.constant 1.000000e+00 : f32
    %17 = vector.broadcast %cst_11 : f32 to vector<2x128xf32>
    %18 = arith.addf %17, %16 : vector<2x128xf32>
    %19 = arith.divf %17, %18 : vector<2x128xf32>
    %20 = vector.extract_strided_slice %13 {offsets = [0, 128], sizes = [2, 128], strides = [1, 1]} : vector<2x512xf32> to vector<2x128xf32>
    %21 = arith.negf %20 : vector<2x128xf32>
    %22 = math.exp %21 : vector<2x128xf32>
    %cst_12 = arith.constant 1.000000e+00 : f32
    %23 = vector.broadcast %cst_12 : f32 to vector<2x128xf32>
    %24 = arith.addf %23, %22 : vector<2x128xf32>
    %25 = arith.divf %23, %24 : vector<2x128xf32>
    %26 = vector.extract_strided_slice %13 {offsets = [0, 256], sizes = [2, 128], strides = [1, 1]} : vector<2x512xf32> to vector<2x128xf32>
    %27 = math.tanh %26 : vector<2x128xf32>
    %28 = vector.extract_strided_slice %13 {offsets = [0, 384], sizes = [2, 128], strides = [1, 1]} : vector<2x512xf32> to vector<2x128xf32>
    %29 = arith.negf %28 : vector<2x128xf32>
    %30 = math.exp %29 : vector<2x128xf32>
    %cst_13 = arith.constant 1.000000e+00 : f32
    %31 = vector.broadcast %cst_13 : f32 to vector<2x128xf32>
    %32 = arith.addf %31, %30 : vector<2x128xf32>
    %33 = arith.divf %31, %32 : vector<2x128xf32>
    %c0_14 = arith.constant 0 : index
    %c0_15 = arith.constant 0 : index
    %34 = vector.load %arg7[%c0_14, %c0_15] : memref<2x128xf32, #tpu.memory_space<vmem>>, vector<2x128xf32>
    %35 = arith.mulf %25, %34 : vector<2x128xf32>
    %36 = arith.mulf %19, %27 : vector<2x128xf32>
    %37 = arith.addf %35, %36 : vector<2x128xf32>
    %38 = math.tanh %37 : vector<2x128xf32>
    %39 = arith.mulf %33, %38 : vector<2x128xf32>
    %c0_16 = arith.constant 0 : index
    %c0_17 = arith.constant 0 : index
    %40 = vector.load %arg7[%c0_16, %c0_17] : memref<2x128xf32, #tpu.memory_space<vmem>>, vector<2x128xf32>
    tpu.vector_store %arg7[%c0_16, %c0_17], %37 {strides = array<i32>} : memref<2x128xf32, #tpu.memory_space<vmem>>, vector<2x128xf32>,
    %c0_18 = arith.constant 0 : index
    %c0_19 = arith.constant 0 : index
    %41 = vector.load %arg6[%c0_18, %c0_19] : memref<2x128xf32, #tpu.memory_space<vmem>>, vector<2x128xf32>
    tpu.vector_store %arg6[%c0_18, %c0_19], %39 {strides = array<i32>} : memref<2x128xf32, #tpu.memory_space<vmem>>, vector<2x128xf32>,
    %c0_20 = arith.constant 0 : index
    %c0_21 = arith.constant 0 : index
    %42 = vector.load %arg5[%c0_20, %c0_21] : memref<16x128xf32, #tpu.memory_space<vmem>>, vector<2x128xf32>
    tpu.vector_store %arg5[%c0_20, %c0_21], %39 {strides = array<i32>} : memref<16x128xf32, #tpu.memory_space<vmem>>, vector<2x128xf32>,
    %43 = vector.extract_strided_slice %8 {offsets = [2, 0], sizes = [2, 512], strides = [1, 1]} : vector<16x512xf32> to vector<2x512xf32>
    %c0_22 = arith.constant 0 : index
    %c0_23 = arith.constant 0 : index
    %44 = vector.load %arg6[%c0_22, %c0_23] : memref<2x128xf32, #tpu.memory_space<vmem>>, vector<2x128xf32>
    %c0_24 = arith.constant 0 : index
    %c0_25 = arith.constant 0 : index
    %45 = vector.load %arg3[%c0_24, %c0_25] : memref<128x512xf32, #tpu.memory_space<vmem>>, vector<128x512xf32>
    %cst_26 = arith.constant dense<0.000000e+00> : vector<2x512xf32>
    %46 = tpu.matmul %44, %45, %cst_26 {dimension_numbers = #tpu.dot_dimension_numbers<[1], [0], [0], [1], [0, 0, 1, 1], [], []>} : vector<2x128xf32>, vector<128x512xf32>, vector<2x512xf32> -> vector<2x512xf32>
    %47 = arith.addf %43, %46 : vector<2x512xf32>
    %48 = vector.extract_strided_slice %47 {offsets = [0, 0], sizes = [2, 128], strides = [1, 1]} : vector<2x512xf32> to vector<2x128xf32>
    %49 = arith.negf %48 : vector<2x128xf32>
    %50 = math.exp %49 : vector<2x128xf32>
    %cst_27 = arith.constant 1.000000e+00 : f32
    %51 = vector.broadcast %cst_27 : f32 to vector<2x128xf32>
    %52 = arith.addf %51, %50 : vector<2x128xf32>
    %53 = arith.divf %51, %52 : vector<2x128xf32>
    %54 = vector.extract_strided_slice %47 {offsets = [0, 128], sizes = [2, 128], strides = [1, 1]} : vector<2x512xf32> to vector<2x128xf32>
    %55 = arith.negf %54 : vector<2x128xf32>
    %56 = math.exp %55 : vector<2x128xf32>
    %cst_28 = arith.constant 1.000000e+00 : f32
    %57 = vector.broadcast %cst_28 : f32 to vector<2x128xf32>
    %58 = arith.addf %57, %56 : vector<2x128xf32>
    %59 = arith.divf %57, %58 : vector<2x128xf32>
    %60 = vector.extract_strided_slice %47 {offsets = [0, 256], sizes = [2, 128], strides = [1, 1]} : vector<2x512xf32> to vector<2x128xf32>
    %61 = math.tanh %60 : vector<2x128xf32>
    %62 = vector.extract_strided_slice %47 {offsets = [0, 384], sizes = [2, 128], strides = [1, 1]} : vector<2x512xf32> to vector<2x128xf32>
    %63 = arith.negf %62 : vector<2x128xf32>
    %64 = math.exp %63 : vector<2x128xf32>
    %cst_29 = arith.constant 1.000000e+00 : f32
    %65 = vector.broadcast %cst_29 : f32 to vector<2x128xf32>
    %66 = arith.addf %65, %64 : vector<2x128xf32>
    %67 = arith.divf %65, %66 : vector<2x128xf32>
    %c0_30 = arith.constant 0 : index
    %c0_31 = arith.constant 0 : index
    %68 = vector.load %arg7[%c0_30, %c0_31] : memref<2x128xf32, #tpu.memory_space<vmem>>, vector<2x128xf32>
    %69 = arith.mulf %59, %68 : vector<2x128xf32>
    %70 = arith.mulf %53, %61 : vector<2x128xf32>
    %71 = arith.addf %69, %70 : vector<2x128xf32>
    %72 = math.tanh %71 : vector<2x128xf32>
    %73 = arith.mulf %67, %72 : vector<2x128xf32>
    %c0_32 = arith.constant 0 : index
    %c0_33 = arith.constant 0 : index
    %74 = vector.load %arg7[%c0_32, %c0_33] : memref<2x128xf32, #tpu.memory_space<vmem>>, vector<2x128xf32>
    tpu.vector_store %arg7[%c0_32, %c0_33], %71 {strides = array<i32>} : memref<2x128xf32, #tpu.memory_space<vmem>>, vector<2x128xf32>,
    %c0_34 = arith.constant 0 : index
    %c0_35 = arith.constant 0 : index
    %75 = vector.load %arg6[%c0_34, %c0_35] : memref<2x128xf32, #tpu.memory_space<vmem>>, vector<2x128xf32>
    tpu.vector_store %arg6[%c0_34, %c0_35], %73 {strides = array<i32>} : memref<2x128xf32, #tpu.memory_space<vmem>>, vector<2x128xf32>,
    %c2 = arith.constant 2 : index
    %c0_36 = arith.constant 0 : index
    %76 = vector.load %arg5[%c2, %c0_36] : memref<16x128xf32, #tpu.memory_space<vmem>>, vector<2x128xf32>
    tpu.vector_store %arg5[%c2, %c0_36], %73 {strides = array<i32>} : memref<16x128xf32, #tpu.memory_space<vmem>>, vector<2x128xf32>,
    %77 = vector.extract_strided_slice %8 {offsets = [4, 0], sizes = [2, 512], strides = [1, 1]} : vector<16x512xf32> to vector<2x512xf32>
    %c0_37 = arith.constant 0 : index
    %c0_38 = arith.constant 0 : index
    %78 = vector.load %arg6[%c0_37, %c0_38] : memref<2x128xf32, #tpu.memory_space<vmem>>, vector<2x128xf32>
    %c0_39 = arith.constant 0 : index
    %c0_40 = arith.constant 0 : index
    %79 = vector.load %arg3[%c0_39, %c0_40] : memref<128x512xf32, #tpu.memory_space<vmem>>, vector<128x512xf32>
    %cst_41 = arith.constant dense<0.000000e+00> : vector<2x512xf32>
    %80 = tpu.matmul %78, %79, %cst_41 {dimension_numbers = #tpu.dot_dimension_numbers<[1], [0], [0], [1], [0, 0, 1, 1], [], []>} : vector<2x128xf32>, vector<128x512xf32>, vector<2x512xf32> -> vector<2x512xf32>
    %81 = arith.addf %77, %80 : vector<2x512xf32>
    %82 = vector.extract_strided_slice %81 {offsets = [0, 0], sizes = [2, 128], strides = [1, 1]} : vector<2x512xf32> to vector<2x128xf32>
    %83 = arith.negf %82 : vector<2x128xf32>
    %84 = math.exp %83 : vector<2x128xf32>
    %cst_42 = arith.constant 1.000000e+00 : f32
    %85 = vector.broadcast %cst_42 : f32 to vector<2x128xf32>
    %86 = arith.addf %85, %84 : vector<2x128xf32>
    %87 = arith.divf %85, %86 : vector<2x128xf32>
    %88 = vector.extract_strided_slice %81 {offsets = [0, 128], sizes = [2, 128], strides = [1, 1]} : vector<2x512xf32> to vector<2x128xf32>
    %89 = arith.negf %88 : vector<2x128xf32>
    %90 = math.exp %89 : vector<2x128xf32>
    %cst_43 = arith.constant 1.000000e+00 : f32
    %91 = vector.broadcast %cst_43 : f32 to vector<2x128xf32>
    %92 = arith.addf %91, %90 : vector<2x128xf32>
    %93 = arith.divf %91, %92 : vector<2x128xf32>
    %94 = vector.extract_strided_slice %81 {offsets = [0, 256], sizes = [2, 128], strides = [1, 1]} : vector<2x512xf32> to vector<2x128xf32>
    %95 = math.tanh %94 : vector<2x128xf32>
    %96 = vector.extract_strided_slice %81 {offsets = [0, 384], sizes = [2, 128], strides = [1, 1]} : vector<2x512xf32> to vector<2x128xf32>
    %97 = arith.negf %96 : vector<2x128xf32>
    %98 = math.exp %97 : vector<2x128xf32>
    %cst_44 = arith.constant 1.000000e+00 : f32
    %99 = vector.broadcast %cst_44 : f32 to vector<2x128xf32>
    %100 = arith.addf %99, %98 : vector<2x128xf32>
    %101 = arith.divf %99, %100 : vector<2x128xf32>
    %c0_45 = arith.constant 0 : index
    %c0_46 = arith.constant 0 : index
    %102 = vector.load %arg7[%c0_45, %c0_46] : memref<2x128xf32, #tpu.memory_space<vmem>>, vector<2x128xf32>
    %103 = arith.mulf %93, %102 : vector<2x128xf32>
    %104 = arith.mulf %87, %95 : vector<2x128xf32>
    %105 = arith.addf %103, %104 : vector<2x128xf32>
    %106 = math.tanh %105 : vector<2x128xf32>
    %107 = arith.mulf %101, %106 : vector<2x128xf32>
    %c0_47 = arith.constant 0 : index
    %c0_48 = arith.constant 0 : index
    %108 = vector.load %arg7[%c0_47, %c0_48] : memref<2x128xf32, #tpu.memory_space<vmem>>, vector<2x128xf32>
    tpu.vector_store %arg7[%c0_47, %c0_48], %105 {strides = array<i32>} : memref<2x128xf32, #tpu.memory_space<vmem>>, vector<2x128xf32>,
    %c0_49 = arith.constant 0 : index
    %c0_50 = arith.constant 0 : index
    %109 = vector.load %arg6[%c0_49, %c0_50] : memref<2x128xf32, #tpu.memory_space<vmem>>, vector<2x128xf32>
    tpu.vector_store %arg6[%c0_49, %c0_50], %107 {strides = array<i32>} : memref<2x128xf32, #tpu.memory_space<vmem>>, vector<2x128xf32>,
    %c4 = arith.constant 4 : index
    %c0_51 = arith.constant 0 : index
    %110 = vector.load %arg5[%c4, %c0_51] : memref<16x128xf32, #tpu.memory_space<vmem>>, vector<2x128xf32>
    tpu.vector_store %arg5[%c4, %c0_51], %107 {strides = array<i32>} : memref<16x128xf32, #tpu.memory_space<vmem>>, vector<2x128xf32>,
    %111 = vector.extract_strided_slice %8 {offsets = [6, 0], sizes = [2, 512], strides = [1, 1]} : vector<16x512xf32> to vector<2x512xf32>
    %c0_52 = arith.constant 0 : index
    %c0_53 = arith.constant 0 : index
    %112 = vector.load %arg6[%c0_52, %c0_53] : memref<2x128xf32, #tpu.memory_space<vmem>>, vector<2x128xf32>
    %c0_54 = arith.constant 0 : index
    %c0_55 = arith.constant 0 : index
    %113 = vector.load %arg3[%c0_54, %c0_55] : memref<128x512xf32, #tpu.memory_space<vmem>>, vector<128x512xf32>
    %cst_56 = arith.constant dense<0.000000e+00> : vector<2x512xf32>
    %114 = tpu.matmul %112, %113, %cst_56 {dimension_numbers = #tpu.dot_dimension_numbers<[1], [0], [0], [1], [0, 0, 1, 1], [], []>} : vector<2x128xf32>, vector<128x512xf32>, vector<2x512xf32> -> vector<2x512xf32>
    %115 = arith.addf %111, %114 : vector<2x512xf32>
    %116 = vector.extract_strided_slice %115 {offsets = [0, 0], sizes = [2, 128], strides = [1, 1]} : vector<2x512xf32> to vector<2x128xf32>
    %117 = arith.negf %116 : vector<2x128xf32>
    %118 = math.exp %117 : vector<2x128xf32>
    %cst_57 = arith.constant 1.000000e+00 : f32
    %119 = vector.broadcast %cst_57 : f32 to vector<2x128xf32>
    %120 = arith.addf %119, %118 : vector<2x128xf32>
    %121 = arith.divf %119, %120 : vector<2x128xf32>
    %122 = vector.extract_strided_slice %115 {offsets = [0, 128], sizes = [2, 128], strides = [1, 1]} : vector<2x512xf32> to vector<2x128xf32>
    %123 = arith.negf %122 : vector<2x128xf32>
    %124 = math.exp %123 : vector<2x128xf32>
    %cst_58 = arith.constant 1.000000e+00 : f32
    %125 = vector.broadcast %cst_58 : f32 to vector<2x128xf32>
    %126 = arith.addf %125, %124 : vector<2x128xf32>
    %127 = arith.divf %125, %126 : vector<2x128xf32>
    %128 = vector.extract_strided_slice %115 {offsets = [0, 256], sizes = [2, 128], strides = [1, 1]} : vector<2x512xf32> to vector<2x128xf32>
    %129 = math.tanh %128 : vector<2x128xf32>
    %130 = vector.extract_strided_slice %115 {offsets = [0, 384], sizes = [2, 128], strides = [1, 1]} : vector<2x512xf32> to vector<2x128xf32>
    %131 = arith.negf %130 : vector<2x128xf32>
    %132 = math.exp %131 : vector<2x128xf32>
    %cst_59 = arith.constant 1.000000e+00 : f32
    %133 = vector.broadcast %cst_59 : f32 to vector<2x128xf32>
    %134 = arith.addf %133, %132 : vector<2x128xf32>
    %135 = arith.divf %133, %134 : vector<2x128xf32>
    %c0_60 = arith.constant 0 : index
    %c0_61 = arith.constant 0 : index
    %136 = vector.load %arg7[%c0_60, %c0_61] : memref<2x128xf32, #tpu.memory_space<vmem>>, vector<2x128xf32>
    %137 = arith.mulf %127, %136 : vector<2x128xf32>
    %138 = arith.mulf %121, %129 : vector<2x128xf32>
    %139 = arith.addf %137, %138 : vector<2x128xf32>
    %140 = math.tanh %139 : vector<2x128xf32>
    %141 = arith.mulf %135, %140 : vector<2x128xf32>
    %c0_62 = arith.constant 0 : index
    %c0_63 = arith.constant 0 : index
    %142 = vector.load %arg7[%c0_62, %c0_63] : memref<2x128xf32, #tpu.memory_space<vmem>>, vector<2x128xf32>
    tpu.vector_store %arg7[%c0_62, %c0_63], %139 {strides = array<i32>} : memref<2x128xf32, #tpu.memory_space<vmem>>, vector<2x128xf32>,
    %c0_64 = arith.constant 0 : index
    %c0_65 = arith.constant 0 : index
    %143 = vector.load %arg6[%c0_64, %c0_65] : memref<2x128xf32, #tpu.memory_space<vmem>>, vector<2x128xf32>
    tpu.vector_store %arg6[%c0_64, %c0_65], %141 {strides = array<i32>} : memref<2x128xf32, #tpu.memory_space<vmem>>, vector<2x128xf32>,
    %c6 = arith.constant 6 : index
    %c0_66 = arith.constant 0 : index
    %144 = vector.load %arg5[%c6, %c0_66] : memref<16x128xf32, #tpu.memory_space<vmem>>, vector<2x128xf32>
    tpu.vector_store %arg5[%c6, %c0_66], %141 {strides = array<i32>} : memref<16x128xf32, #tpu.memory_space<vmem>>, vector<2x128xf32>,
    %145 = vector.extract_strided_slice %8 {offsets = [8, 0], sizes = [2, 512], strides = [1, 1]} : vector<16x512xf32> to vector<2x512xf32>
    %c0_67 = arith.constant 0 : index
    %c0_68 = arith.constant 0 : index
    %146 = vector.load %arg6[%c0_67, %c0_68] : memref<2x128xf32, #tpu.memory_space<vmem>>, vector<2x128xf32>
    %c0_69 = arith.constant 0 : index
    %c0_70 = arith.constant 0 : index
    %147 = vector.load %arg3[%c0_69, %c0_70] : memref<128x512xf32, #tpu.memory_space<vmem>>, vector<128x512xf32>
    %cst_71 = arith.constant dense<0.000000e+00> : vector<2x512xf32>
    %148 = tpu.matmul %146, %147, %cst_71 {dimension_numbers = #tpu.dot_dimension_numbers<[1], [0], [0], [1], [0, 0, 1, 1], [], []>} : vector<2x128xf32>, vector<128x512xf32>, vector<2x512xf32> -> vector<2x512xf32>
    %149 = arith.addf %145, %148 : vector<2x512xf32>
    %150 = vector.extract_strided_slice %149 {offsets = [0, 0], sizes = [2, 128], strides = [1, 1]} : vector<2x512xf32> to vector<2x128xf32>
    %151 = arith.negf %150 : vector<2x128xf32>
    %152 = math.exp %151 : vector<2x128xf32>
    %cst_72 = arith.constant 1.000000e+00 : f32
    %153 = vector.broadcast %cst_72 : f32 to vector<2x128xf32>
    %154 = arith.addf %153, %152 : vector<2x128xf32>
    %155 = arith.divf %153, %154 : vector<2x128xf32>
    %156 = vector.extract_strided_slice %149 {offsets = [0, 128], sizes = [2, 128], strides = [1, 1]} : vector<2x512xf32> to vector<2x128xf32>
    %157 = arith.negf %156 : vector<2x128xf32>
    %158 = math.exp %157 : vector<2x128xf32>
    %cst_73 = arith.constant 1.000000e+00 : f32
    %159 = vector.broadcast %cst_73 : f32 to vector<2x128xf32>
    %160 = arith.addf %159, %158 : vector<2x128xf32>
    %161 = arith.divf %159, %160 : vector<2x128xf32>
    %162 = vector.extract_strided_slice %149 {offsets = [0, 256], sizes = [2, 128], strides = [1, 1]} : vector<2x512xf32> to vector<2x128xf32>
    %163 = math.tanh %162 : vector<2x128xf32>
    %164 = vector.extract_strided_slice %149 {offsets = [0, 384], sizes = [2, 128], strides = [1, 1]} : vector<2x512xf32> to vector<2x128xf32>
    %165 = arith.negf %164 : vector<2x128xf32>
    %166 = math.exp %165 : vector<2x128xf32>
    %cst_74 = arith.constant 1.000000e+00 : f32
    %167 = vector.broadcast %cst_74 : f32 to vector<2x128xf32>
    %168 = arith.addf %167, %166 : vector<2x128xf32>
    %169 = arith.divf %167, %168 : vector<2x128xf32>
    %c0_75 = arith.constant 0 : index
    %c0_76 = arith.constant 0 : index
    %170 = vector.load %arg7[%c0_75, %c0_76] : memref<2x128xf32, #tpu.memory_space<vmem>>, vector<2x128xf32>
    %171 = arith.mulf %161, %170 : vector<2x128xf32>
    %172 = arith.mulf %155, %163 : vector<2x128xf32>
    %173 = arith.addf %171, %172 : vector<2x128xf32>
    %174 = math.tanh %173 : vector<2x128xf32>
    %175 = arith.mulf %169, %174 : vector<2x128xf32>
    %c0_77 = arith.constant 0 : index
    %c0_78 = arith.constant 0 : index
    %176 = vector.load %arg7[%c0_77, %c0_78] : memref<2x128xf32, #tpu.memory_space<vmem>>, vector<2x128xf32>
    tpu.vector_store %arg7[%c0_77, %c0_78], %173 {strides = array<i32>} : memref<2x128xf32, #tpu.memory_space<vmem>>, vector<2x128xf32>,
    %c0_79 = arith.constant 0 : index
    %c0_80 = arith.constant 0 : index
    %177 = vector.load %arg6[%c0_79, %c0_80] : memref<2x128xf32, #tpu.memory_space<vmem>>, vector<2x128xf32>
    tpu.vector_store %arg6[%c0_79, %c0_80], %175 {strides = array<i32>} : memref<2x128xf32, #tpu.memory_space<vmem>>, vector<2x128xf32>,
    %c8 = arith.constant 8 : index
    %c0_81 = arith.constant 0 : index
    %178 = vector.load %arg5[%c8, %c0_81] : memref<16x128xf32, #tpu.memory_space<vmem>>, vector<2x128xf32>
    tpu.vector_store %arg5[%c8, %c0_81], %175 {strides = array<i32>} : memref<16x128xf32, #tpu.memory_space<vmem>>, vector<2x128xf32>,
    %179 = vector.extract_strided_slice %8 {offsets = [10, 0], sizes = [2, 512], strides = [1, 1]} : vector<16x512xf32> to vector<2x512xf32>
    %c0_82 = arith.constant 0 : index
    %c0_83 = arith.constant 0 : index
    %180 = vector.load %arg6[%c0_82, %c0_83] : memref<2x128xf32, #tpu.memory_space<vmem>>, vector<2x128xf32>
    %c0_84 = arith.constant 0 : index
    %c0_85 = arith.constant 0 : index
    %181 = vector.load %arg3[%c0_84, %c0_85] : memref<128x512xf32, #tpu.memory_space<vmem>>, vector<128x512xf32>
    %cst_86 = arith.constant dense<0.000000e+00> : vector<2x512xf32>
    %182 = tpu.matmul %180, %181, %cst_86 {dimension_numbers = #tpu.dot_dimension_numbers<[1], [0], [0], [1], [0, 0, 1, 1], [], []>} : vector<2x128xf32>, vector<128x512xf32>, vector<2x512xf32> -> vector<2x512xf32>
    %183 = arith.addf %179, %182 : vector<2x512xf32>
    %184 = vector.extract_strided_slice %183 {offsets = [0, 0], sizes = [2, 128], strides = [1, 1]} : vector<2x512xf32> to vector<2x128xf32>
    %185 = arith.negf %184 : vector<2x128xf32>
    %186 = math.exp %185 : vector<2x128xf32>
    %cst_87 = arith.constant 1.000000e+00 : f32
    %187 = vector.broadcast %cst_87 : f32 to vector<2x128xf32>
    %188 = arith.addf %187, %186 : vector<2x128xf32>
    %189 = arith.divf %187, %188 : vector<2x128xf32>
    %190 = vector.extract_strided_slice %183 {offsets = [0, 128], sizes = [2, 128], strides = [1, 1]} : vector<2x512xf32> to vector<2x128xf32>
    %191 = arith.negf %190 : vector<2x128xf32>
    %192 = math.exp %191 : vector<2x128xf32>
    %cst_88 = arith.constant 1.000000e+00 : f32
    %193 = vector.broadcast %cst_88 : f32 to vector<2x128xf32>
    %194 = arith.addf %193, %192 : vector<2x128xf32>
    %195 = arith.divf %193, %194 : vector<2x128xf32>
    %196 = vector.extract_strided_slice %183 {offsets = [0, 256], sizes = [2, 128], strides = [1, 1]} : vector<2x512xf32> to vector<2x128xf32>
    %197 = math.tanh %196 : vector<2x128xf32>
    %198 = vector.extract_strided_slice %183 {offsets = [0, 384], sizes = [2, 128], strides = [1, 1]} : vector<2x512xf32> to vector<2x128xf32>
    %199 = arith.negf %198 : vector<2x128xf32>
    %200 = math.exp %199 : vector<2x128xf32>
    %cst_89 = arith.constant 1.000000e+00 : f32
    %201 = vector.broadcast %cst_89 : f32 to vector<2x128xf32>
    %202 = arith.addf %201, %200 : vector<2x128xf32>
    %203 = arith.divf %201, %202 : vector<2x128xf32>
    %c0_90 = arith.constant 0 : index
    %c0_91 = arith.constant 0 : index
    %204 = vector.load %arg7[%c0_90, %c0_91] : memref<2x128xf32, #tpu.memory_space<vmem>>, vector<2x128xf32>
    %205 = arith.mulf %195, %204 : vector<2x128xf32>
    %206 = arith.mulf %189, %197 : vector<2x128xf32>
    %207 = arith.addf %205, %206 : vector<2x128xf32>
    %208 = math.tanh %207 : vector<2x128xf32>
    %209 = arith.mulf %203, %208 : vector<2x128xf32>
    %c0_92 = arith.constant 0 : index
    %c0_93 = arith.constant 0 : index
    %210 = vector.load %arg7[%c0_92, %c0_93] : memref<2x128xf32, #tpu.memory_space<vmem>>, vector<2x128xf32>
    tpu.vector_store %arg7[%c0_92, %c0_93], %207 {strides = array<i32>} : memref<2x128xf32, #tpu.memory_space<vmem>>, vector<2x128xf32>,
    %c0_94 = arith.constant 0 : index
    %c0_95 = arith.constant 0 : index
    %211 = vector.load %arg6[%c0_94, %c0_95] : memref<2x128xf32, #tpu.memory_space<vmem>>, vector<2x128xf32>
    tpu.vector_store %arg6[%c0_94, %c0_95], %209 {strides = array<i32>} : memref<2x128xf32, #tpu.memory_space<vmem>>, vector<2x128xf32>,
    %c10 = arith.constant 10 : index
    %c0_96 = arith.constant 0 : index
    %212 = vector.load %arg5[%c10, %c0_96] : memref<16x128xf32, #tpu.memory_space<vmem>>, vector<2x128xf32>
    tpu.vector_store %arg5[%c10, %c0_96], %209 {strides = array<i32>} : memref<16x128xf32, #tpu.memory_space<vmem>>, vector<2x128xf32>,
    %213 = vector.extract_strided_slice %8 {offsets = [12, 0], sizes = [2, 512], strides = [1, 1]} : vector<16x512xf32> to vector<2x512xf32>
    %c0_97 = arith.constant 0 : index
    %c0_98 = arith.constant 0 : index
    %214 = vector.load %arg6[%c0_97, %c0_98] : memref<2x128xf32, #tpu.memory_space<vmem>>, vector<2x128xf32>
    %c0_99 = arith.constant 0 : index
    %c0_100 = arith.constant 0 : index
    %215 = vector.load %arg3[%c0_99, %c0_100] : memref<128x512xf32, #tpu.memory_space<vmem>>, vector<128x512xf32>
    %cst_101 = arith.constant dense<0.000000e+00> : vector<2x512xf32>
    %216 = tpu.matmul %214, %215, %cst_101 {dimension_numbers = #tpu.dot_dimension_numbers<[1], [0], [0], [1], [0, 0, 1, 1], [], []>} : vector<2x128xf32>, vector<128x512xf32>, vector<2x512xf32> -> vector<2x512xf32>
    %217 = arith.addf %213, %216 : vector<2x512xf32>
    %218 = vector.extract_strided_slice %217 {offsets = [0, 0], sizes = [2, 128], strides = [1, 1]} : vector<2x512xf32> to vector<2x128xf32>
    %219 = arith.negf %218 : vector<2x128xf32>
    %220 = math.exp %219 : vector<2x128xf32>
    %cst_102 = arith.constant 1.000000e+00 : f32
    %221 = vector.broadcast %cst_102 : f32 to vector<2x128xf32>
    %222 = arith.addf %221, %220 : vector<2x128xf32>
    %223 = arith.divf %221, %222 : vector<2x128xf32>
    %224 = vector.extract_strided_slice %217 {offsets = [0, 128], sizes = [2, 128], strides = [1, 1]} : vector<2x512xf32> to vector<2x128xf32>
    %225 = arith.negf %224 : vector<2x128xf32>
    %226 = math.exp %225 : vector<2x128xf32>
    %cst_103 = arith.constant 1.000000e+00 : f32
    %227 = vector.broadcast %cst_103 : f32 to vector<2x128xf32>
    %228 = arith.addf %227, %226 : vector<2x128xf32>
    %229 = arith.divf %227, %228 : vector<2x128xf32>
    %230 = vector.extract_strided_slice %217 {offsets = [0, 256], sizes = [2, 128], strides = [1, 1]} : vector<2x512xf32> to vector<2x128xf32>
    %231 = math.tanh %230 : vector<2x128xf32>
    %232 = vector.extract_strided_slice %217 {offsets = [0, 384], sizes = [2, 128], strides = [1, 1]} : vector<2x512xf32> to vector<2x128xf32>
    %233 = arith.negf %232 : vector<2x128xf32>
    %234 = math.exp %233 : vector<2x128xf32>
    %cst_104 = arith.constant 1.000000e+00 : f32
    %235 = vector.broadcast %cst_104 : f32 to vector<2x128xf32>
    %236 = arith.addf %235, %234 : vector<2x128xf32>
    %237 = arith.divf %235, %236 : vector<2x128xf32>
    %c0_105 = arith.constant 0 : index
    %c0_106 = arith.constant 0 : index
    %238 = vector.load %arg7[%c0_105, %c0_106] : memref<2x128xf32, #tpu.memory_space<vmem>>, vector<2x128xf32>
    %239 = arith.mulf %229, %238 : vector<2x128xf32>
    %240 = arith.mulf %223, %231 : vector<2x128xf32>
    %241 = arith.addf %239, %240 : vector<2x128xf32>
    %242 = math.tanh %241 : vector<2x128xf32>
    %243 = arith.mulf %237, %242 : vector<2x128xf32>
    %c0_107 = arith.constant 0 : index
    %c0_108 = arith.constant 0 : index
    %244 = vector.load %arg7[%c0_107, %c0_108] : memref<2x128xf32, #tpu.memory_space<vmem>>, vector<2x128xf32>
    tpu.vector_store %arg7[%c0_107, %c0_108], %241 {strides = array<i32>} : memref<2x128xf32, #tpu.memory_space<vmem>>, vector<2x128xf32>,
    %c0_109 = arith.constant 0 : index
    %c0_110 = arith.constant 0 : index
    %245 = vector.load %arg6[%c0_109, %c0_110] : memref<2x128xf32, #tpu.memory_space<vmem>>, vector<2x128xf32>
    tpu.vector_store %arg6[%c0_109, %c0_110], %243 {strides = array<i32>} : memref<2x128xf32, #tpu.memory_space<vmem>>, vector<2x128xf32>,
    %c12 = arith.constant 12 : index
    %c0_111 = arith.constant 0 : index
    %246 = vector.load %arg5[%c12, %c0_111] : memref<16x128xf32, #tpu.memory_space<vmem>>, vector<2x128xf32>
    tpu.vector_store %arg5[%c12, %c0_111], %243 {strides = array<i32>} : memref<16x128xf32, #tpu.memory_space<vmem>>, vector<2x128xf32>,
    %247 = vector.extract_strided_slice %8 {offsets = [14, 0], sizes = [2, 512], strides = [1, 1]} : vector<16x512xf32> to vector<2x512xf32>
    %c0_112 = arith.constant 0 : index
    %c0_113 = arith.constant 0 : index
    %248 = vector.load %arg6[%c0_112, %c0_113] : memref<2x128xf32, #tpu.memory_space<vmem>>, vector<2x128xf32>
    %c0_114 = arith.constant 0 : index
    %c0_115 = arith.constant 0 : index
    %249 = vector.load %arg3[%c0_114, %c0_115] : memref<128x512xf32, #tpu.memory_space<vmem>>, vector<128x512xf32>
    %cst_116 = arith.constant dense<0.000000e+00> : vector<2x512xf32>
    %250 = tpu.matmul %248, %249, %cst_116 {dimension_numbers = #tpu.dot_dimension_numbers<[1], [0], [0], [1], [0, 0, 1, 1], [], []>} : vector<2x128xf32>, vector<128x512xf32>, vector<2x512xf32> -> vector<2x512xf32>
    %251 = arith.addf %247, %250 : vector<2x512xf32>
    %252 = vector.extract_strided_slice %251 {offsets = [0, 0], sizes = [2, 128], strides = [1, 1]} : vector<2x512xf32> to vector<2x128xf32>
    %253 = arith.negf %252 : vector<2x128xf32>
    %254 = math.exp %253 : vector<2x128xf32>
    %cst_117 = arith.constant 1.000000e+00 : f32
    %255 = vector.broadcast %cst_117 : f32 to vector<2x128xf32>
    %256 = arith.addf %255, %254 : vector<2x128xf32>
    %257 = arith.divf %255, %256 : vector<2x128xf32>
    %258 = vector.extract_strided_slice %251 {offsets = [0, 128], sizes = [2, 128], strides = [1, 1]} : vector<2x512xf32> to vector<2x128xf32>
    %259 = arith.negf %258 : vector<2x128xf32>
    %260 = math.exp %259 : vector<2x128xf32>
    %cst_118 = arith.constant 1.000000e+00 : f32
    %261 = vector.broadcast %cst_118 : f32 to vector<2x128xf32>
    %262 = arith.addf %261, %260 : vector<2x128xf32>
    %263 = arith.divf %261, %262 : vector<2x128xf32>
    %264 = vector.extract_strided_slice %251 {offsets = [0, 256], sizes = [2, 128], strides = [1, 1]} : vector<2x512xf32> to vector<2x128xf32>
    %265 = math.tanh %264 : vector<2x128xf32>
    %266 = vector.extract_strided_slice %251 {offsets = [0, 384], sizes = [2, 128], strides = [1, 1]} : vector<2x512xf32> to vector<2x128xf32>
    %267 = arith.negf %266 : vector<2x128xf32>
    %268 = math.exp %267 : vector<2x128xf32>
    %cst_119 = arith.constant 1.000000e+00 : f32
    %269 = vector.broadcast %cst_119 : f32 to vector<2x128xf32>
    %270 = arith.addf %269, %268 : vector<2x128xf32>
    %271 = arith.divf %269, %270 : vector<2x128xf32>
    %c0_120 = arith.constant 0 : index
    %c0_121 = arith.constant 0 : index
    %272 = vector.load %arg7[%c0_120, %c0_121] : memref<2x128xf32, #tpu.memory_space<vmem>>, vector<2x128xf32>
    %273 = arith.mulf %263, %272 : vector<2x128xf32>
    %274 = arith.mulf %257, %265 : vector<2x128xf32>
    %275 = arith.addf %273, %274 : vector<2x128xf32>
    %276 = math.tanh %275 : vector<2x128xf32>
    %277 = arith.mulf %271, %276 : vector<2x128xf32>
    %c0_122 = arith.constant 0 : index
    %c0_123 = arith.constant 0 : index
    %278 = vector.load %arg7[%c0_122, %c0_123] : memref<2x128xf32, #tpu.memory_space<vmem>>, vector<2x128xf32>
    tpu.vector_store %arg7[%c0_122, %c0_123], %275 {strides = array<i32>} : memref<2x128xf32, #tpu.memory_space<vmem>>, vector<2x128xf32>,
    %c0_124 = arith.constant 0 : index
    %c0_125 = arith.constant 0 : index
    %279 = vector.load %arg6[%c0_124, %c0_125] : memref<2x128xf32, #tpu.memory_space<vmem>>, vector<2x128xf32>
    tpu.vector_store %arg6[%c0_124, %c0_125], %277 {strides = array<i32>} : memref<2x128xf32, #tpu.memory_space<vmem>>, vector<2x128xf32>,
    %c14 = arith.constant 14 : index
    %c0_126 = arith.constant 0 : index
    %280 = vector.load %arg5[%c14, %c0_126] : memref<16x128xf32, #tpu.memory_space<vmem>>, vector<2x128xf32>
    tpu.vector_store %arg5[%c14, %c0_126], %277 {strides = array<i32>} : memref<16x128xf32, #tpu.memory_space<vmem>>, vector<2x128xf32>,
    return
  }
  func.func @transform_0(%arg0: i32) -> (i32, i32) {
    %c0_i32 = arith.constant 0 : i32
    %c0_i32_0 = arith.constant 0 : i32
    return %arg0, %c0_i32 : i32, i32
  }
  func.func @transform_1(%arg0: i32) -> (i32, i32) {
    %c0_i32 = arith.constant 0 : i32
    %c0_i32_0 = arith.constant 0 : i32
    %c0_i32_1 = arith.constant 0 : i32
    return %c0_i32, %c0_i32_0 : i32, i32
  }
  func.func @transform_2(%arg0: i32) -> (i32, i32) {
    %c0_i32 = arith.constant 0 : i32
    %c0_i32_0 = arith.constant 0 : i32
    %c0_i32_1 = arith.constant 0 : i32
    return %c0_i32, %c0_i32_0 : i32, i32
  }
  func.func @transform_3(%arg0: i32) -> (i32, i32) {
    %c0_i32 = arith.constant 0 : i32
    %c0_i32_0 = arith.constant 0 : i32
    %c0_i32_1 = arith.constant 0 : i32
    return %c0_i32, %c0_i32_0 : i32, i32
  }
  func.func @transform_4(%arg0: i32) -> (i32, i32) {
    %c0_i32 = arith.constant 0 : i32
    %c0_i32_0 = arith.constant 0 : i32
    return %arg0, %c0_i32 : i32, i32
  }
}

</mosaic_0001>

<bundles_post_ra>
// kernel: tpu_custom_call.1
= control target key start
LH: loop header
LB: loop body
LE: loop exit
PB: predicated region body
PF: predicated region fallthrough
CT: control target
= control target key end

     0   :  { %9 = vsyncpa [#allocation5], 0  ;;  %s3442_s0 = inlined_call_operand.hbm [shape: f32[16,128], index: 0, kind: input, shape index: {}]   ;;  %s3443_s1 = inlined_call_operand.hbm [shape: f32[128,512], index: 1, kind: input, shape index: {}]   ;;  %s3444_s2 = inlined_call_operand.hbm [shape: f32[128,512], index: 2, kind: input, shape index: {}]   ;;  %s3445_s3 = inlined_call_operand.hbm [shape: f32[1,512], index: 3, kind: input, shape index: {}]   ;;  %s3446_s4 = inlined_call_operand.hbm [shape: f32[16,128], index: 4, kind: output, shape index: {}]  }
   0x1   :  { %10 = vsyncpa [#allocation8], 0 }
   0x2   :  { %11 = vsyncpa [#allocation11], 0  ;;  %s30_s17 = sshll.u32 %s3443_s1, 4  ;;  %s31_s17 = int_to_ptr.hbm [resolvable:$true] %s30_s17 }
   0x3   :  { %12 = vsyncpa [#allocation6], 0  ;;  %s2382_s18 = smov [#allocation7]   ;;  %s17_s22 = sshll.u32 %s3442_s0, 4  ;;  %s18_s22 = int_to_ptr.hbm [resolvable:$true] %s17_s22 }
   0x4   :  { %s32_s19 = sshll.u32 %s2382_s18, 4  ;;  %s2383_s23 = smov 512   ;;  %s33_s19 = int_to_ptr.vmem [resolvable:$true] %s32_s19 }
   0x5   :  { %s2384_s24 = smov 32   ;;  %s2385_s25 = smov [#allocation4]  }
   0x6   :  { %38 = dma.hbm_to_vmem [thread:$0]  %s31_s17, 8192, %s33_s19, [#allocation8], %s2383_s23, %s2383_s23, %s2384_s24  }
   0x7   :  { %s19_s26 = sshll.u32 %s2385_s25, 4  ;;  %s2386_s27 = smov 128   ;;  %s20_s26 = int_to_ptr.vmem [resolvable:$true] %s19_s26 }
   0x8   :  { %s2387_s28 = smov 8   ;;  %s43_s30 = sshll.u32 %s3444_s2, 4  ;;  %s44_s30 = int_to_ptr.hbm [resolvable:$true] %s43_s30 }
   0x9   :  { %25 = dma.hbm_to_vmem [thread:$0]  %s18_s22, 256, %s20_s26, [#allocation5], %s2386_s27, %s2386_s27, %s2387_s28  }
   0xa   :  { %s2388_s5 = smov [#allocation9]   ;;  %s57_s8 = sshll.u32 %s3445_s3, 4  ;;  %s58_s8 = int_to_ptr.hbm [resolvable:$true] %s57_s8 }
   0xb   :  { %s45_s0 = sshll.u32 %s2388_s5, 4  ;;  %s2389_s9 = smov [#allocation10]   ;;  %s46_s0 = int_to_ptr.vmem [resolvable:$true] %s45_s0 }
   0xc   :  { %51 = dma.hbm_to_vmem [thread:$0]  %s44_s30, 8192, %s46_s0, [#allocation8], %s2383_s23, %s2383_s23, %s2384_s24  }
   0xd   :  { %s59_s10 = sshll.u32 %s2389_s9, 4  ;;  %s60_s10 = int_to_ptr.vmem [resolvable:$true] %s59_s10 }
   0xe   :  { %62 = dma.hbm_to_vmem [thread:$0]  %s58_s8, 64, %s60_s10, [#allocation11]  }
   0xf   :  { %2374 = dma.done.wait [#allocation5], 256  }
  0x10   :  { %2375 = vsyncadd [#allocation5], 4294967040 }
  0x11   :  { %2376 = dma.done.wait [#allocation8], 16384  }
  0x12   :  { %2377 = vsyncadd [#allocation8], 4294950912 }
  0x13   :  { %2378 = dma.done.wait [#allocation11], 64  }
  0x14   :  { %2379 = vsyncadd [#allocation11], 4294967232  ;;  %v147_v0 = vld [vmem:[#allocation7 + $0x1e0] sm:$0xff]  ;;  %v148_v1 = vld [vmem:[#allocation7 + $0x1e8] sm:$0xff]  ;;  %s2391_s2 = smov [#allocation12]   ;;  %s2077_s13 = sshll.u32 %s3446_s4, 4  ;;  %s2078_s13 = int_to_ptr.hbm [resolvable:$true] %s2077_s13 }
  0x15   :  { %v150_v2 = vld [vmem:[#allocation7 + $0x1f8] sm:$0xff]  ;;  %161 = vmatpush.msra.mxu0 %v147_v0  ;;  %184 = vmatpush.msra.mxu1 %v148_v1  ;;  %v149_v3 = vld [vmem:[#allocation7 + $0x1f0] sm:$0xff]  ;;  %v143_v4 = vld [vmem:[#allocation7 + $0x1c0] sm:$0xff]  ;;  %v2390_v0 = vmov 0.0   ;;  %s2075_s3 = sshll.u32 %s2391_s2, 4  ;;  %s2076_s3 = int_to_ptr.vmem [resolvable:$true] %s2075_s3 }
  0x16   :  { %v144_v5 = vld [vmem:[#allocation7 + $0x1c8] sm:$0xff]  ;;  %230 = vmatpush.msra.mxu3 %v150_v2  ;;  %207 = vmatpush.msra.mxu2 %v149_v3  ;;  %v146_v6 = vld [vmem:[#allocation7 + $0x1d8] sm:$0xff]  ;;  %v145_v7 = vld [vmem:[#allocation7 + $0x1d0] sm:$0xff]  ;;  %83 = vst [vmem:[#allocation2] sm:$0x3] %v2390_v0 }
  0x17   :  { %v139_v8 = vld [vmem:[#allocation7 + $0x1a0] sm:$0xff]  ;;  %162 = vmatpush.msra.mxu0 %v143_v4  ;;  %185 = vmatpush.msra.mxu1 %v144_v5  ;;  %v140_v9 = vld [vmem:[#allocation7 + $0x1a8] sm:$0xff]  ;;  %v142_v10 = vld [vmem:[#allocation7 + $0x1b8] sm:$0xff]  ;;  %84 = vst [vmem:[#allocation3] sm:$0x3] %v2390_v0 }
  0x18   :  { %v141_v11 = vld [vmem:[#allocation7 + $0x1b0] sm:$0xff]  ;;  %231 = vmatpush.msra.mxu3 %v146_v6  ;;  %208 = vmatpush.msra.mxu2 %v145_v7  ;;  %v135_v12 = vld [vmem:[#allocation7 + $0x180] sm:$0xff]  ;;  %v136_v13 = vld [vmem:[#allocation7 + $0x188] sm:$0xff] }
  0x19   :  { %163 = vmatpush.msra.mxu0 %v139_v8  ;;  %186 = vmatpush.msra.mxu1 %v140_v9  ;;  %v138_v14 = vld [vmem:[#allocation7 + $0x198] sm:$0xff]  ;;  %v137_v15 = vld [vmem:[#allocation7 + $0x190] sm:$0xff]  ;;  %v131_v16 = vld [vmem:[#allocation7 + $0x160] sm:$0xff] }
  0x1a   :  { %232 = vmatpush.msra.mxu3 %v142_v10  ;;  %209 = vmatpush.msra.mxu2 %v141_v11  ;;  %v132_v17 = vld [vmem:[#allocation7 + $0x168] sm:$0xff]  ;;  %v134_v18 = vld [vmem:[#allocation7 + $0x178] sm:$0xff]  ;;  %v133_v19 = vld [vmem:[#allocation7 + $0x170] sm:$0xff] }
  0x1b   :  { %164 = vmatpush.msra.mxu0 %v135_v12  ;;  %187 = vmatpush.msra.mxu1 %v136_v13  ;;  %v127_v20 = vld [vmem:[#allocation7 + $0x140] sm:$0xff]  ;;  %v128_v21 = vld [vmem:[#allocation7 + $0x148] sm:$0xff]  ;;  %v130_v22 = vld [vmem:[#allocation7 + $0x158] sm:$0xff] }
  0x1c   :  { %233 = vmatpush.msra.mxu3 %v138_v14  ;;  %210 = vmatpush.msra.mxu2 %v137_v15  ;;  %v129_v23 = vld [vmem:[#allocation7 + $0x150] sm:$0xff]  ;;  %v123_v24 = vld [vmem:[#allocation7 + $0x120] sm:$0xff]  ;;  %v124_v25 = vld [vmem:[#allocation7 + $0x128] sm:$0xff] }
  0x1d   :  { %165 = vmatpush.msra.mxu0 %v131_v16  ;;  %188 = vmatpush.msra.mxu1 %v132_v17  ;;  %v126_v26 = vld [vmem:[#allocation7 + $0x138] sm:$0xff]  ;;  %v125_v27 = vld [vmem:[#allocation7 + $0x130] sm:$0xff]  ;;  %v119_v28 = vld [vmem:[#allocation7 + $0x100] sm:$0xff] }
  0x1e   :  { %234 = vmatpush.msra.mxu3 %v134_v18  ;;  %211 = vmatpush.msra.mxu2 %v133_v19  ;;  %v120_v29 = vld [vmem:[#allocation7 + $0x108] sm:$0xff]  ;;  %v122_v30 = vld [vmem:[#allocation7 + $0x118] sm:$0xff]  ;;  %v121_v31 = vld [vmem:[#allocation7 + $0x110] sm:$0xff] }
  0x1f   :  { %166 = vmatpush.msra.mxu0 %v127_v20  ;;  %189 = vmatpush.msra.mxu1 %v128_v21  ;;  %v115_v32 = vld [vmem:[#allocation7 + $0xe0] sm:$0xff]  ;;  %v116_v33 = vld [vmem:[#allocation7 + $0xe8] sm:$0xff]  ;;  %v118_v34 = vld [vmem:[#allocation7 + $0xf8] sm:$0xff] }
  0x20   :  { %235 = vmatpush.msra.mxu3 %v130_v22  ;;  %212 = vmatpush.msra.mxu2 %v129_v23  ;;  %v117_v35 = vld [vmem:[#allocation7 + $0xf0] sm:$0xff]  ;;  %v111_v36 = vld [vmem:[#allocation7 + $0xc0] sm:$0xff]  ;;  %v112_v37 = vld [vmem:[#allocation7 + $0xc8] sm:$0xff] }
  0x21   :  { %167 = vmatpush.msra.mxu0 %v123_v24  ;;  %190 = vmatpush.msra.mxu1 %v124_v25  ;;  %v114_v38 = vld [vmem:[#allocation7 + $0xd8] sm:$0xff]  ;;  %v113_v39 = vld [vmem:[#allocation7 + $0xd0] sm:$0xff]  ;;  %v107_v40 = vld [vmem:[#allocation7 + $0xa0] sm:$0xff] }
  0x22   :  { %236 = vmatpush.msra.mxu3 %v126_v26  ;;  %213 = vmatpush.msra.mxu2 %v125_v27  ;;  %v108_v41 = vld [vmem:[#allocation7 + $0xa8] sm:$0xff]  ;;  %v110_v42 = vld [vmem:[#allocation7 + $0xb8] sm:$0xff]  ;;  %v109_v43 = vld [vmem:[#allocation7 + $0xb0] sm:$0xff] }
  0x23   :  { %168 = vmatpush.msra.mxu0 %v119_v28  ;;  %191 = vmatpush.msra.mxu1 %v120_v29  ;;  %v103_v44 = vld [vmem:[#allocation7 + $0x80] sm:$0xff]  ;;  %v104_v45 = vld [vmem:[#allocation7 + $0x88] sm:$0xff]  ;;  %v106_v46 = vld [vmem:[#allocation7 + $0x98] sm:$0xff] }
  0x24   :  { %237 = vmatpush.msra.mxu3 %v122_v30  ;;  %214 = vmatpush.msra.mxu2 %v121_v31  ;;  %v105_v47 = vld [vmem:[#allocation7 + $0x90] sm:$0xff]  ;;  %v99_v48 = vld [vmem:[#allocation7 + $0x60] sm:$0xff]  ;;  %v100_v49 = vld [vmem:[#allocation7 + $0x68] sm:$0xff] }
  0x25   :  { %169 = vmatpush.msra.mxu0 %v115_v32  ;;  %192 = vmatpush.msra.mxu1 %v116_v33  ;;  %v102_v50 = vld [vmem:[#allocation7 + $0x78] sm:$0xff]  ;;  %v101_v51 = vld [vmem:[#allocation7 + $0x70] sm:$0xff]  ;;  %v95_v52 = vld [vmem:[#allocation7 + $0x40] sm:$0xff] }
  0x26   :  { %238 = vmatpush.msra.mxu3 %v118_v34  ;;  %215 = vmatpush.msra.mxu2 %v117_v35  ;;  %v96_v53 = vld [vmem:[#allocation7 + $0x48] sm:$0xff]  ;;  %v98_v54 = vld [vmem:[#allocation7 + $0x58] sm:$0xff]  ;;  %v97_v55 = vld [vmem:[#allocation7 + $0x50] sm:$0xff] }
  0x27   :  { %170 = vmatpush.msra.mxu0 %v111_v36  ;;  %193 = vmatpush.msra.mxu1 %v112_v37  ;;  %v91_v56 = vld [vmem:[#allocation7 + $0x20] sm:$0xff]  ;;  %v92_v57 = vld [vmem:[#allocation7 + $0x28] sm:$0xff]  ;;  %v94_v58 = vld [vmem:[#allocation7 + $0x38] sm:$0xff] }
  0x28   :  { %239 = vmatpush.msra.mxu3 %v114_v38  ;;  %216 = vmatpush.msra.mxu2 %v113_v39  ;;  %v93_v59 = vld [vmem:[#allocation7 + $0x30] sm:$0xff]  ;;  %v87_v60 = vld [vmem:[#allocation7] sm:$0xff]  ;;  %v88_v61 = vld [vmem:[#allocation7 + $0x8] sm:$0xff] }
  0x29   :  { %171 = vmatpush.msra.mxu0 %v107_v40  ;;  %194 = vmatpush.msra.mxu1 %v108_v41  ;;  %v90_v62 = vld [vmem:[#allocation7 + $0x18] sm:$0xff]  ;;  %v89_v63 = vld [vmem:[#allocation7 + $0x10] sm:$0xff]  ;;  %v2432_v1 = vld [vmem:[#allocation9 + $0x1e0] sm:$0xff] }
  0x2a   :  { %240 = vmatpush.msra.mxu3 %v110_v42  ;;  %217 = vmatpush.msra.mxu2 %v109_v43  ;;  %v2434_v2 = vld [vmem:[#allocation9 + $0x1e8] sm:$0xff]  ;;  %v2436_v3 = vld [vmem:[#allocation9 + $0x1f8] sm:$0xff]  ;;  %v2438_v4 = vld [vmem:[#allocation9 + $0x1f0] sm:$0xff] }
  0x2b   :  { %172 = vmatpush.msra.mxu0 %v103_v44  ;;  %195 = vmatpush.msra.mxu1 %v104_v45  ;;  %v2440_v5 = vld [vmem:[#allocation9 + $0x1c0] sm:$0xff]  ;;  %v2442_v6 = vld [vmem:[#allocation9 + $0x1c8] sm:$0xff]  ;;  %v2446_v7 = vld [vmem:[#allocation9 + $0x1d8] sm:$0xff] }
  0x2c   :  { %241 = vmatpush.msra.mxu3 %v106_v46  ;;  %218 = vmatpush.msra.mxu2 %v105_v47  ;;  %v2448_v8 = vld [vmem:[#allocation9 + $0x1d0] sm:$0xff]  ;;  %v2452_v9 = vld [vmem:[#allocation9 + $0x1a0] sm:$0xff]  ;;  %v2454_v10 = vld [vmem:[#allocation9 + $0x1a8] sm:$0xff] }
  0x2d   :  { %173 = vmatpush.msra.mxu0 %v99_v48  ;;  %196 = vmatpush.msra.mxu1 %v100_v49  ;;  %v2458_v11 = vld [vmem:[#allocation9 + $0x1b8] sm:$0xff]  ;;  %v2460_v12 = vld [vmem:[#allocation9 + $0x1b0] sm:$0xff]  ;;  %v2464_v13 = vld [vmem:[#allocation9 + $0x180] sm:$0xff] }
  0x2e   :  { %242 = vmatpush.msra.mxu3 %v102_v50  ;;  %219 = vmatpush.msra.mxu2 %v101_v51  ;;  %v2466_v14 = vld [vmem:[#allocation9 + $0x188] sm:$0xff]  ;;  %v2470_v15 = vld [vmem:[#allocation9 + $0x198] sm:$0xff]  ;;  %v2472_v16 = vld [vmem:[#allocation9 + $0x190] sm:$0xff] }
  0x2f   :  { %174 = vmatpush.msra.mxu0 %v95_v52  ;;  %197 = vmatpush.msra.mxu1 %v96_v53  ;;  %v2476_v17 = vld [vmem:[#allocation9 + $0x160] sm:$0xff]  ;;  %v2478_v18 = vld [vmem:[#allocation9 + $0x168] sm:$0xff]  ;;  %v2482_v19 = vld [vmem:[#allocation9 + $0x178] sm:$0xff] }
  0x30   :  { %243 = vmatpush.msra.mxu3 %v98_v54  ;;  %220 = vmatpush.msra.mxu2 %v97_v55  ;;  %v2484_v20 = vld [vmem:[#allocation9 + $0x170] sm:$0xff]  ;;  %v2488_v21 = vld [vmem:[#allocation9 + $0x140] sm:$0xff]  ;;  %v2490_v22 = vld [vmem:[#allocation9 + $0x148] sm:$0xff] }
  0x31   :  { %175 = vmatpush.msra.mxu0 %v91_v56  ;;  %198 = vmatpush.msra.mxu1 %v92_v57  ;;  %v2494_v23 = vld [vmem:[#allocation9 + $0x158] sm:$0xff]  ;;  %v2496_v24 = vld [vmem:[#allocation9 + $0x150] sm:$0xff]  ;;  %v2500_v25 = vld [vmem:[#allocation9 + $0x120] sm:$0xff] }
  0x32   :  { %244 = vmatpush.msra.mxu3 %v94_v58  ;;  %221 = vmatpush.msra.mxu2 %v93_v59  ;;  %v2502_v26 = vld [vmem:[#allocation9 + $0x128] sm:$0xff]  ;;  %v2506_v27 = vld [vmem:[#allocation9 + $0x138] sm:$0xff]  ;;  %v2508_v28 = vld [vmem:[#allocation9 + $0x130] sm:$0xff] }
  0x33   :  { %176 = vmatpush.msra.mxu0 %v87_v60  ;;  %199 = vmatpush.msra.mxu1 %v88_v61  ;;  %v2512_v29 = vld [vmem:[#allocation9 + $0x100] sm:$0xff]  ;;  %v2514_v30 = vld [vmem:[#allocation9 + $0x108] sm:$0xff]  ;;  %v2518_v31 = vld [vmem:[#allocation9 + $0x118] sm:$0xff] }
  0x34   :  { %245 = vmatpush.msra.mxu3 %v90_v62  ;;  %222 = vmatpush.msra.mxu2 %v89_v63  ;;  %v85_v32 = vld [vmem:[#allocation4] sm:$0xff]  ;;  %v2526_v34 = vld [vmem:[#allocation9 + $0xe0] sm:$0xff]  ;;  %v2529_v35 = vld [vmem:[#allocation9 + $0xe8] sm:$0xff] }
  0x35   :  { %318 = vmatpush.msrb.mxu0 %v2432_v1  ;;  %338 = vmatpush.msrb.mxu1 %v2434_v2  ;;  %v2524_v33 = vld [vmem:[#allocation9 + $0x110] sm:$0xff]  ;;  %v2531_v36 = vld [vmem:[#allocation9 + $0xf8] sm:$0xff]  ;;  %v2537_v38 = vld [vmem:[#allocation9 + $0xc0] sm:$0xff] }
  0x36   :  { %378 = vmatpush.msrb.mxu3 %v2436_v3  ;;  %358 = vmatpush.msrb.mxu2 %v2438_v4  ;;  %v2533_v37 = vld [vmem:[#allocation9 + $0xf0] sm:$0xff]  ;;  %v2539_v39 = vld [vmem:[#allocation9 + $0xc8] sm:$0xff]  ;;  %v2542_v40 = vld [vmem:[#allocation9 + $0xd8] sm:$0xff] }
  0x37   :  { %319 = vmatpush.msrb.mxu0 %v2440_v5  ;;  %339 = vmatpush.msrb.mxu1 %v2442_v6  ;;  %v2544_v41 = vld [vmem:[#allocation9 + $0xd0] sm:$0xff]  ;;  %v2548_v42 = vld [vmem:[#allocation9 + $0xa0] sm:$0xff]  ;;  %v2550_v43 = vld [vmem:[#allocation9 + $0xa8] sm:$0xff] }
  0x38   :  { %379 = vmatpush.msrb.mxu3 %v2446_v7  ;;  %359 = vmatpush.msrb.mxu2 %v2448_v8  ;;  %v2554_v44 = vld [vmem:[#allocation9 + $0xb8] sm:$0xff]  ;;  %v2556_v45 = vld [vmem:[#allocation9 + $0xb0] sm:$0xff]  ;;  %v2560_v46 = vld [vmem:[#allocation9 + $0x80] sm:$0xff] }
  0x39   :  { %320 = vmatpush.msrb.mxu0 %v2452_v9  ;;  %340 = vmatpush.msrb.mxu1 %v2454_v10  ;;  %v2562_v47 = vld [vmem:[#allocation9 + $0x88] sm:$0xff]  ;;  %v2566_v48 = vld [vmem:[#allocation9 + $0x98] sm:$0xff]  ;;  %v2572_v50 = vld [vmem:[#allocation9 + $0x90] sm:$0xff] }
  0x3a   :  { %380 = vmatpush.msrb.mxu3 %v2458_v11  ;;  %360 = vmatpush.msrb.mxu2 %v2460_v12  ;;  %v86_v49 = vld [vmem:[#allocation4 + $0x8] sm:$0xff]  ;;  %v2574_v51 = vld [vmem:[#allocation9 + $0x60] sm:$0xff]  ;;  %v2577_v52 = vld [vmem:[#allocation9 + $0x68] sm:$0xff] }
  0x3b   :  { %321 = vmatpush.msrb.mxu0 %v2464_v13  ;;  %341 = vmatpush.msrb.mxu1 %v2466_v14  ;;  %v2579_v53 = vld [vmem:[#allocation9 + $0x78] sm:$0xff]  ;;  %v2581_v54 = vld [vmem:[#allocation9 + $0x70] sm:$0xff]  ;;  %v2585_v55 = vld [vmem:[#allocation9 + $0x40] sm:$0xff] }
  0x3c   :  { %381 = vmatpush.msrb.mxu3 %v2470_v15  ;;  %361 = vmatpush.msrb.mxu2 %v2472_v16  ;;  %v2587_v56 = vld [vmem:[#allocation9 + $0x48] sm:$0xff]  ;;  %v2590_v57 = vld [vmem:[#allocation9 + $0x58] sm:$0xff]  ;;  %v2592_v58 = vld [vmem:[#allocation9 + $0x50] sm:$0xff] }
  0x3d   :  { %322 = vmatpush.msrb.mxu0 %v2476_v17  ;;  %342 = vmatpush.msrb.mxu1 %v2478_v18  ;;  %3510 = vst [vmem:[#allocation17_spill] sm:$0xff] %v2587_v56  ;;  %v2596_v59 = vld [vmem:[#allocation9 + $0x20] sm:$0xff]  ;;  %v2598_v60 = vld [vmem:[#allocation9 + $0x28] sm:$0xff]  ;;  %v2602_v61 = vld [vmem:[#allocation9 + $0x38] sm:$0xff] }
  0x3e   :  { %382 = vmatpush.msrb.mxu3 %v2482_v19  ;;  %362 = vmatpush.msrb.mxu2 %v2484_v20  ;;  %v2604_v62 = vld [vmem:[#allocation9 + $0x30] sm:$0xff]  ;;  %v2608_v63 = vld [vmem:[#allocation9] sm:$0xff]  ;;  %v2610_v0 = vld [vmem:[#allocation9 + $0x8] sm:$0xff] }
  0x3f   :  { %323 = vmatpush.msrb.mxu0 %v2488_v21  ;;  %343 = vmatpush.msrb.mxu1 %v2490_v22 }
  0x40   :  { %383 = vmatpush.msrb.mxu3 %v2494_v23  ;;  %363 = vmatpush.msrb.mxu2 %v2496_v24 }
  0x41   :  { %324 = vmatpush.msrb.mxu0 %v2500_v25  ;;  %344 = vmatpush.msrb.mxu1 %v2502_v26 }
  0x42   :  { %384 = vmatpush.msrb.mxu3 %v2506_v27  ;;  %364 = vmatpush.msrb.mxu2 %v2508_v28 }
  0x43   :  { %325 = vmatpush.msrb.mxu0 %v2512_v29  ;;  %345 = vmatpush.msrb.mxu1 %v2514_v30 }
  0x44   :  { %385 = vmatpush.msrb.mxu3 %v2518_v31  ;;  %177 = vmatmul.f32.vlgmr.msra.gmra.mxu0 %v85_v32 }
  0x45   :  { %200 = vmatmul.f32.vlgmr.msra.gmra.mxu1 %v85_v32  ;;  %246 = vmatmul.f32.vlgmr.msra.gmra.mxu3 %v85_v32 }
  0x46   :  { %365 = vmatpush.msrb.mxu2 %v2524_v33  ;;  %326 = vmatpush.msrb.mxu0 %v2526_v34 }
  0x47   :  { %223 = vmatmul.f32.vlgmr.msra.gmra.mxu2 %v85_v32  ;;  %346 = vmatpush.msrb.mxu1 %v2529_v35  ;;  %v2614_v32 = vld [vmem:[#allocation9 + $0x18] sm:$0xff] }
  0x48   :  { %386 = vmatpush.msrb.mxu3 %v2531_v36  ;;  %366 = vmatpush.msrb.mxu2 %v2533_v37 }
  0x49   :  { %327 = vmatpush.msrb.mxu0 %v2537_v38  ;;  %347 = vmatpush.msrb.mxu1 %v2539_v39 }
  0x4a   :  { %387 = vmatpush.msrb.mxu3 %v2542_v40  ;;  %367 = vmatpush.msrb.mxu2 %v2544_v41 }
  0x4b   :  { %328 = vmatpush.msrb.mxu0 %v2548_v42  ;;  %348 = vmatpush.msrb.mxu1 %v2550_v43 }
  0x4c   :  { %388 = vmatpush.msrb.mxu3 %v2554_v44  ;;  %368 = vmatpush.msrb.mxu2 %v2556_v45 }
  0x4d   :  { %329 = vmatpush.msrb.mxu0 %v2560_v46  ;;  %349 = vmatpush.msrb.mxu1 %v2562_v47 }
  0x4e   :  { %389 = vmatpush.msrb.mxu3 %v2566_v48  ;;  %180 = vmatmul.f32.gmra.mxu0 %v86_v49 }
  0x4f   :  { %203 = vmatmul.f32.gmra.mxu1 %v86_v49  ;;  %249 = vmatmul.f32.gmra.mxu3 %v86_v49 }
  0x50   :  { %369 = vmatpush.msrb.mxu2 %v2572_v50  ;;  %330 = vmatpush.msrb.mxu0 %v2574_v51 }
  0x51   :  { %226 = vmatmul.f32.gmra.mxu2 %v86_v49  ;;  %350 = vmatpush.msrb.mxu1 %v2577_v52  ;;  %v253_v49 = vld [vmem:[#allocation2] sm:$0x3] }
  0x52   :  { %390 = vmatpush.msrb.mxu3 %v2579_v53  ;;  %370 = vmatpush.msrb.mxu2 %v2581_v54 }
  0x53   :  { %331 = vmatpush.msrb.mxu0 %v2585_v55  ;;  %351 = vmatpush.msrb.mxu1 %v2587_v56  ;;  %v2618_v56 = vld [vmem:[#allocation9 + $0x10] sm:$0xff] }
  0x54   :  { %391 = vmatpush.msrb.mxu3 %v2590_v57  ;;  %371 = vmatpush.msrb.mxu2 %v2592_v58 }
  0x55   :  { %332 = vmatpush.msrb.mxu0 %v2596_v59  ;;  %352 = vmatpush.msrb.mxu1 %v2598_v60 }
  0x56   :  { %392 = vmatpush.msrb.mxu3 %v2602_v61  ;;  %372 = vmatpush.msrb.mxu2 %v2604_v62 }
  0x57   :  { %333 = vmatpush.msrb.mxu0 %v2608_v63  ;;  %353 = vmatpush.msrb.mxu1 %v2610_v0 }
  0x58   :  { %393 = vmatpush.msrb.mxu3 %v2614_v32  ;;  %334 = vmatmul.f32.vlgmr.msrb.gmra.mxu0 %v253_v49 }
  0x59   :  { %354 = vmatmul.f32.vlgmr.msrb.gmra.mxu1 %v253_v49  ;;  %373 = vmatpush.msrb.mxu2 %v2618_v56 }
  0x5a   :  { %394 = vmatmul.f32.vlgmr.msrb.gmra.mxu3 %v253_v49  ;;  %374 = vmatmul.f32.vlgmr.msrb.gmra.mxu2 %v253_v49  ;;  %v3511_v49 = vld [vmem:[#allocation17_spill] sm:$0xff] }
  0x5b   :  { %534 = vmatpush.msra.mxu0 %v2432_v1  ;;  %554 = vmatpush.msra.mxu1 %v2434_v2 }
  0x5c   :  { %574 = vmatpush.msra.mxu2 %v2438_v4  ;;  %594 = vmatpush.msra.mxu3 %v2436_v3 }
  0x5d   :  { %535 = vmatpush.msra.mxu0 %v2440_v5  ;;  %555 = vmatpush.msra.mxu1 %v2442_v6 }
  0x5e   :  { %575 = vmatpush.msra.mxu2 %v2448_v8  ;;  %595 = vmatpush.msra.mxu3 %v2446_v7 }
  0x5f   :  { %536 = vmatpush.msra.mxu0 %v2452_v9  ;;  %556 = vmatpush.msra.mxu1 %v2454_v10 }
  0x60   :  { %576 = vmatpush.msra.mxu2 %v2460_v12  ;;  %596 = vmatpush.msra.mxu3 %v2458_v11 }
  0x61   :  { %537 = vmatpush.msra.mxu0 %v2464_v13  ;;  %557 = vmatpush.msra.mxu1 %v2466_v14 }
  0x62   :  { %577 = vmatpush.msra.mxu2 %v2472_v16  ;;  %597 = vmatpush.msra.mxu3 %v2470_v15 }
  0x63   :  { %538 = vmatpush.msra.mxu0 %v2476_v17  ;;  %558 = vmatpush.msra.mxu1 %v2478_v18 }
  0x64   :  { %578 = vmatpush.msra.mxu2 %v2484_v20  ;;  %598 = vmatpush.msra.mxu3 %v2482_v19 }
  0x65   :  { %539 = vmatpush.msra.mxu0 %v2488_v21  ;;  %559 = vmatpush.msra.mxu1 %v2490_v22 }
  0x66   :  { %579 = vmatpush.msra.mxu2 %v2496_v24  ;;  %599 = vmatpush.msra.mxu3 %v2494_v23 }
  0x67   :  { %540 = vmatpush.msra.mxu0 %v2500_v25  ;;  %560 = vmatpush.msra.mxu1 %v2502_v26 }
  0x68   :  { %580 = vmatpush.msra.mxu2 %v2508_v28  ;;  %600 = vmatpush.msra.mxu3 %v2506_v27 }
  0x69   :  { %541 = vmatpush.msra.mxu0 %v2512_v29  ;;  %561 = vmatpush.msra.mxu1 %v2514_v30 }
  0x6a   :  { %581 = vmatpush.msra.mxu2 %v2524_v33  ;;  %601 = vmatpush.msra.mxu3 %v2518_v31 }
  0x6b   :  { %542 = vmatpush.msra.mxu0 %v2526_v34  ;;  %562 = vmatpush.msra.mxu1 %v2529_v35 }
  0x6c   :  { %582 = vmatpush.msra.mxu2 %v2533_v37  ;;  %602 = vmatpush.msra.mxu3 %v2531_v36 }
  0x6d   :  { %543 = vmatpush.msra.mxu0 %v2537_v38  ;;  %563 = vmatpush.msra.mxu1 %v2539_v39 }
  0x6e   :  { %583 = vmatpush.msra.mxu2 %v2544_v41  ;;  %603 = vmatpush.msra.mxu3 %v2542_v40 }
  0x6f   :  { %544 = vmatpush.msra.mxu0 %v2548_v42  ;;  %564 = vmatpush.msra.mxu1 %v2550_v43 }
  0x70   :  { %584 = vmatpush.msra.mxu2 %v2556_v45  ;;  %604 = vmatpush.msra.mxu3 %v2554_v44 }
  0x71   :  { %545 = vmatpush.msra.mxu0 %v2560_v46  ;;  %565 = vmatpush.msra.mxu1 %v2562_v47 }
  0x72   :  { %585 = vmatpush.msra.mxu2 %v2572_v50  ;;  %605 = vmatpush.msra.mxu3 %v2566_v48 }
  0x73   :  { %546 = vmatpush.msra.mxu0 %v2574_v51  ;;  %566 = vmatpush.msra.mxu1 %v2577_v52 }
  0x74   :  { %586 = vmatpush.msra.mxu2 %v2581_v54  ;;  %606 = vmatpush.msra.mxu3 %v2579_v53 }
  0x75   :  { %547 = vmatpush.msra.mxu0 %v2585_v55  ;;  %567 = vmatpush.msra.mxu1 %v3511_v49 }
  0x76   :  { %587 = vmatpush.msra.mxu2 %v2592_v58  ;;  %607 = vmatpush.msra.mxu3 %v2590_v57 }
  0x77   :  { %548 = vmatpush.msra.mxu0 %v2596_v59  ;;  %568 = vmatpush.msra.mxu1 %v2598_v60 }
  0x78   :  { %588 = vmatpush.msra.mxu2 %v2604_v62  ;;  %608 = vmatpush.msra.mxu3 %v2602_v61 }
  0x79   :  { %549 = vmatpush.msra.mxu0 %v2608_v63  ;;  %569 = vmatpush.msra.mxu1 %v2610_v0 }
  0x7a   :  { %589 = vmatpush.msra.mxu2 %v2618_v56  ;;  %609 = vmatpush.msra.mxu3 %v2614_v32 }
  0x7b   :  { %765 = vmatpush.msrb.mxu0 %v2432_v1  ;;  %785 = vmatpush.msrb.mxu1 %v2434_v2 }
  0x7c   :  { %805 = vmatpush.msrb.mxu2 %v2438_v4  ;;  %825 = vmatpush.msrb.mxu3 %v2436_v3  ;;  %v151_v3 = vld [vmem:[#allocation10] sm:$0xf] }
  0x7d   :  { %766 = vmatpush.msrb.mxu0 %v2440_v5  ;;  %786 = vmatpush.msrb.mxu1 %v2442_v6  ;;  %v153_v5 = vperm.slane %v151_v3, 0 }
  0x7e   :  { %806 = vmatpush.msrb.mxu2 %v2448_v8  ;;  %826 = vmatpush.msrb.mxu3 %v2446_v7  ;;  %v154_v7 = vperm.slane %v151_v3, 1 }
  0x7f   :  { %767 = vmatpush.msrb.mxu0 %v2452_v9  ;;  %787 = vmatpush.msrb.mxu1 %v2454_v10 }
  0x80   :  { %807 = vmatpush.msrb.mxu2 %v2460_v12  ;;  %827 = vmatpush.msrb.mxu3 %v2458_v11  ;;  %v156_v12 = vperm.slane %v151_v3, 3 }
  0x81   :  { %768 = vmatpush.msrb.mxu0 %v2464_v13  ;;  %788 = vmatpush.msrb.mxu1 %v2466_v14  ;;  %v155_v14 = vperm.slane %v151_v3, 2 }
  0x82   :  { %808 = vmatpush.msrb.mxu2 %v2472_v16  ;;  %828 = vmatpush.msrb.mxu3 %v2470_v15 }
  0x83   :  { %769 = vmatpush.msrb.mxu0 %v2476_v17  ;;  %789 = vmatpush.msrb.mxu1 %v2478_v18 }
  0x84   :  { %809 = vmatpush.msrb.mxu2 %v2484_v20  ;;  %829 = vmatpush.msrb.mxu3 %v2482_v19 }
  0x85   :  { %770 = vmatpush.msrb.mxu0 %v2488_v21  ;;  %790 = vmatpush.msrb.mxu1 %v2490_v22 }
  0x86   :  { %810 = vmatpush.msrb.mxu2 %v2496_v24  ;;  %830 = vmatpush.msrb.mxu3 %v2494_v23 }
  0x87   :  { %771 = vmatpush.msrb.mxu0 %v2500_v25  ;;  %791 = vmatpush.msrb.mxu1 %v2502_v26 }
  0x88   :  { %811 = vmatpush.msrb.mxu2 %v2508_v28  ;;  %831 = vmatpush.msrb.mxu3 %v2506_v27 }
  0x89   :  { %772 = vmatpush.msrb.mxu0 %v2512_v29  ;;  %792 = vmatpush.msrb.mxu1 %v2514_v30 }
  0x8a   :  { %812 = vmatpush.msrb.mxu2 %v2524_v33  ;;  %832 = vmatpush.msrb.mxu3 %v2518_v31 }
  0x8b   :  { %773 = vmatpush.msrb.mxu0 %v2526_v34  ;;  %793 = vmatpush.msrb.mxu1 %v2529_v35 }
  0x8c   :  { %813 = vmatpush.msrb.mxu2 %v2533_v37  ;;  %833 = vmatpush.msrb.mxu3 %v2531_v36 }
  0x8d   :  { %774 = vmatpush.msrb.mxu0 %v2537_v38  ;;  %794 = vmatpush.msrb.mxu1 %v2539_v39 }
  0x8e   :  { %814 = vmatpush.msrb.mxu2 %v2544_v41  ;;  %834 = vmatpush.msrb.mxu3 %v2542_v40 }
  0x8f   :  { %775 = vmatpush.msrb.mxu0 %v2548_v42  ;;  %795 = vmatpush.msrb.mxu1 %v2550_v43 }
  0x90   :  { %815 = vmatpush.msrb.mxu2 %v2556_v45  ;;  %835 = vmatpush.msrb.mxu3 %v2554_v44 }
  0x91   :  { %776 = vmatpush.msrb.mxu0 %v2560_v46  ;;  %796 = vmatpush.msrb.mxu1 %v2562_v47 }
  0x92   :  { %816 = vmatpush.msrb.mxu2 %v2572_v50  ;;  %836 = vmatpush.msrb.mxu3 %v2566_v48 }
  0x93   :  { %777 = vmatpush.msrb.mxu0 %v2574_v51  ;;  %797 = vmatpush.msrb.mxu1 %v2577_v52 }
  0x94   :  { %817 = vmatpush.msrb.mxu2 %v2581_v54  ;;  %837 = vmatpush.msrb.mxu3 %v2579_v53 }
  0x95   :  { %778 = vmatpush.msrb.mxu0 %v2585_v55  ;;  %798 = vmatpush.msrb.mxu1 %v3511_v49 }
  0x96   :  { %818 = vmatpush.msrb.mxu2 %v2592_v58  ;;  %838 = vmatpush.msrb.mxu3 %v2590_v57 }
  0x97   :  { %779 = vmatpush.msrb.mxu0 %v2596_v59  ;;  %799 = vmatpush.msrb.mxu1 %v2598_v60  ;;  %v460_v60 = vld [vmem:[#allocation3] sm:$0x3] }
  0x98   :  { %819 = vmatpush.msrb.mxu2 %v2604_v62  ;;  %839 = vmatpush.msrb.mxu3 %v2602_v61 }
  0x99   :  { %780 = vmatpush.msrb.mxu0 %v2608_v63  ;;  %800 = vmatpush.msrb.mxu1 %v2610_v0 }
  0x9a   :  { %820 = vmatpush.msrb.mxu2 %v2618_v56  ;;  %840 = vmatpush.msrb.mxu3 %v2614_v32 }
  0xc1   :  { %v178_v1 = vpop.f32.mrf.mxu0 }
  0xc2   :  { %v201_v2 = vpop.f32.mrf.mxu1  ;;  %v2758_v16 = vadd.f32 %v178_v1, %v153_v5 }
  0xc3   :  { %v2760_v18 = vadd.f32 %v201_v2, %v154_v7 }
  0xc4   :  { %3515 = vst [vmem:[#allocation20_spill] sm:$0xff] %v2758_v16 }
  0xc5   :  { %3516 = vst [vmem:[#allocation21_spill] sm:$0xff] %v2760_v18 }
  0xc8   :  { %v247_v4 = vpop.f32.mrf.mxu3 }
  0xc9   :  { %v2766_v26 = vadd.f32 %v247_v4, %v156_v12 }
  0xca   :  { %v224_v6 = vpop.f32.mrf.mxu2 }
  0xcb   :  { %v181_v8 = vpop.f32.mrf.mxu0  ;;  %3518 = vst [vmem:[#allocation23_spill] sm:$0xff] %v2766_v26  ;;  %v2769_v35 = vadd.f32 %v224_v6, %v155_v14 }
  0xcc   :  { %v2752_v9 = vadd.f32 %v181_v8, %v153_v5  ;;  %v204_v10 = vpop.f32.mrf.mxu1 }
  0xcd   :  { %v2754_v11 = vadd.f32 %v204_v10, %v154_v7  ;;  %3519 = vst [vmem:[#allocation24_spill] sm:$0xff] %v2769_v35 }
  0xce   :  { %3512 = vst [vmem:[#allocation17_spill] sm:$0xff] %v2752_v9  ;;  %v2947_v9 = vld [vmem:[#allocation9 + $0x58] sm:$0xff] }
  0xcf   :  { %3513 = vst [vmem:[#allocation18_spill] sm:$0xff] %v2754_v11  ;;  %v2945_v11 = vld [vmem:[#allocation9 + $0x50] sm:$0xff] }
  0xd0   :  { %3535 = vst [vmem:[#allocation40_spill] sm:$0xff] %v2945_v11 }
  0xd1   :  { %3536 = vst [vmem:[#allocation41_spill] sm:$0xff] %v2947_v9 }
  0xd2   :  { %v250_v13 = vpop.f32.mrf.mxu3 }
  0xd3   :  { %v2756_v15 = vadd.f32 %v250_v13, %v156_v12 }
  0xd4   :  { %v227_v17 = vpop.f32.mrf.mxu2 }
  0xd5   :  { %3514 = vst [vmem:[#allocation19_spill] sm:$0xff] %v2756_v15  ;;  %v2762_v19 = vadd.f32 %v227_v17, %v155_v14  ;;  %v335_v20 = vpop.f32.mrf.mxu0 }
  0xd6   :  { %v398_v21 = vadd.f32 %v335_v20, %v2758_v16  ;;  %v355_v22 = vpop.f32.mrf.mxu1 }
  0xd7   :  { %3517 = vst [vmem:[#allocation22_spill] sm:$0xff] %v2762_v19  ;;  %v399_v23 = vadd.f32 %v355_v22, %v2760_v18  ;;  %v2941_v19 = vld [vmem:[#allocation9 + $0x48] sm:$0xff] }
  0xd8   :  { %v2092_v24 = vmul.f32 -1.442695, %v398_v21  ;;  %3534 = vst [vmem:[#allocation39_spill] sm:$0xff] %v2941_v19 }
  0xd9   :  { %v2093_v25 = vmul.f32 -1.442695, %v399_v23 }
  0xda   :  { %2126 = vpow2.f32 %v2092_v24 }
  0xdb   :  { %2128 = vpow2.f32 %v2093_v25 }
  0xdd   :  { %v395_v27 = vpop.f32.mrf.mxu3  ;;  %v375_v36 = vpop.f32.mrf.mxu2 }
  0xde   :  { %v401_v28 = vadd.f32 %v395_v27, %v2766_v26  ;;  %v400_v40 = vadd.f32 %v375_v36, %v2769_v35 }
  0xe0   :  { %v2127_v29 = vpop.eup %2126  ;;  %v2094_v30 = vmul.f32 -1.442695, %v401_v28 }
  0xe1   :  { %v2129_v31 = vpop.eup %2128  ;;  %v405_v33 = vadd.f32 1.0, %v2127_v29 }
  0xe2   :  { %v424_v34 = vadd.f32 1.0, %v2129_v31  ;;  %2130 = vpow2.f32 %v2094_v30 }
  0xe3   :  { %2132 = vrcp.f32 %v405_v33  ;;  %v417_v46 = vand.u32 2147483648, %v405_v33  ;;  %v415_v50 = vand.u32 2147483647, %v405_v33  ;;  %vm411_vm2 = vweird.f32 %v405_v33 }
  0xe4   :  { %2134 = vrcp.f32 %v424_v34  ;;  %v436_v47 = vand.u32 2147483648, %v424_v34  ;;  %v434_v52 = vand.u32 2147483647, %v424_v34  ;;  %vm430_vm3 = vweird.f32 %v424_v34 }
  0xe5   :  { %v418_v55 = vor.u32 1.1754944e-38, %v417_v46  ;;  %vm416_vm6 = vcmp.eq.f32.partialorder %v415_v50, 8.507059e+37 }
  0xe6   :  { %v437_v57 = vor.u32 1.1754944e-38, %v436_v47  ;;  %vm435_vm7 = vcmp.eq.f32.partialorder %v434_v52, 8.507059e+37 }
  0xe8   :  { %v2131_v37 = vpop.eup %2130 }
  0xe9   :  { %v2133_v38 = vpop.eup %2132  ;;  %v444_v39 = vadd.f32 1.0, %v2131_v37 }
  0xea   :  { %v2135_v41 = vpop.eup %2134  ;;  %v407_v42 = vmul.f32 %v2133_v38, %v405_v33  ;;  %vm412_vm0 = vweird.f32 %v2133_v38 }
  0xeb   :  { %v426_v43 = vmul.f32 %v2135_v41, %v424_v34  ;;  %2136 = vrcp.f32 %v444_v39  ;;  %vm431_vm1 = vweird.f32 %v2135_v41  ;;  %vm413_vm4 = vmor %vm411_vm2, %vm412_vm0  ;;  %v456_v5 = vand.u32 2147483648, %v444_v39 }
  0xec   :  { %v408_v44 = vsub.f32 1.0, %v407_v42  ;;  %2138 = vtanh.f32 %v400_v40  ;;  %vm432_vm5 = vmor %vm430_vm3, %vm431_vm1  ;;  %vm450_vm9 = vweird.f32 %v444_v39  ;;  %v454_v6 = vand.u32 2147483647, %v444_v39 }
  0xed   :  { %v427_v45 = vsub.f32 1.0, %v426_v43  ;;  %v457_v8 = vor.u32 1.1754944e-38, %v456_v5 }
  0xee   :  { %v409_v48 = vmul.f32 %v2133_v38, %v408_v44  ;;  %vm455_vm11 = vcmp.eq.f32.partialorder %v454_v6, 8.507059e+37 }
  0xef   :  { %v428_v51 = vmul.f32 %v2135_v41, %v427_v45 }
  0xf0   :  { %v410_v53 = vadd.f32 %v2133_v38, %v409_v48 }
  0xf1   :  { %v2137_v54 = vpop.eup %2136  ;;  %v429_v56 = vadd.f32 %v2135_v41, %v428_v51 }
  0xf2   :  { %v446_v58 = vmul.f32 %v2137_v54, %v444_v39  ;;  %v414_v59 = vsel %vm413_vm4, %v2133_v38, %v410_v53  ;;  %v2139_v61 = vpop.eup %2138  ;;  %vm451_vm8 = vweird.f32 %v2137_v54 }
  0xf3   :  { %v419_v62 = vsel %vm416_vm6, %v418_v55, %v414_v59  ;;  %v433_v63 = vsel %vm432_vm5, %v2135_v41, %v429_v56  ;;  %vm452_vm10 = vmor %vm450_vm9, %vm451_vm8 }
  0xf4   :  { %v447_v0 = vsub.f32 1.0, %v446_v58  ;;  %v438_v32 = vsel %vm435_vm7, %v437_v57, %v433_v63  ;;  %v462_v49 = vmul.f32 %v2139_v61, %v419_v62 }
  0xf5   :  { %v461_v1 = vmul.f32 %v460_v60, %v438_v32 }
  0xf6   :  { %v448_v2 = vmul.f32 %v2137_v54, %v447_v0 }
  0xf7   :  { %v463_v3 = vadd.f32 %v462_v49, %v461_v1 }
  0xf8   :  { %v449_v4 = vadd.f32 %v2137_v54, %v448_v2 }
  0xf9   :  { %2140 = vtanh.f32 %v463_v3  ;;  %466 = vst [vmem:[#allocation3] sm:$0x3] %v463_v3 }
  0xfa   :  { %v453_v7 = vsel %vm452_vm10, %v2137_v54, %v449_v4 }
  0xfb   :  { %v458_v12 = vsel %vm455_vm11, %v457_v8, %v453_v7 }
  0xff   :  { %v2141_v10 = vpop.eup %2140 }
 0x100   :  { %v465_v13 = vmul.f32 %v2141_v10, %v458_v12  ;;  %v688_v56 = vld [vmem:[#allocation3] sm:$0x3] }
 0x101   :  { %v690_v0 = vrot.slane %v688_v56, 6  ;;  %v2846_v56 = vld [vmem:[#allocation9 + $0x158] sm:$0xff] }
 0x102   :  { %467 = vst [vmem:[#allocation2] sm:$0x3] %v465_v13 }
 0x103   :  { %468 = vst [vmem:[#allocation12] sm:$0x3] %v465_v13 }
 0x109   :  { %v469_v14 = vld [vmem:[#allocation2] sm:$0x3] }
 0x10a   :  { %550 = vmatmul.f32.vlgmr.msra.gmra.mxu0 %v469_v14  ;;  %570 = vmatmul.f32.vlgmr.msra.gmra.mxu1 %v469_v14 }
 0x10b   :  { %590 = vmatmul.f32.vlgmr.msra.gmra.mxu2 %v469_v14  ;;  %610 = vmatmul.f32.vlgmr.msra.gmra.mxu3 %v469_v14 }
 0x187   :  { %v551_v17 = vpop.f32.mrf.mxu0  ;;  %v571_v20 = vpop.f32.mrf.mxu1 }
 0x188   :  { %v618_v21 = vrot.slane %v551_v17, 6  ;;  %v619_v22 = vrot.slane %v571_v20, 6 }
 0x18a   :  { %v626_v23 = vadd.f32 %v618_v21, %v2758_v16  ;;  %v627_v24 = vadd.f32 %v619_v22, %v2760_v18 }
 0x18c   :  { %v2095_v25 = vmul.f32 -1.442695, %v626_v23  ;;  %v2096_v27 = vmul.f32 -1.442695, %v627_v24  ;;  %v2776_v23 = vld [vmem:[#allocation9 + $0x1e0] sm:$0xff]  ;;  %v2778_v24 = vld [vmem:[#allocation9 + $0x1e8] sm:$0xff] }
 0x18d   :  { %3520 = vst [vmem:[#allocation25_spill] sm:$0xff] %v2778_v24  ;;  %996 = vmatpush.msra.mxu0 %v2776_v23  ;;  %1016 = vmatpush.msra.mxu1 %v2778_v24 }
 0x18e   :  { %2142 = vpow2.f32 %v2095_v25  ;;  %v611_v28 = vpop.f32.mrf.mxu3  ;;  %v591_v38 = vpop.f32.mrf.mxu2  ;;  %v2780_v25 = vld [vmem:[#allocation9 + $0x1f0] sm:$0xff] }
 0x18f   :  { %2144 = vpow2.f32 %v2096_v27  ;;  %v621_v29 = vrot.slane %v611_v28, 6  ;;  %v620_v39 = vrot.slane %v591_v38, 6  ;;  %v2784_v27 = vld [vmem:[#allocation9 + $0x1f8] sm:$0xff]  ;;  %1036 = vmatpush.msra.mxu2 %v2780_v25  ;;  %v2788_v28 = vld [vmem:[#allocation9 + $0x1c0] sm:$0xff] }
 0x190   :  { %3521 = vst [vmem:[#allocation26_spill] sm:$0xff] %v2784_v27  ;;  %1056 = vmatpush.msra.mxu3 %v2784_v27  ;;  %997 = vmatpush.msra.mxu0 %v2788_v28  ;;  %v2812_v38 = vld [vmem:[#allocation9 + $0x180] sm:$0xff] }
 0x191   :  { %v629_v30 = vadd.f32 %v621_v29, %v2766_v26  ;;  %v628_v43 = vadd.f32 %v620_v39, %v2769_v35  ;;  %v2790_v29 = vld [vmem:[#allocation9 + $0x1c8] sm:$0xff] }
 0x192   :  { %1017 = vmatpush.msra.mxu1 %v2790_v29  ;;  %v2814_v39 = vld [vmem:[#allocation9 + $0x188] sm:$0xff] }
 0x193   :  { %v2097_v31 = vmul.f32 -1.442695, %v629_v30  ;;  %v2792_v30 = vld [vmem:[#allocation9 + $0x1d0] sm:$0xff] }
 0x194   :  { %v2143_v33 = vpop.eup %2142  ;;  %3522 = vst [vmem:[#allocation27_spill] sm:$0xff] %v2792_v30  ;;  %1037 = vmatpush.msra.mxu2 %v2792_v30 }
 0x195   :  { %v2145_v34 = vpop.eup %2144  ;;  %v633_v36 = vadd.f32 1.0, %v2143_v33  ;;  %2146 = vpow2.f32 %v2097_v31  ;;  %v2796_v31 = vld [vmem:[#allocation9 + $0x1d8] sm:$0xff]  ;;  %v2800_v33 = vld [vmem:[#allocation9 + $0x1a0] sm:$0xff] }
 0x196   :  { %v652_v37 = vadd.f32 1.0, %v2145_v34  ;;  %1057 = vmatpush.msra.mxu3 %v2796_v31  ;;  %3523 = vst [vmem:[#allocation28_spill] sm:$0xff] %v2800_v33  ;;  %v2802_v34 = vld [vmem:[#allocation9 + $0x1a8] sm:$0xff]  ;;  %998 = vmatpush.msra.mxu0 %v2800_v33 }
 0x197   :  { %2148 = vrcp.f32 %v633_v36  ;;  %v645_v50 = vand.u32 2147483648, %v633_v36  ;;  %v643_v53 = vand.u32 2147483647, %v633_v36  ;;  %vm639_vm14 = vweird.f32 %v633_v36  ;;  %3524 = vst [vmem:[#allocation29_spill] sm:$0xff] %v2802_v34  ;;  %1018 = vmatpush.msra.mxu1 %v2802_v34 }
 0x198   :  { %2150 = vrcp.f32 %v652_v37  ;;  %v664_v51 = vand.u32 2147483648, %v652_v37  ;;  %v662_v55 = vand.u32 2147483647, %v652_v37  ;;  %vm658_vm15 = vweird.f32 %v652_v37  ;;  %999 = vmatpush.msra.mxu0 %v2812_v38 }
 0x199   :  { %v646_v59 = vor.u32 1.1754944e-38, %v645_v50  ;;  %vm644_vm2 = vcmp.eq.f32.partialorder %v643_v53, 8.507059e+37  ;;  %1019 = vmatpush.msra.mxu1 %v2814_v39  ;;  %v2832_v50 = vld [vmem:[#allocation9 + $0x178] sm:$0xff]  ;;  %v2840_v53 = vld [vmem:[#allocation9 + $0x150] sm:$0xff] }
 0x19a   :  { %v665_v62 = vor.u32 1.1754944e-38, %v664_v51  ;;  %vm663_vm3 = vcmp.eq.f32.partialorder %v662_v55, 8.507059e+37  ;;  %v2836_v51 = vld [vmem:[#allocation9 + $0x140] sm:$0xff] }
 0x19b   :  { %v2147_v40 = vpop.eup %2146 }
 0x19c   :  { %v672_v41 = vadd.f32 1.0, %v2147_v40  ;;  %v2816_v40 = vld [vmem:[#allocation9 + $0x190] sm:$0xff] }
 0x19d   :  { %v2149_v42 = vpop.eup %2148 }
 0x19e   :  { %v2151_v44 = vpop.eup %2150  ;;  %v635_v45 = vmul.f32 %v2149_v42, %v633_v36  ;;  %2152 = vrcp.f32 %v672_v41  ;;  %vm640_vm12 = vweird.f32 %v2149_v42  ;;  %v684_v10 = vand.u32 2147483648, %v672_v41  ;;  %v2804_v36 = vld [vmem:[#allocation9 + $0x1b0] sm:$0xff] }
 0x19f   :  { %v654_v46 = vmul.f32 %v2151_v44, %v652_v37  ;;  %2154 = vtanh.f32 %v628_v43  ;;  %vm659_vm13 = vweird.f32 %v2151_v44  ;;  %vm641_vm0 = vmor %vm639_vm14, %vm640_vm12  ;;  %vm678_vm5 = vweird.f32 %v672_v41  ;;  %3525 = vst [vmem:[#allocation30_spill] sm:$0xff] %v2804_v36  ;;  %v2808_v37 = vld [vmem:[#allocation9 + $0x1b8] sm:$0xff]  ;;  %1038 = vmatpush.msra.mxu2 %v2804_v36 }
 0x1a0   :  { %v636_v47 = vsub.f32 1.0, %v635_v45  ;;  %vm660_vm1 = vmor %vm658_vm15, %vm659_vm13  ;;  %v682_v12 = vand.u32 2147483647, %v672_v41  ;;  %v685_v14 = vor.u32 1.1754944e-38, %v684_v10  ;;  %3526 = vst [vmem:[#allocation31_spill] sm:$0xff] %v2808_v37  ;;  %1058 = vmatpush.msra.mxu3 %v2808_v37  ;;  %v2826_v45 = vld [vmem:[#allocation9 + $0x168] sm:$0xff] }
 0x1a1   :  { %v655_v48 = vsub.f32 1.0, %v654_v46  ;;  %1039 = vmatpush.msra.mxu2 %v2816_v40  ;;  %v2828_v46 = vld [vmem:[#allocation9 + $0x170] sm:$0xff]  ;;  %1020 = vmatpush.msra.mxu1 %v2826_v45  ;;  %v2889_v10 = vld [vmem:[#allocation9 + $0xc8] sm:$0xff] }
 0x1a2   :  { %v637_v52 = vmul.f32 %v2149_v42, %v636_v47  ;;  %vm683_vm7 = vcmp.eq.f32.partialorder %v682_v12, 8.507059e+37  ;;  %v2891_v12 = vld [vmem:[#allocation9 + $0xd0] sm:$0xff] }
 0x1a3   :  { %v656_v54 = vmul.f32 %v2151_v44, %v655_v48  ;;  %1040 = vmatpush.msra.mxu2 %v2828_v46 }
 0x1a4   :  { %v2153_v57 = vpop.eup %2152  ;;  %v638_v58 = vadd.f32 %v2149_v42, %v637_v52  ;;  %v2838_v52 = vld [vmem:[#allocation9 + $0x148] sm:$0xff] }
 0x1a5   :  { %v657_v60 = vadd.f32 %v2151_v44, %v656_v54  ;;  %v674_v61 = vmul.f32 %v2153_v57, %v672_v41  ;;  %v2155_v32 = vpop.eup %2154  ;;  %vm679_vm4 = vweird.f32 %v2153_v57  ;;  %v2820_v41 = vld [vmem:[#allocation9 + $0x198] sm:$0xff]  ;;  %1021 = vmatpush.msra.mxu1 %v2838_v52  ;;  %1041 = vmatpush.msra.mxu2 %v2840_v53 }
 0x1a6   :  { %v642_v63 = vsel %vm641_vm0, %v2149_v42, %v638_v58  ;;  %vm680_vm6 = vmor %vm678_vm5, %vm679_vm4  ;;  %1059 = vmatpush.msra.mxu3 %v2820_v41  ;;  %v2852_v58 = vld [vmem:[#allocation9 + $0x128] sm:$0xff] }
 0x1a7   :  { %v647_v49 = vsel %vm644_vm2, %v646_v59, %v642_v63  ;;  %v661_v1 = vsel %vm660_vm1, %v2151_v44, %v657_v60  ;;  %v675_v2 = vsub.f32 1.0, %v674_v61  ;;  %v2824_v44 = vld [vmem:[#allocation9 + $0x160] sm:$0xff]  ;;  %v2854_v59 = vld [vmem:[#allocation9 + $0x130] sm:$0xff]  ;;  %1022 = vmatpush.msra.mxu1 %v2852_v58 }
 0x1a8   :  { %v666_v3 = vsel %vm663_vm3, %v665_v62, %v661_v1  ;;  %v693_v4 = vmul.f32 %v2155_v32, %v647_v49  ;;  %1000 = vmatpush.msra.mxu0 %v2824_v44  ;;  %1060 = vmatpush.msra.mxu3 %v2832_v50  ;;  %v2858_v62 = vld [vmem:[#allocation9 + $0x138] sm:$0xff]  ;;  %v2862_v63 = vld [vmem:[#allocation9 + $0x100] sm:$0xff]  ;;  %v2866_v32 = vld [vmem:[#allocation9 + $0x110] sm:$0xff] }
 0x1a9   :  { %v692_v5 = vmul.f32 %v690_v0, %v666_v3  ;;  %v676_v6 = vmul.f32 %v2153_v57, %v675_v2  ;;  %1042 = vmatpush.msra.mxu2 %v2854_v59  ;;  %v2864_v0 = vld [vmem:[#allocation9 + $0x108] sm:$0xff]  ;;  %v2870_v1 = vld [vmem:[#allocation9 + $0x118] sm:$0xff]  ;;  %v2874_v3 = vld [vmem:[#allocation9 + $0xe0] sm:$0xff] }
 0x1aa   :  { %1001 = vmatpush.msra.mxu0 %v2836_v51  ;;  %1061 = vmatpush.msra.mxu3 %v2846_v56 }
 0x1ab   :  { %v694_v7 = vadd.f32 %v693_v4, %v692_v5  ;;  %v677_v8 = vadd.f32 %v2153_v57, %v676_v6  ;;  %1023 = vmatpush.msra.mxu1 %v2864_v0  ;;  %1043 = vmatpush.msra.mxu2 %v2866_v32  ;;  %v2876_v4 = vld [vmem:[#allocation9 + $0xe8] sm:$0xff]  ;;  %v2878_v5 = vld [vmem:[#allocation9 + $0xf0] sm:$0xff]  ;;  %v2882_v6 = vld [vmem:[#allocation9 + $0xf8] sm:$0xff] }
 0x1ac   :  { %1062 = vmatpush.msra.mxu3 %v2858_v62 }
 0x1ad   :  { %2156 = vtanh.f32 %v694_v7  ;;  %697 = vst [vmem:[#allocation3 - $0x2] sm:$0xc] %v694_v7  ;;  %v681_v13 = vsel %vm680_vm6, %v2153_v57, %v677_v8  ;;  %v2850_v57 = vld [vmem:[#allocation9 + $0x120] sm:$0xff]  ;;  %1024 = vmatpush.msra.mxu1 %v2876_v4  ;;  %1044 = vmatpush.msra.mxu2 %v2878_v5 }
 0x1ae   :  { %v686_v20 = vsel %vm683_vm7, %v685_v14, %v681_v13  ;;  %1002 = vmatpush.msra.mxu0 %v2850_v57  ;;  %1063 = vmatpush.msra.mxu3 %v2870_v1  ;;  %v2887_v8 = vld [vmem:[#allocation9 + $0xc0] sm:$0xff]  ;;  %v2895_v13 = vld [vmem:[#allocation9 + $0xd8] sm:$0xff] }
 0x1af   :  { %1025 = vmatpush.msra.mxu1 %v2889_v10  ;;  %1045 = vmatpush.msra.mxu2 %v2891_v12 }
 0x1b0   :  { %1003 = vmatpush.msra.mxu0 %v2862_v63  ;;  %1064 = vmatpush.msra.mxu3 %v2882_v6 }
 0x1b2   :  { %1004 = vmatpush.msra.mxu0 %v2874_v3  ;;  %1065 = vmatpush.msra.mxu3 %v2895_v13 }
 0x1b3   :  { %v2157_v17 = vpop.eup %2156 }
 0x1b4   :  { %v696_v21 = vmul.f32 %v2157_v17, %v686_v20  ;;  %1005 = vmatpush.msra.mxu0 %v2887_v8  ;;  %v2899_v17 = vld [vmem:[#allocation9 + $0xa0] sm:$0xff]  ;;  %v2901_v20 = vld [vmem:[#allocation9 + $0xa8] sm:$0xff] }
 0x1b5   :  { %1026 = vmatpush.msra.mxu1 %v2901_v20 }
 0x1b6   :  { %698 = vst [vmem:[#allocation2 - $0x2] sm:$0xc] %v696_v21  ;;  %1006 = vmatpush.msra.mxu0 %v2899_v17 }
 0x1b7   :  { %699 = vst [vmem:[#allocation12] sm:$0xc] %v696_v21  ;;  %v2903_v21 = vld [vmem:[#allocation9 + $0xb0] sm:$0xff] }
 0x1b8   :  { %1046 = vmatpush.msra.mxu2 %v2903_v21 }
 0x1bd   :  { %v700_v22 = vld [vmem:[#allocation2] sm:$0x3] }
 0x1be   :  { %781 = vmatmul.f32.vlgmr.msrb.gmra.mxu0 %v700_v22  ;;  %801 = vmatmul.f32.vlgmr.msrb.gmra.mxu1 %v700_v22 }
 0x1bf   :  { %821 = vmatmul.f32.vlgmr.msrb.gmra.mxu2 %v700_v22  ;;  %841 = vmatmul.f32.vlgmr.msrb.gmra.mxu3 %v700_v22 }
 0x23b   :  { %v782_v42 = vpop.f32.mrf.mxu0  ;;  %v802_v43 = vpop.f32.mrf.mxu1 }
 0x23c   :  { %v849_v47 = vrot.slane %v782_v42, 4  ;;  %v850_v48 = vrot.slane %v802_v43, 4  ;;  %v2907_v42 = vld [vmem:[#allocation9 + $0xb8] sm:$0xff] }
 0x23d   :  { %1066 = vmatpush.msra.mxu3 %v2907_v42 }
 0x23e   :  { %v857_v54 = vadd.f32 %v849_v47, %v2758_v16  ;;  %v858_v55 = vadd.f32 %v850_v48, %v2760_v18  ;;  %v2913_v48 = vld [vmem:[#allocation9 + $0x80] sm:$0xff]  ;;  %v2953_v18 = vld [vmem:[#allocation9 + $0x28] sm:$0xff]  ;;  %v2955_v16 = vld [vmem:[#allocation9 + $0x30] sm:$0xff] }
 0x23f   :  { %1007 = vmatpush.msra.mxu0 %v2913_v48 }
 0x240   :  { %v2098_v60 = vmul.f32 -1.442695, %v857_v54  ;;  %v2099_v61 = vmul.f32 -1.442695, %v858_v55  ;;  %v2915_v54 = vld [vmem:[#allocation9 + $0x88] sm:$0xff]  ;;  %v2917_v55 = vld [vmem:[#allocation9 + $0x90] sm:$0xff] }
 0x241   :  { %3527 = vst [vmem:[#allocation32_spill] sm:$0xff] %v2917_v55  ;;  %1027 = vmatpush.msra.mxu1 %v2915_v54  ;;  %1047 = vmatpush.msra.mxu2 %v2917_v55 }
 0x242   :  { %2158 = vpow2.f32 %v2098_v60  ;;  %v842_v49 = vpop.f32.mrf.mxu3 }
 0x243   :  { %2160 = vpow2.f32 %v2099_v61  ;;  %v852_v2 = vrot.slane %v842_v49, 4  ;;  %v822_v61 = vpop.f32.mrf.mxu2  ;;  %v2923_v49 = vld [vmem:[#allocation9 + $0x98] sm:$0xff] }
 0x244   :  { %3528 = vst [vmem:[#allocation33_spill] sm:$0xff] %v2923_v49  ;;  %1067 = vmatpush.msra.mxu3 %v2923_v49  ;;  %v851_v15 = vrot.slane %v822_v61, 4 }
 0x245   :  { %v860_v7 = vadd.f32 %v852_v2, %v2766_v26  ;;  %v2928_v2 = vld [vmem:[#allocation9 + $0x60] sm:$0xff] }
 0x246   :  { %3529 = vst [vmem:[#allocation34_spill] sm:$0xff] %v2928_v2  ;;  %1008 = vmatpush.msra.mxu0 %v2928_v2  ;;  %v2949_v26 = vld [vmem:[#allocation9 + $0x20] sm:$0xff]  ;;  %v859_v55 = vadd.f32 %v851_v15, %v2769_v35 }
 0x247   :  { %v2100_v14 = vmul.f32 -1.442695, %v860_v7  ;;  %v2930_v7 = vld [vmem:[#allocation9 + $0x68] sm:$0xff] }
 0x248   :  { %v2159_v22 = vpop.eup %2158  ;;  %3530 = vst [vmem:[#allocation35_spill] sm:$0xff] %v2930_v7  ;;  %1028 = vmatpush.msra.mxu1 %v2930_v7  ;;  %v2957_v7 = vld [vmem:[#allocation9 + $0x38] sm:$0xff] }
 0x249   :  { %v2161_v43 = vpop.eup %2160  ;;  %v2909_v47 = vadd.f32 1.0, %v2159_v22  ;;  %2162 = vpow2.f32 %v2100_v14  ;;  %v2932_v14 = vld [vmem:[#allocation9 + $0x70] sm:$0xff]  ;;  %v2937_v22 = vld [vmem:[#allocation9 + $0x78] sm:$0xff]  ;;  %3537 = vst [vmem:[#allocation42_spill] sm:$0xff] %v2957_v7 }
 0x24a   :  { %v2919_v60 = vadd.f32 1.0, %v2161_v43  ;;  %3531 = vst [vmem:[#allocation36_spill] sm:$0xff] %v2932_v14  ;;  %v2939_v43 = vld [vmem:[#allocation9 + $0x40] sm:$0xff]  ;;  %1048 = vmatpush.msra.mxu2 %v2932_v14  ;;  %1068 = vmatpush.msra.mxu3 %v2937_v22  ;;  %v2963_v14 = vld [vmem:[#allocation9 + $0x8] sm:$0xff] }
 0x24b   :  { %2164 = vrcp.f32 %v2909_v47  ;;  %3532 = vst [vmem:[#allocation37_spill] sm:$0xff] %v2937_v22  ;;  %1009 = vmatpush.msra.mxu0 %v2939_v43  ;;  %1029 = vmatpush.msra.mxu1 %v2941_v19  ;;  %v2961_v22 = vld [vmem:[#allocation9] sm:$0xff]  ;;  %v2969_v19 = vld [vmem:[#allocation9 + $0x10] sm:$0xff]  ;;  %vm870_vm10 = vweird.f32 %v2909_v47 }
 0x24c   :  { %2166 = vrcp.f32 %v2919_v60  ;;  %3533 = vst [vmem:[#allocation38_spill] sm:$0xff] %v2939_v43  ;;  %1049 = vmatpush.msra.mxu2 %v2945_v11  ;;  %1069 = vmatpush.msra.mxu3 %v2947_v9  ;;  %v2971_v43 = vld [vmem:[#allocation9 + $0x18] sm:$0xff]  ;;  %vm889_vm11 = vweird.f32 %v2919_v60 }
 0x24d   :  { %3538 = vst [vmem:[#allocation43_spill] sm:$0xff] %v2961_v22  ;;  %1010 = vmatpush.msra.mxu0 %v2949_v26  ;;  %1030 = vmatpush.msra.mxu1 %v2953_v18 }
 0x24e   :  { %3539 = vst [vmem:[#allocation44_spill] sm:$0xff] %v2963_v14  ;;  %1050 = vmatpush.msra.mxu2 %v2955_v16  ;;  %1070 = vmatpush.msra.mxu3 %v2957_v7  ;;  %v876_v7 = vand.u32 2147483648, %v2909_v47 }
 0x24f   :  { %v2163_v61 = vpop.eup %2162  ;;  %3540 = vst [vmem:[#allocation45_spill] sm:$0xff] %v2969_v19  ;;  %1011 = vmatpush.msra.mxu0 %v2961_v22  ;;  %1031 = vmatpush.msra.mxu1 %v2963_v14  ;;  %v895_v14 = vand.u32 2147483648, %v2919_v60 }
 0x250   :  { %v2965_v2 = vadd.f32 1.0, %v2163_v61  ;;  %1051 = vmatpush.msra.mxu2 %v2969_v19  ;;  %1071 = vmatpush.msra.mxu3 %v2971_v43  ;;  %v874_v19 = vand.u32 2147483647, %v2909_v47 }
 0x251   :  { %v2165_v49 = vpop.eup %2164  ;;  %1227 = vmatpush.msrb.mxu0 %v2776_v23  ;;  %1247 = vmatpush.msrb.mxu1 %v2778_v24  ;;  %v919_v24 = vld [vmem:[#allocation3] sm:$0x3] }
 0x252   :  { %v2167_v9 = vpop.eup %2166  ;;  %v866_v11 = vmul.f32 %v2165_v49, %v2909_v47  ;;  %2168 = vrcp.f32 %v2965_v2  ;;  %1267 = vmatpush.msrb.mxu2 %v2780_v25  ;;  %1287 = vmatpush.msrb.mxu3 %v2784_v27  ;;  %vm871_vm8 = vweird.f32 %v2165_v49  ;;  %v896_v47 = vor.u32 1.1754944e-38, %v895_v14  ;;  %v3541_v14 = vld [vmem:[#allocation32_spill] sm:$0xff] }
 0x253   :  { %v885_v61 = vmul.f32 %v2167_v9, %v2919_v60  ;;  %2170 = vtanh.f32 %v859_v55  ;;  %1228 = vmatpush.msrb.mxu0 %v2788_v28  ;;  %1248 = vmatpush.msrb.mxu1 %v2790_v29  ;;  %vm890_vm9 = vweird.f32 %v2167_v9  ;;  %vm872_vm12 = vmor %vm870_vm10, %vm871_vm8  ;;  %vm875_vm14 = vcmp.eq.f32.partialorder %v874_v19, 8.507059e+37 }
 0x254   :  { %v867_v15 = vsub.f32 1.0, %v866_v11  ;;  %1268 = vmatpush.msrb.mxu2 %v2792_v30  ;;  %1288 = vmatpush.msrb.mxu3 %v2796_v31  ;;  %vm891_vm13 = vmor %vm889_vm11, %vm890_vm9  ;;  %vm909_vm1 = vweird.f32 %v2965_v2 }
 0x255   :  { %v886_v35 = vsub.f32 1.0, %v885_v61  ;;  %v893_v61 = vand.u32 2147483647, %v2919_v60  ;;  %1229 = vmatpush.msrb.mxu0 %v2800_v33  ;;  %1249 = vmatpush.msrb.mxu1 %v2802_v34  ;;  %v921_v33 = vrot.slane %v919_v24, 4 }
 0x256   :  { %v868_v22 = vmul.f32 %v2165_v49, %v867_v15  ;;  %1269 = vmatpush.msrb.mxu2 %v2804_v36  ;;  %1289 = vmatpush.msrb.mxu3 %v2808_v37 }
 0x257   :  { %v887_v11 = vmul.f32 %v2167_v9, %v886_v35  ;;  %v877_v35 = vor.u32 1.1754944e-38, %v876_v7  ;;  %1230 = vmatpush.msrb.mxu0 %v2812_v38  ;;  %1250 = vmatpush.msrb.mxu1 %v2814_v39  ;;  %vm894_vm15 = vcmp.eq.f32.partialorder %v893_v61, 8.507059e+37  ;;  %v3542_v61 = vld [vmem:[#allocation33_spill] sm:$0xff] }
 0x258   :  { %v2995_v55 = vpop.eup %2168  ;;  %v869_v27 = vadd.f32 %v2165_v49, %v868_v22  ;;  %1270 = vmatpush.msrb.mxu2 %v2816_v40  ;;  %1290 = vmatpush.msrb.mxu3 %v2820_v41 }
 0x259   :  { %v888_v15 = vadd.f32 %v2167_v9, %v887_v11  ;;  %v905_v30 = vmul.f32 %v2995_v55, %v2965_v2  ;;  %v2171_v60 = vpop.eup %2170  ;;  %1231 = vmatpush.msrb.mxu0 %v2824_v44  ;;  %1251 = vmatpush.msrb.mxu1 %v2826_v45  ;;  %vm910_vm0 = vweird.f32 %v2995_v55 }
 0x25a   :  { %v873_v22 = vsel %vm872_vm12, %v2165_v49, %v869_v27  ;;  %1271 = vmatpush.msrb.mxu2 %v2828_v46  ;;  %1291 = vmatpush.msrb.mxu3 %v2832_v50  ;;  %vm911_vm2 = vmor %vm909_vm1, %vm910_vm0 }
 0x25b   :  { %v878_v7 = vsel %vm875_vm14, %v877_v35, %v873_v22  ;;  %v892_v11 = vsel %vm891_vm13, %v2167_v9, %v888_v15  ;;  %v906_v34 = vsub.f32 1.0, %v905_v30  ;;  %1232 = vmatpush.msrb.mxu0 %v2836_v51  ;;  %1252 = vmatpush.msrb.mxu1 %v2838_v52  ;;  %v915_v30 = vand.u32 2147483648, %v2965_v2  ;;  %v3544_v35 = vld [vmem:[#allocation35_spill] sm:$0xff]  ;;  %v3545_v15 = vld [vmem:[#allocation36_spill] sm:$0xff]  ;;  %v3547_v22 = vld [vmem:[#allocation38_spill] sm:$0xff] }
 0x25c   :  { %v897_v37 = vsel %vm894_vm15, %v896_v47, %v892_v11  ;;  %v924_v36 = vmul.f32 %v2171_v60, %v878_v7  ;;  %1272 = vmatpush.msrb.mxu2 %v2840_v53  ;;  %1292 = vmatpush.msrb.mxu3 %v2846_v56  ;;  %v3546_v47 = vld [vmem:[#allocation37_spill] sm:$0xff]  ;;  %v3548_v60 = vld [vmem:[#allocation39_spill] sm:$0xff]  ;;  %v3549_v7 = vld [vmem:[#allocation40_spill] sm:$0xff] }
 0x25d   :  { %v923_v19 = vmul.f32 %v921_v33, %v897_v37  ;;  %v907_v24 = vmul.f32 %v2995_v55, %v906_v34  ;;  %1233 = vmatpush.msrb.mxu0 %v2850_v57  ;;  %1253 = vmatpush.msrb.mxu1 %v2852_v58  ;;  %v913_v33 = vand.u32 2147483647, %v2965_v2  ;;  %v3550_v11 = vld [vmem:[#allocation41_spill] sm:$0xff] }
 0x25e   :  { %1273 = vmatpush.msrb.mxu2 %v2854_v59  ;;  %1293 = vmatpush.msrb.mxu3 %v2858_v62 }
 0x25f   :  { %v925_v9 = vadd.f32 %v924_v36, %v923_v19  ;;  %v908_v27 = vadd.f32 %v2995_v55, %v907_v24  ;;  %1234 = vmatpush.msrb.mxu0 %v2862_v63  ;;  %1254 = vmatpush.msrb.mxu1 %v2864_v0  ;;  %v916_v36 = vor.u32 1.1754944e-38, %v915_v30  ;;  %vm914_vm3 = vcmp.eq.f32.partialorder %v913_v33, 8.507059e+37  ;;  %v3551_v24 = vld [vmem:[#allocation42_spill] sm:$0xff]  ;;  %v3554_v30 = vld [vmem:[#allocation45_spill] sm:$0xff] }
 0x260   :  { %1274 = vmatpush.msrb.mxu2 %v2866_v32  ;;  %1294 = vmatpush.msrb.mxu3 %v2870_v1  ;;  %v3555_v33 = vld [vmem:[#allocation25_spill] sm:$0xff] }
 0x261   :  { %2172 = vtanh.f32 %v925_v9  ;;  %928 = vst [vmem:[#allocation3 - $0x4] sm:$0x30] %v925_v9  ;;  %v912_v34 = vsel %vm911_vm2, %v2995_v55, %v908_v27  ;;  %1235 = vmatpush.msrb.mxu0 %v2874_v3  ;;  %1255 = vmatpush.msrb.mxu1 %v2876_v4  ;;  %v3543_v55 = vld [vmem:[#allocation34_spill] sm:$0xff]  ;;  %v3552_v9 = vld [vmem:[#allocation43_spill] sm:$0xff]  ;;  %v3553_v27 = vld [vmem:[#allocation44_spill] sm:$0xff] }
 0x262   :  { %1275 = vmatpush.msrb.mxu2 %v2878_v5  ;;  %1295 = vmatpush.msrb.mxu3 %v2882_v6  ;;  %v917_v49 = vsel %vm914_vm3, %v916_v36, %v912_v34  ;;  %v3556_v34 = vld [vmem:[#allocation26_spill] sm:$0xff]  ;;  %v3557_v36 = vld [vmem:[#allocation27_spill] sm:$0xff] }
 0x263   :  { %1236 = vmatpush.msrb.mxu0 %v2887_v8  ;;  %1256 = vmatpush.msrb.mxu1 %v2889_v10 }
 0x264   :  { %1276 = vmatpush.msrb.mxu2 %v2891_v12  ;;  %1296 = vmatpush.msrb.mxu3 %v2895_v13 }
 0x265   :  { %1237 = vmatpush.msrb.mxu0 %v2899_v17  ;;  %1257 = vmatpush.msrb.mxu1 %v2901_v20 }
 0x266   :  { %1277 = vmatpush.msrb.mxu2 %v2903_v21  ;;  %1297 = vmatpush.msrb.mxu3 %v2907_v42 }
 0x267   :  { %v2173_v37 = vpop.eup %2172  ;;  %1238 = vmatpush.msrb.mxu0 %v2913_v48  ;;  %1258 = vmatpush.msrb.mxu1 %v2915_v54 }
 0x268   :  { %v927_v2 = vmul.f32 %v2173_v37, %v917_v49  ;;  %1278 = vmatpush.msrb.mxu2 %v3541_v14  ;;  %1298 = vmatpush.msrb.mxu3 %v3542_v61  ;;  %v3558_v37 = vld [vmem:[#allocation28_spill] sm:$0xff]  ;;  %v3559_v49 = vld [vmem:[#allocation29_spill] sm:$0xff] }
 0x269   :  { %1239 = vmatpush.msrb.mxu0 %v3543_v55  ;;  %1259 = vmatpush.msrb.mxu1 %v3544_v35 }
 0x26a   :  { %929 = vst [vmem:[#allocation2 - $0x4] sm:$0x30] %v927_v2  ;;  %1279 = vmatpush.msrb.mxu2 %v3545_v15  ;;  %1299 = vmatpush.msrb.mxu3 %v3546_v47 }
 0x26b   :  { %930 = vst [vmem:[#allocation12] sm:$0x30] %v927_v2  ;;  %1240 = vmatpush.msrb.mxu0 %v3547_v22  ;;  %1260 = vmatpush.msrb.mxu1 %v3548_v60  ;;  %v3560_v2 = vld [vmem:[#allocation30_spill] sm:$0xff] }
 0x26c   :  { %1280 = vmatpush.msrb.mxu2 %v3549_v7  ;;  %1300 = vmatpush.msrb.mxu3 %v3550_v11 }
 0x26d   :  { %1241 = vmatpush.msrb.mxu0 %v2949_v26  ;;  %1261 = vmatpush.msrb.mxu1 %v2953_v18 }
 0x26e   :  { %1281 = vmatpush.msrb.mxu2 %v2955_v16  ;;  %1301 = vmatpush.msrb.mxu3 %v3551_v24 }
 0x26f   :  { %1242 = vmatpush.msrb.mxu0 %v3552_v9  ;;  %1262 = vmatpush.msrb.mxu1 %v3553_v27 }
 0x270   :  { %1282 = vmatpush.msrb.mxu2 %v3554_v30  ;;  %1302 = vmatpush.msrb.mxu3 %v2971_v43 }
 0x271   :  { %v931_v19 = vld [vmem:[#allocation2] sm:$0x3] }
 0x272   :  { %1012 = vmatmul.f32.vlgmr.msra.gmra.mxu0 %v931_v19  ;;  %1032 = vmatmul.f32.vlgmr.msra.gmra.mxu1 %v931_v19 }
 0x273   :  { %1052 = vmatmul.f32.vlgmr.msra.gmra.mxu2 %v931_v19  ;;  %1072 = vmatmul.f32.vlgmr.msra.gmra.mxu3 %v931_v19 }
 0x274   :  { %1443 = vmatpush.msra.mxu0 %v2776_v23  ;;  %1463 = vmatpush.msra.mxu1 %v3555_v33  ;;  %v3561_v23 = vld [vmem:[#allocation31_spill] sm:$0xff] }
 0x275   :  { %1483 = vmatpush.msra.mxu2 %v2780_v25  ;;  %1503 = vmatpush.msra.mxu3 %v3556_v34 }
 0x276   :  { %1444 = vmatpush.msra.mxu0 %v2788_v28  ;;  %1464 = vmatpush.msra.mxu1 %v2790_v29 }
 0x277   :  { %1484 = vmatpush.msra.mxu2 %v3557_v36  ;;  %1504 = vmatpush.msra.mxu3 %v2796_v31 }
 0x278   :  { %1445 = vmatpush.msra.mxu0 %v3558_v37  ;;  %1465 = vmatpush.msra.mxu1 %v3559_v49 }
 0x279   :  { %1485 = vmatpush.msra.mxu2 %v3560_v2  ;;  %1505 = vmatpush.msra.mxu3 %v3561_v23 }
 0x27a   :  { %1446 = vmatpush.msra.mxu0 %v2812_v38  ;;  %1466 = vmatpush.msra.mxu1 %v2814_v39  ;;  %v3562_v38 = vld [vmem:[#allocation20_spill] sm:$0xff]  ;;  %v3563_v39 = vld [vmem:[#allocation21_spill] sm:$0xff] }
 0x27b   :  { %1486 = vmatpush.msra.mxu2 %v2816_v40  ;;  %1506 = vmatpush.msra.mxu3 %v2820_v41 }
 0x27c   :  { %1447 = vmatpush.msra.mxu0 %v2824_v44  ;;  %1467 = vmatpush.msra.mxu1 %v2826_v45  ;;  %v3564_v45 = vld [vmem:[#allocation23_spill] sm:$0xff] }
 0x27d   :  { %1487 = vmatpush.msra.mxu2 %v2828_v46  ;;  %1507 = vmatpush.msra.mxu3 %v2832_v50 }
 0x27e   :  { %1448 = vmatpush.msra.mxu0 %v2836_v51  ;;  %1468 = vmatpush.msra.mxu1 %v2838_v52 }
 0x27f   :  { %1488 = vmatpush.msra.mxu2 %v2840_v53  ;;  %1508 = vmatpush.msra.mxu3 %v2846_v56 }
 0x280   :  { %1449 = vmatpush.msra.mxu0 %v2850_v57  ;;  %1469 = vmatpush.msra.mxu1 %v2852_v58 }
 0x281   :  { %1489 = vmatpush.msra.mxu2 %v2854_v59  ;;  %1509 = vmatpush.msra.mxu3 %v2858_v62 }
 0x282   :  { %1450 = vmatpush.msra.mxu0 %v2862_v63  ;;  %1470 = vmatpush.msra.mxu1 %v2864_v0  ;;  %v3565_v0 = vld [vmem:[#allocation24_spill] sm:$0xff] }
 0x283   :  { %1490 = vmatpush.msra.mxu2 %v2866_v32  ;;  %1510 = vmatpush.msra.mxu3 %v2870_v1 }
 0x284   :  { %1451 = vmatpush.msra.mxu0 %v2874_v3  ;;  %1471 = vmatpush.msra.mxu1 %v2876_v4 }
 0x285   :  { %1491 = vmatpush.msra.mxu2 %v2878_v5  ;;  %1511 = vmatpush.msra.mxu3 %v2882_v6 }
 0x286   :  { %1452 = vmatpush.msra.mxu0 %v2887_v8  ;;  %1472 = vmatpush.msra.mxu1 %v2889_v10 }
 0x287   :  { %1492 = vmatpush.msra.mxu2 %v2891_v12  ;;  %1512 = vmatpush.msra.mxu3 %v2895_v13 }
 0x288   :  { %1453 = vmatpush.msra.mxu0 %v2899_v17  ;;  %1473 = vmatpush.msra.mxu1 %v2901_v20 }
 0x289   :  { %1493 = vmatpush.msra.mxu2 %v2903_v21  ;;  %1513 = vmatpush.msra.mxu3 %v2907_v42  ;;  %v1150_v21 = vld [vmem:[#allocation3] sm:$0x3] }
 0x28a   :  { %1454 = vmatpush.msra.mxu0 %v2913_v48  ;;  %1474 = vmatpush.msra.mxu1 %v2915_v54 }
 0x28b   :  { %1494 = vmatpush.msra.mxu2 %v3541_v14  ;;  %1514 = vmatpush.msra.mxu3 %v3542_v61 }
 0x28c   :  { %1455 = vmatpush.msra.mxu0 %v3543_v55  ;;  %1475 = vmatpush.msra.mxu1 %v3544_v35  ;;  %v1152_v35 = vrot.slane %v1150_v21, 2 }
 0x28d   :  { %1495 = vmatpush.msra.mxu2 %v3545_v15  ;;  %1515 = vmatpush.msra.mxu3 %v3546_v47 }
 0x28e   :  { %1456 = vmatpush.msra.mxu0 %v3547_v22  ;;  %1476 = vmatpush.msra.mxu1 %v3548_v60 }
 0x28f   :  { %1496 = vmatpush.msra.mxu2 %v3549_v7  ;;  %1516 = vmatpush.msra.mxu3 %v3550_v11 }
 0x290   :  { %1457 = vmatpush.msra.mxu0 %v2949_v26  ;;  %1477 = vmatpush.msra.mxu1 %v2953_v18 }
 0x291   :  { %1497 = vmatpush.msra.mxu2 %v2955_v16  ;;  %1517 = vmatpush.msra.mxu3 %v3551_v24 }
 0x292   :  { %1458 = vmatpush.msra.mxu0 %v3552_v9  ;;  %1478 = vmatpush.msra.mxu1 %v3553_v27 }
 0x293   :  { %1498 = vmatpush.msra.mxu2 %v3554_v30  ;;  %1518 = vmatpush.msra.mxu3 %v2971_v43 }
 0x2ef   :  { %v1013_v25 = vpop.f32.mrf.mxu0  ;;  %v1033_v28 = vpop.f32.mrf.mxu1 }
 0x2f0   :  { %v1080_v29 = vrot.slane %v1013_v25, 2  ;;  %v1081_v31 = vrot.slane %v1033_v28, 2 }
 0x2f2   :  { %v1088_v26 = vadd.f32 %v1080_v29, %v3562_v38  ;;  %v1089_v18 = vadd.f32 %v1081_v31, %v3563_v39  ;;  %v3566_v29 = vld [vmem:[#allocation17_spill] sm:$0xff]  ;;  %v3567_v38 = vld [vmem:[#allocation18_spill] sm:$0xff] }
 0x2f4   :  { %v2101_v40 = vmul.f32 -1.442695, %v1088_v26  ;;  %v2102_v16 = vmul.f32 -1.442695, %v1089_v18 }
 0x2f6   :  { %2174 = vpow2.f32 %v2101_v40  ;;  %v1073_v41 = vpop.f32.mrf.mxu3  ;;  %v1053_v57 = vpop.f32.mrf.mxu2 }
 0x2f7   :  { %2176 = vpow2.f32 %v2102_v16  ;;  %v1083_v44 = vrot.slane %v1073_v41, 2  ;;  %v1082_v58 = vrot.slane %v1053_v57, 2  ;;  %v3568_v16 = vld [vmem:[#allocation19_spill] sm:$0xff] }
 0x2f9   :  { %v1091_v46 = vadd.f32 %v1083_v44, %v3564_v45  ;;  %v1090_v32 = vadd.f32 %v1082_v58, %v3565_v0  ;;  %v3569_v58 = vld [vmem:[#allocation22_spill] sm:$0xff] }
 0x2fb   :  { %v2103_v50 = vmul.f32 -1.442695, %v1091_v46 }
 0x2fc   :  { %v2175_v51 = vpop.eup %2174 }
 0x2fd   :  { %v2177_v52 = vpop.eup %2176  ;;  %v1095_v53 = vadd.f32 1.0, %v2175_v51  ;;  %2178 = vpow2.f32 %v2103_v50 }
 0x2fe   :  { %v1114_v56 = vadd.f32 1.0, %v2177_v52 }
 0x2ff   :  { %2180 = vrcp.f32 %v1095_v53  ;;  %v1107_v8 = vand.u32 2147483648, %v1095_v53  ;;  %v1105_v13 = vand.u32 2147483647, %v1095_v53  ;;  %vm1101_vm6 = vweird.f32 %v1095_v53 }
 0x300   :  { %2182 = vrcp.f32 %v1114_v56  ;;  %v1126_v10 = vand.u32 2147483648, %v1114_v56  ;;  %v1124_v20 = vand.u32 2147483647, %v1114_v56  ;;  %vm1120_vm7 = vweird.f32 %v1114_v56 }
 0x301   :  { %v1108_v54 = vor.u32 1.1754944e-38, %v1107_v8  ;;  %vm1106_vm10 = vcmp.eq.f32.partialorder %v1105_v13, 8.507059e+37 }
 0x302   :  { %v1127_v61 = vor.u32 1.1754944e-38, %v1126_v10  ;;  %vm1125_vm11 = vcmp.eq.f32.partialorder %v1124_v20, 8.507059e+37 }
 0x303   :  { %v2179_v59 = vpop.eup %2178 }
 0x304   :  { %v1134_v62 = vadd.f32 1.0, %v2179_v59 }
 0x305   :  { %v2181_v63 = vpop.eup %2180 }
 0x306   :  { %v2183_v1 = vpop.eup %2182  ;;  %v1097_v3 = vmul.f32 %v2181_v63, %v1095_v53  ;;  %2184 = vrcp.f32 %v1134_v62  ;;  %vm1102_vm4 = vweird.f32 %v2181_v63  ;;  %v1146_v30 = vand.u32 2147483648, %v1134_v62 }
 0x307   :  { %v1116_v4 = vmul.f32 %v2183_v1, %v1114_v56  ;;  %2186 = vtanh.f32 %v1090_v32  ;;  %vm1121_vm5 = vweird.f32 %v2183_v1  ;;  %vm1103_vm8 = vmor %vm1101_vm6, %vm1102_vm4  ;;  %vm1140_vm13 = vweird.f32 %v1134_v62 }
 0x308   :  { %v1098_v5 = vsub.f32 1.0, %v1097_v3  ;;  %vm1122_vm9 = vmor %vm1120_vm7, %vm1121_vm5  ;;  %v1144_v33 = vand.u32 2147483647, %v1134_v62  ;;  %v1147_v36 = vor.u32 1.1754944e-38, %v1146_v30 }
 0x309   :  { %v1117_v6 = vsub.f32 1.0, %v1116_v4 }
 0x30a   :  { %v1099_v12 = vmul.f32 %v2181_v63, %v1098_v5  ;;  %vm1145_vm15 = vcmp.eq.f32.partialorder %v1144_v33, 8.507059e+37 }
 0x30b   :  { %v1118_v17 = vmul.f32 %v2183_v1, %v1117_v6 }
 0x30c   :  { %v2185_v42 = vpop.eup %2184  ;;  %v1100_v48 = vadd.f32 %v2181_v63, %v1099_v12 }
 0x30d   :  { %v1119_v43 = vadd.f32 %v2183_v1, %v1118_v17  ;;  %v1136_v14 = vmul.f32 %v2185_v42, %v1134_v62  ;;  %v2187_v15 = vpop.eup %2186  ;;  %vm1141_vm12 = vweird.f32 %v2185_v42 }
 0x30e   :  { %v1104_v55 = vsel %vm1103_vm8, %v2181_v63, %v1100_v48  ;;  %vm1142_vm14 = vmor %vm1140_vm13, %vm1141_vm12 }
 0x30f   :  { %v1109_v47 = vsel %vm1106_vm10, %v1108_v54, %v1104_v55  ;;  %v1123_v22 = vsel %vm1122_vm9, %v2183_v1, %v1119_v43  ;;  %v1137_v60 = vsub.f32 1.0, %v1136_v14 }
 0x310   :  { %v1128_v7 = vsel %vm1125_vm11, %v1127_v61, %v1123_v22  ;;  %v1155_v11 = vmul.f32 %v2187_v15, %v1109_v47 }
 0x311   :  { %v1154_v19 = vmul.f32 %v1152_v35, %v1128_v7  ;;  %v1138_v24 = vmul.f32 %v2185_v42, %v1137_v60 }
 0x313   :  { %v1156_v9 = vadd.f32 %v1155_v11, %v1154_v19  ;;  %v1139_v27 = vadd.f32 %v2185_v42, %v1138_v24 }
 0x315   :  { %2188 = vtanh.f32 %v1156_v9  ;;  %1159 = vst [vmem:[#allocation3 - $0x6] sm:$0xc0] %v1156_v9  ;;  %v1143_v34 = vsel %vm1142_vm14, %v2185_v42, %v1139_v27 }
 0x316   :  { %v1148_v49 = vsel %vm1145_vm15, %v1147_v36, %v1143_v34  ;;  %v3138_v36 = vld [vmem:[#allocation9 + $0x1e0] sm:$0xff] }
 0x31b   :  { %v2189_v37 = vpop.eup %2188 }
 0x31c   :  { %v1158_v2 = vmul.f32 %v2189_v37, %v1148_v49  ;;  %v1369_v35 = vld [vmem:[#allocation3] sm:$0x3]  ;;  %v3142_v49 = vld [vmem:[#allocation9 + $0x1f0] sm:$0xff] }
 0x31d   :  { %v3140_v37 = vld [vmem:[#allocation9 + $0x1e8] sm:$0xff] }
 0x31e   :  { %1160 = vst [vmem:[#allocation2 - $0x6] sm:$0xc0] %v1158_v2 }
 0x31f   :  { %1161 = vst [vmem:[#allocation12] sm:$0xc0] %v1158_v2  ;;  %v3146_v2 = vld [vmem:[#allocation9 + $0x1f8] sm:$0xff] }
 0x325   :  { %v1162_v23 = vld [vmem:[#allocation2] sm:$0x3] }
 0x326   :  { %1243 = vmatmul.f32.vlgmr.msrb.gmra.mxu0 %v1162_v23  ;;  %1263 = vmatmul.f32.vlgmr.msrb.gmra.mxu1 %v1162_v23 }
 0x327   :  { %1283 = vmatmul.f32.vlgmr.msrb.gmra.mxu2 %v1162_v23  ;;  %1303 = vmatmul.f32.vlgmr.msrb.gmra.mxu3 %v1162_v23  ;;  %v3150_v23 = vld [vmem:[#allocation9 + $0x1c0] sm:$0xff] }
 0x328   :  { %1674 = vmatpush.msrb.mxu0 %v3138_v36  ;;  %1694 = vmatpush.msrb.mxu1 %v3140_v37 }
 0x329   :  { %1714 = vmatpush.msrb.mxu2 %v3142_v49  ;;  %1734 = vmatpush.msrb.mxu3 %v3146_v2 }
 0x32a   :  { %1675 = vmatpush.msrb.mxu0 %v3150_v23 }
 0x3a3   :  { %v1244_v25 = vpop.f32.mrf.mxu0  ;;  %v1264_v28 = vpop.f32.mrf.mxu1 }
 0x3a4   :  { %v1307_v31 = vadd.f32 %v1244_v25, %v3566_v29  ;;  %v1308_v26 = vadd.f32 %v1264_v28, %v3567_v38  ;;  %v3152_v25 = vld [vmem:[#allocation9 + $0x1c8] sm:$0xff]  ;;  %v3154_v28 = vld [vmem:[#allocation9 + $0x1d0] sm:$0xff] }
 0x3a5   :  { %1695 = vmatpush.msrb.mxu1 %v3152_v25  ;;  %1715 = vmatpush.msrb.mxu2 %v3154_v28 }
 0x3a6   :  { %v2104_v39 = vmul.f32 -1.442695, %v1307_v31  ;;  %v2105_v18 = vmul.f32 -1.442695, %v1308_v26  ;;  %v3158_v31 = vld [vmem:[#allocation9 + $0x1d8] sm:$0xff]  ;;  %v3162_v26 = vld [vmem:[#allocation9 + $0x1a0] sm:$0xff] }
 0x3a7   :  { %1735 = vmatpush.msrb.mxu3 %v3158_v31  ;;  %1676 = vmatpush.msrb.mxu0 %v3162_v26 }
 0x3a8   :  { %2190 = vpow2.f32 %v2104_v39  ;;  %v3164_v39 = vld [vmem:[#allocation9 + $0x1a8] sm:$0xff] }
 0x3a9   :  { %2192 = vpow2.f32 %v2105_v18  ;;  %v3166_v18 = vld [vmem:[#allocation9 + $0x1b0] sm:$0xff]  ;;  %1696 = vmatpush.msrb.mxu1 %v3164_v39 }
 0x3aa   :  { %v1304_v40 = vpop.f32.mrf.mxu3  ;;  %v1284_v52 = vpop.f32.mrf.mxu2  ;;  %1716 = vmatpush.msrb.mxu2 %v3166_v18 }
 0x3ab   :  { %v1310_v41 = vadd.f32 %v1304_v40, %v3568_v16  ;;  %v1309_v59 = vadd.f32 %v1284_v52, %v3569_v58  ;;  %v3170_v40 = vld [vmem:[#allocation9 + $0x1b8] sm:$0xff]  ;;  %v3186_v52 = vld [vmem:[#allocation9 + $0x160] sm:$0xff] }
 0x3ac   :  { %1736 = vmatpush.msrb.mxu3 %v3170_v40 }
 0x3ad   :  { %v2106_v44 = vmul.f32 -1.442695, %v1310_v41  ;;  %v3174_v41 = vld [vmem:[#allocation9 + $0x180] sm:$0xff] }
 0x3ae   :  { %v2191_v45 = vpop.eup %2190  ;;  %1677 = vmatpush.msrb.mxu0 %v3174_v41 }
 0x3af   :  { %v2193_v46 = vpop.eup %2192  ;;  %v1314_v50 = vadd.f32 1.0, %v2191_v45  ;;  %2194 = vpow2.f32 %v2106_v44  ;;  %v3176_v44 = vld [vmem:[#allocation9 + $0x188] sm:$0xff]  ;;  %v3178_v45 = vld [vmem:[#allocation9 + $0x190] sm:$0xff] }
 0x3b0   :  { %v1333_v51 = vadd.f32 1.0, %v2193_v46  ;;  %1697 = vmatpush.msrb.mxu1 %v3176_v44  ;;  %v3182_v46 = vld [vmem:[#allocation9 + $0x198] sm:$0xff]  ;;  %1717 = vmatpush.msrb.mxu2 %v3178_v45 }
 0x3b1   :  { %2196 = vrcp.f32 %v1314_v50  ;;  %v1326_v3 = vand.u32 2147483648, %v1314_v50  ;;  %v1324_v6 = vand.u32 2147483647, %v1314_v50  ;;  %vm1320_vm2 = vweird.f32 %v1314_v50  ;;  %1737 = vmatpush.msrb.mxu3 %v3182_v46  ;;  %1678 = vmatpush.msrb.mxu0 %v3186_v52 }
 0x3b2   :  { %2198 = vrcp.f32 %v1333_v51  ;;  %v1345_v4 = vand.u32 2147483648, %v1333_v51  ;;  %v1343_v10 = vand.u32 2147483647, %v1333_v51  ;;  %vm1339_vm3 = vweird.f32 %v1333_v51 }
 0x3b3   :  { %v1327_v17 = vor.u32 1.1754944e-38, %v1326_v3  ;;  %vm1325_vm6 = vcmp.eq.f32.partialorder %v1324_v6, 8.507059e+37  ;;  %v3214_v6 = vld [vmem:[#allocation9 + $0x128] sm:$0xff] }
 0x3b4   :  { %v1346_v42 = vor.u32 1.1754944e-38, %v1345_v4  ;;  %vm1344_vm7 = vcmp.eq.f32.partialorder %v1343_v10, 8.507059e+37  ;;  %v3208_v4 = vld [vmem:[#allocation9 + $0x158] sm:$0xff] }
 0x3b5   :  { %v2195_v53 = vpop.eup %2194 }
 0x3b6   :  { %v1353_v56 = vadd.f32 1.0, %v2195_v53  ;;  %v3188_v53 = vld [vmem:[#allocation9 + $0x168] sm:$0xff] }
 0x3b7   :  { %v2197_v57 = vpop.eup %2196  ;;  %1698 = vmatpush.msrb.mxu1 %v3188_v53 }
 0x3b8   :  { %v2199_v62 = vpop.eup %2198  ;;  %v1316_v63 = vmul.f32 %v2197_v57, %v1314_v50  ;;  %2200 = vrcp.f32 %v1353_v56  ;;  %vm1321_vm0 = vweird.f32 %v2197_v57  ;;  %v1365_v11 = vand.u32 2147483648, %v1353_v56 }
 0x3b9   :  { %v1335_v0 = vmul.f32 %v2199_v62, %v1333_v51  ;;  %2202 = vtanh.f32 %v1309_v59  ;;  %vm1340_vm1 = vweird.f32 %v2199_v62  ;;  %vm1322_vm4 = vmor %vm1320_vm2, %vm1321_vm0  ;;  %vm1359_vm9 = vweird.f32 %v1353_v56 }
 0x3ba   :  { %v1317_v32 = vsub.f32 1.0, %v1316_v63  ;;  %vm1341_vm5 = vmor %vm1339_vm3, %vm1340_vm1  ;;  %v1363_v19 = vand.u32 2147483647, %v1353_v56  ;;  %v1366_v9 = vor.u32 1.1754944e-38, %v1365_v11  ;;  %v3198_v63 = vld [vmem:[#allocation9 + $0x140] sm:$0xff] }
 0x3bb   :  { %v1336_v1 = vsub.f32 1.0, %v1335_v0  ;;  %v3200_v0 = vld [vmem:[#allocation9 + $0x148] sm:$0xff]  ;;  %1679 = vmatpush.msrb.mxu0 %v3198_v63  ;;  %v3261_v11 = vld [vmem:[#allocation9 + $0xa0] sm:$0xff] }
 0x3bc   :  { %v1318_v5 = vmul.f32 %v2197_v57, %v1317_v32  ;;  %vm1364_vm11 = vcmp.eq.f32.partialorder %v1363_v19, 8.507059e+37  ;;  %v3202_v32 = vld [vmem:[#allocation9 + $0x150] sm:$0xff]  ;;  %1699 = vmatpush.msrb.mxu1 %v3200_v0  ;;  %v3263_v19 = vld [vmem:[#allocation9 + $0xa8] sm:$0xff] }
 0x3bd   :  { %v1337_v8 = vmul.f32 %v2199_v62, %v1336_v1 }
 0x3be   :  { %v2201_v12 = vpop.eup %2200  ;;  %v1319_v13 = vadd.f32 %v2197_v57, %v1318_v5  ;;  %v3212_v5 = vld [vmem:[#allocation9 + $0x120] sm:$0xff]  ;;  %1700 = vmatpush.msrb.mxu1 %v3214_v6 }
 0x3bf   :  { %v1338_v20 = vadd.f32 %v2199_v62, %v1337_v8  ;;  %v1355_v21 = vmul.f32 %v2201_v12, %v1353_v56  ;;  %v2203_v54 = vpop.eup %2202  ;;  %vm1360_vm8 = vweird.f32 %v2201_v12  ;;  %v3190_v56 = vld [vmem:[#allocation9 + $0x170] sm:$0xff]  ;;  %1680 = vmatpush.msrb.mxu0 %v3212_v5 }
 0x3c0   :  { %v1323_v48 = vsel %vm1322_vm4, %v2197_v57, %v1319_v13  ;;  %vm1361_vm10 = vmor %vm1359_vm9, %vm1360_vm8  ;;  %1718 = vmatpush.msrb.mxu2 %v3190_v56  ;;  %v3216_v8 = vld [vmem:[#allocation9 + $0x130] sm:$0xff]  ;;  %v3220_v13 = vld [vmem:[#allocation9 + $0x138] sm:$0xff] }
 0x3c1   :  { %v1328_v43 = vsel %vm1325_vm6, %v1327_v17, %v1323_v48  ;;  %v1342_v14 = vsel %vm1341_vm5, %v2199_v62, %v1338_v20  ;;  %v1356_v61 = vsub.f32 1.0, %v1355_v21  ;;  %v3194_v62 = vld [vmem:[#allocation9 + $0x178] sm:$0xff]  ;;  %v3224_v17 = vld [vmem:[#allocation9 + $0x100] sm:$0xff]  ;;  %v3226_v20 = vld [vmem:[#allocation9 + $0x108] sm:$0xff] }
 0x3c2   :  { %v1347_v55 = vsel %vm1344_vm7, %v1346_v42, %v1342_v14  ;;  %v1371_v15 = vmul.f32 %v2203_v54, %v1328_v43  ;;  %1738 = vmatpush.msrb.mxu3 %v3194_v62  ;;  %1719 = vmatpush.msrb.mxu2 %v3202_v32  ;;  %v3228_v21 = vld [vmem:[#allocation9 + $0x110] sm:$0xff]  ;;  %v3232_v48 = vld [vmem:[#allocation9 + $0x118] sm:$0xff]  ;;  %v3236_v43 = vld [vmem:[#allocation9 + $0xe0] sm:$0xff] }
 0x3c3   :  { %v1370_v47 = vmul.f32 %v1369_v35, %v1347_v55  ;;  %v1357_v22 = vmul.f32 %v2201_v12, %v1356_v61  ;;  %1681 = vmatpush.msrb.mxu0 %v3224_v17  ;;  %1701 = vmatpush.msrb.mxu1 %v3226_v20  ;;  %v3238_v14 = vld [vmem:[#allocation9 + $0xe8] sm:$0xff]  ;;  %v3240_v61 = vld [vmem:[#allocation9 + $0xf0] sm:$0xff]  ;;  %v3244_v55 = vld [vmem:[#allocation9 + $0xf8] sm:$0xff] }
 0x3c4   :  { %1739 = vmatpush.msrb.mxu3 %v3208_v4  ;;  %1720 = vmatpush.msrb.mxu2 %v3216_v8 }
 0x3c5   :  { %v1372_v60 = vadd.f32 %v1371_v15, %v1370_v47  ;;  %v1358_v7 = vadd.f32 %v2201_v12, %v1357_v22  ;;  %1682 = vmatpush.msrb.mxu0 %v3236_v43  ;;  %1702 = vmatpush.msrb.mxu1 %v3238_v14  ;;  %v3249_v15 = vld [vmem:[#allocation9 + $0xc0] sm:$0xff]  ;;  %v3251_v47 = vld [vmem:[#allocation9 + $0xc8] sm:$0xff]  ;;  %v3253_v22 = vld [vmem:[#allocation9 + $0xd0] sm:$0xff] }
 0x3c6   :  { %1740 = vmatpush.msrb.mxu3 %v3220_v13  ;;  %1721 = vmatpush.msrb.mxu2 %v3228_v21 }
 0x3c7   :  { %2204 = vtanh.f32 %v1372_v60  ;;  %1375 = vst [vmem:[#allocation3] sm:$0x3] %v1372_v60  ;;  %v1362_v24 = vsel %vm1361_vm10, %v2201_v12, %v1358_v7  ;;  %1683 = vmatpush.msrb.mxu0 %v3249_v15  ;;  %1703 = vmatpush.msrb.mxu1 %v3251_v47  ;;  %v3257_v60 = vld [vmem:[#allocation9 + $0xd8] sm:$0xff] }
 0x3c8   :  { %v1367_v30 = vsel %vm1364_vm11, %v1366_v9, %v1362_v24  ;;  %1741 = vmatpush.msrb.mxu3 %v3232_v48  ;;  %1722 = vmatpush.msrb.mxu2 %v3240_v61  ;;  %v3265_v24 = vld [vmem:[#allocation9 + $0xb0] sm:$0xff] }
 0x3c9   :  { %1684 = vmatpush.msrb.mxu0 %v3261_v11  ;;  %1704 = vmatpush.msrb.mxu1 %v3263_v19 }
 0x3ca   :  { %1742 = vmatpush.msrb.mxu3 %v3244_v55  ;;  %1723 = vmatpush.msrb.mxu2 %v3253_v22 }
 0x3cc   :  { %1743 = vmatpush.msrb.mxu3 %v3257_v60  ;;  %1724 = vmatpush.msrb.mxu2 %v3265_v24 }
 0x3cd   :  { %v2205_v27 = vpop.eup %2204 }
 0x3ce   :  { %v1374_v33 = vmul.f32 %v2205_v27, %v1367_v30  ;;  %v3269_v27 = vld [vmem:[#allocation9 + $0xb8] sm:$0xff] }
 0x3cf   :  { %1744 = vmatpush.msrb.mxu3 %v3269_v27 }
 0x3d0   :  { %1377 = vst [vmem:[#allocation12 + $0x8] sm:$0x3] %v1374_v33 }
 0x3d1   :  { %1376 = vst [vmem:[#allocation2] sm:$0x3] %v1374_v33 }
 0x3d8   :  { %v1378_v34 = vld [vmem:[#allocation2] sm:$0x3] }
 0x3d9   :  { %1459 = vmatmul.f32.vlgmr.msra.gmra.mxu0 %v1378_v34  ;;  %1479 = vmatmul.f32.vlgmr.msra.gmra.mxu1 %v1378_v34 }
 0x3da   :  { %1499 = vmatmul.f32.vlgmr.msra.gmra.mxu2 %v1378_v34  ;;  %1519 = vmatmul.f32.vlgmr.msra.gmra.mxu3 %v1378_v34  ;;  %v3275_v34 = vld [vmem:[#allocation9 + $0x80] sm:$0xff] }
 0x3db   :  { %1685 = vmatpush.msrb.mxu0 %v3275_v34 }
 0x456   :  { %v1460_v50 = vpop.f32.mrf.mxu0  ;;  %v1480_v51 = vpop.f32.mrf.mxu1 }
 0x457   :  { %v1527_v57 = vrot.slane %v1460_v50, 6  ;;  %v1528_v59 = vrot.slane %v1480_v51, 6  ;;  %v3277_v50 = vld [vmem:[#allocation9 + $0x88] sm:$0xff]  ;;  %v3279_v51 = vld [vmem:[#allocation9 + $0x90] sm:$0xff] }
 0x458   :  { %3570 = vst [vmem:[#allocation32_spill] sm:$0xff] %v3279_v51  ;;  %1705 = vmatpush.msrb.mxu1 %v3277_v50  ;;  %1725 = vmatpush.msrb.mxu2 %v3279_v51 }
 0x459   :  { %v1535_v1 = vadd.f32 %v1527_v57, %v3566_v29  ;;  %v1536_v3 = vadd.f32 %v1528_v59, %v3567_v38  ;;  %v3315_v38 = vld [vmem:[#allocation9 + $0x28] sm:$0xff]  ;;  %v3317_v29 = vld [vmem:[#allocation9 + $0x30] sm:$0xff] }
 0x45b   :  { %v2107_v10 = vmul.f32 -1.442695, %v1535_v1  ;;  %v2108_v12 = vmul.f32 -1.442695, %v1536_v3  ;;  %v3285_v1 = vld [vmem:[#allocation9 + $0x98] sm:$0xff]  ;;  %v3290_v3 = vld [vmem:[#allocation9 + $0x60] sm:$0xff] }
 0x45c   :  { %3571 = vst [vmem:[#allocation33_spill] sm:$0xff] %v3285_v1  ;;  %1745 = vmatpush.msrb.mxu3 %v3285_v1  ;;  %1686 = vmatpush.msrb.mxu0 %v3290_v3 }
 0x45d   :  { %2206 = vpow2.f32 %v2107_v10  ;;  %v1520_v42 = vpop.f32.mrf.mxu3  ;;  %v1500_v59 = vpop.f32.mrf.mxu2  ;;  %3572 = vst [vmem:[#allocation34_spill] sm:$0xff] %v3290_v3  ;;  %v3292_v10 = vld [vmem:[#allocation9 + $0x68] sm:$0xff] }
 0x45e   :  { %2208 = vpow2.f32 %v2108_v12  ;;  %v1530_v54 = vrot.slane %v1520_v42, 6  ;;  %3573 = vst [vmem:[#allocation35_spill] sm:$0xff] %v3292_v10  ;;  %v3294_v12 = vld [vmem:[#allocation9 + $0x70] sm:$0xff]  ;;  %1706 = vmatpush.msrb.mxu1 %v3292_v10  ;;  %v3299_v42 = vld [vmem:[#allocation9 + $0x78] sm:$0xff] }
 0x45f   :  { %3574 = vst [vmem:[#allocation36_spill] sm:$0xff] %v3294_v12  ;;  %1726 = vmatpush.msrb.mxu2 %v3294_v12  ;;  %1746 = vmatpush.msrb.mxu3 %v3299_v42  ;;  %v3319_v10 = vld [vmem:[#allocation9 + $0x38] sm:$0xff]  ;;  %v3325_v12 = vld [vmem:[#allocation9 + $0x8] sm:$0xff] }
 0x460   :  { %v1538_v35 = vadd.f32 %v1530_v54, %v3568_v16  ;;  %3575 = vst [vmem:[#allocation37_spill] sm:$0xff] %v3299_v42  ;;  %v3301_v54 = vld [vmem:[#allocation9 + $0x40] sm:$0xff] }
 0x461   :  { %3576 = vst [vmem:[#allocation38_spill] sm:$0xff] %v3301_v54  ;;  %v3311_v16 = vld [vmem:[#allocation9 + $0x20] sm:$0xff]  ;;  %1687 = vmatpush.msrb.mxu0 %v3301_v54  ;;  %v3333_v54 = vld [vmem:[#allocation9 + $0x18] sm:$0xff] }
 0x462   :  { %v2109_v7 = vmul.f32 -1.442695, %v1538_v35  ;;  %v3303_v35 = vld [vmem:[#allocation9 + $0x48] sm:$0xff]  ;;  %3580 = vst [vmem:[#allocation42_spill] sm:$0xff] %v3319_v10  ;;  %v3323_v42 = vld [vmem:[#allocation9] sm:$0xff] }
 0x463   :  { %v2207_v9 = vpop.eup %2206  ;;  %3577 = vst [vmem:[#allocation39_spill] sm:$0xff] %v3303_v35  ;;  %1707 = vmatpush.msrb.mxu1 %v3303_v35  ;;  %1688 = vmatpush.msrb.mxu0 %v3311_v16  ;;  %v3331_v35 = vld [vmem:[#allocation9 + $0x10] sm:$0xff] }
 0x464   :  { %v2209_v30 = vpop.eup %2208  ;;  %v3271_v33 = vadd.f32 1.0, %v2207_v9  ;;  %2210 = vpow2.f32 %v2109_v7  ;;  %v1529_v7 = vrot.slane %v1500_v59, 6  ;;  %v3307_v9 = vld [vmem:[#allocation9 + $0x50] sm:$0xff]  ;;  %3581 = vst [vmem:[#allocation43_spill] sm:$0xff] %v3323_v42 }
 0x465   :  { %v3281_v57 = vadd.f32 1.0, %v2209_v30  ;;  %3578 = vst [vmem:[#allocation40_spill] sm:$0xff] %v3307_v9  ;;  %v3309_v30 = vld [vmem:[#allocation9 + $0x58] sm:$0xff]  ;;  %1727 = vmatpush.msrb.mxu2 %v3307_v9  ;;  %1708 = vmatpush.msrb.mxu1 %v3315_v38 }
 0x466   :  { %2212 = vrcp.f32 %v3271_v33  ;;  %3579 = vst [vmem:[#allocation41_spill] sm:$0xff] %v3309_v30  ;;  %1747 = vmatpush.msrb.mxu3 %v3309_v30  ;;  %v1537_v51 = vadd.f32 %v1529_v7, %v3569_v58  ;;  %1689 = vmatpush.msrb.mxu0 %v3323_v42  ;;  %vm1548_vm14 = vweird.f32 %v3271_v33 }
 0x467   :  { %2214 = vrcp.f32 %v3281_v57  ;;  %3582 = vst [vmem:[#allocation44_spill] sm:$0xff] %v3325_v12  ;;  %1728 = vmatpush.msrb.mxu2 %v3317_v29  ;;  %1709 = vmatpush.msrb.mxu1 %v3325_v12  ;;  %v1573_v12 = vand.u32 2147483648, %v3281_v57  ;;  %vm1567_vm15 = vweird.f32 %v3281_v57 }
 0x468   :  { %3583 = vst [vmem:[#allocation45_spill] sm:$0xff] %v3331_v35  ;;  %1748 = vmatpush.msrb.mxu3 %v3319_v10  ;;  %1905 = vmatpush.msra.mxu0 %v3138_v36  ;;  %v1554_v10 = vand.u32 2147483648, %v3271_v33 }
 0x469   :  { %1729 = vmatpush.msrb.mxu2 %v3331_v35  ;;  %1925 = vmatpush.msra.mxu1 %v3140_v37  ;;  %v1552_v35 = vand.u32 2147483647, %v3271_v33  ;;  %v1571_v37 = vand.u32 2147483647, %v3281_v57 }
 0x46a   :  { %v2211_v59 = vpop.eup %2210  ;;  %1749 = vmatpush.msrb.mxu3 %v3333_v54  ;;  %1906 = vmatpush.msra.mxu0 %v3150_v23 }
 0x46b   :  { %v3327_v3 = vadd.f32 1.0, %v2211_v59  ;;  %1945 = vmatpush.msra.mxu2 %v3142_v49  ;;  %1926 = vmatpush.msra.mxu1 %v3152_v25  ;;  %vm1553_vm2 = vcmp.eq.f32.partialorder %v1552_v35, 8.507059e+37  ;;  %vm1572_vm3 = vcmp.eq.f32.partialorder %v1571_v37, 8.507059e+37 }
 0x46c   :  { %v2213_v1 = vpop.eup %2212  ;;  %1965 = vmatpush.msra.mxu3 %v3146_v2  ;;  %1907 = vmatpush.msra.mxu0 %v3162_v26 }
 0x46d   :  { %v2215_v30 = vpop.eup %2214  ;;  %v1544_v9 = vmul.f32 %v2213_v1, %v3271_v33  ;;  %2216 = vrcp.f32 %v3327_v3  ;;  %vm1549_vm12 = vweird.f32 %v2213_v1  ;;  %1946 = vmatpush.msra.mxu2 %v3154_v28  ;;  %1927 = vmatpush.msra.mxu1 %v3164_v39  ;;  %v1574_v28 = vor.u32 1.1754944e-38, %v1573_v12 }
 0x46e   :  { %v1563_v59 = vmul.f32 %v2215_v30, %v3281_v57  ;;  %2218 = vtanh.f32 %v1537_v51  ;;  %vm1568_vm13 = vweird.f32 %v2215_v30  ;;  %1966 = vmatpush.msra.mxu3 %v3158_v31  ;;  %vm1550_vm0 = vmor %vm1548_vm14, %vm1549_vm12  ;;  %1908 = vmatpush.msra.mxu0 %v3174_v41  ;;  %vm1587_vm5 = vweird.f32 %v3327_v3 }
 0x46f   :  { %v1545_v7 = vsub.f32 1.0, %v1544_v9  ;;  %v1597_v9 = vld [vmem:[#allocation3] sm:$0x3]  ;;  %1947 = vmatpush.msra.mxu2 %v3166_v18  ;;  %vm1569_vm1 = vmor %vm1567_vm15, %vm1568_vm13  ;;  %1928 = vmatpush.msra.mxu1 %v3176_v44 }
 0x470   :  { %v1564_v58 = vsub.f32 1.0, %v1563_v59  ;;  %1967 = vmatpush.msra.mxu3 %v3170_v40  ;;  %v1599_v26 = vrot.slane %v1597_v9, 6  ;;  %1909 = vmatpush.msra.mxu0 %v3186_v52  ;;  %v1591_v52 = vand.u32 2147483647, %v3327_v3 }
 0x471   :  { %v1546_v42 = vmul.f32 %v2213_v1, %v1545_v7  ;;  %1948 = vmatpush.msra.mxu2 %v3178_v45  ;;  %1929 = vmatpush.msra.mxu1 %v3188_v53 }
 0x472   :  { %v1565_v36 = vmul.f32 %v2215_v30, %v1564_v58  ;;  %v1555_v58 = vor.u32 1.1754944e-38, %v1554_v10  ;;  %1968 = vmatpush.msra.mxu3 %v3182_v46  ;;  %1910 = vmatpush.msra.mxu0 %v3198_v63  ;;  %v1593_v46 = vand.u32 2147483648, %v3327_v3  ;;  %vm1592_vm7 = vcmp.eq.f32.partialorder %v1591_v52, 8.507059e+37 }
 0x473   :  { %v3357_v49 = vpop.eup %2216  ;;  %v1547_v2 = vadd.f32 %v2213_v1, %v1546_v42  ;;  %1949 = vmatpush.msra.mxu2 %v3190_v56  ;;  %1930 = vmatpush.msra.mxu1 %v3200_v0 }
 0x474   :  { %v1566_v23 = vadd.f32 %v2215_v30, %v1565_v36  ;;  %v1583_v25 = vmul.f32 %v3357_v49, %v3327_v3  ;;  %v2219_v39 = vpop.eup %2218  ;;  %1969 = vmatpush.msra.mxu3 %v3194_v62  ;;  %vm1588_vm4 = vweird.f32 %v3357_v49  ;;  %1911 = vmatpush.msra.mxu0 %v3212_v5  ;;  %v1594_v56 = vor.u32 1.1754944e-38, %v1593_v46  ;;  %v3586_v5 = vld [vmem:[#allocation34_spill] sm:$0xff]  ;;  %v3600_v3 = vld [vmem:[#allocation19_spill] sm:$0xff] }
 0x475   :  { %v1551_v31 = vsel %vm1550_vm0, %v2213_v1, %v1547_v2  ;;  %1950 = vmatpush.msra.mxu2 %v3202_v32  ;;  %1931 = vmatpush.msra.mxu1 %v3214_v6  ;;  %vm1589_vm6 = vmor %vm1587_vm5, %vm1588_vm4  ;;  %v3584_v32 = vld [vmem:[#allocation32_spill] sm:$0xff]  ;;  %v3587_v6 = vld [vmem:[#allocation35_spill] sm:$0xff] }
 0x476   :  { %v1556_v33 = vsel %vm1553_vm2, %v1555_v58, %v1551_v31  ;;  %v1570_v51 = vsel %vm1569_vm1, %v2215_v30, %v1566_v23  ;;  %v1584_v57 = vsub.f32 1.0, %v1583_v25  ;;  %1970 = vmatpush.msra.mxu3 %v3208_v4  ;;  %1912 = vmatpush.msra.mxu0 %v3224_v17  ;;  %v3585_v4 = vld [vmem:[#allocation33_spill] sm:$0xff]  ;;  %v3590_v17 = vld [vmem:[#allocation38_spill] sm:$0xff] }
 0x477   :  { %v1575_v18 = vsel %vm1572_vm3, %v1574_v28, %v1570_v51  ;;  %v1602_v40 = vmul.f32 %v2219_v39, %v1556_v33  ;;  %1951 = vmatpush.msra.mxu2 %v3216_v8  ;;  %1932 = vmatpush.msra.mxu1 %v3226_v20  ;;  %v3588_v8 = vld [vmem:[#allocation36_spill] sm:$0xff]  ;;  %v3591_v20 = vld [vmem:[#allocation39_spill] sm:$0xff] }
 0x478   :  { %v1601_v1 = vmul.f32 %v1599_v26, %v1575_v18  ;;  %v1585_v41 = vmul.f32 %v3357_v49, %v1584_v57  ;;  %1971 = vmatpush.msra.mxu3 %v3220_v13  ;;  %1913 = vmatpush.msra.mxu0 %v3236_v43  ;;  %v3589_v13 = vld [vmem:[#allocation37_spill] sm:$0xff]  ;;  %v3594_v43 = vld [vmem:[#allocation42_spill] sm:$0xff] }
 0x479   :  { %1952 = vmatpush.msra.mxu2 %v3228_v21  ;;  %1933 = vmatpush.msra.mxu1 %v3238_v14  ;;  %v3592_v21 = vld [vmem:[#allocation40_spill] sm:$0xff] }
 0x47a   :  { %v1603_v44 = vadd.f32 %v1602_v40, %v1601_v1  ;;  %v1586_v45 = vadd.f32 %v3357_v49, %v1585_v41  ;;  %1972 = vmatpush.msra.mxu3 %v3232_v48  ;;  %1914 = vmatpush.msra.mxu0 %v3249_v15  ;;  %v3593_v48 = vld [vmem:[#allocation41_spill] sm:$0xff] }
 0x47b   :  { %1953 = vmatpush.msra.mxu2 %v3240_v61  ;;  %1934 = vmatpush.msra.mxu1 %v3251_v47  ;;  %v3595_v61 = vld [vmem:[#allocation43_spill] sm:$0xff]  ;;  %v3597_v15 = vld [vmem:[#allocation45_spill] sm:$0xff] }
 0x47c   :  { %2220 = vtanh.f32 %v1603_v44  ;;  %1606 = vst [vmem:[#allocation3 - $0x2] sm:$0xc] %v1603_v44  ;;  %v1590_v53 = vsel %vm1589_vm6, %v3357_v49, %v1586_v45  ;;  %1973 = vmatpush.msra.mxu3 %v3244_v55  ;;  %1915 = vmatpush.msra.mxu0 %v3261_v11  ;;  %v3596_v55 = vld [vmem:[#allocation44_spill] sm:$0xff]  ;;  %v3599_v11 = vld [vmem:[#allocation18_spill] sm:$0xff] }
 0x47d   :  { %v1595_v63 = vsel %vm1592_vm7, %v1594_v56, %v1590_v53  ;;  %1954 = vmatpush.msra.mxu2 %v3253_v22  ;;  %1935 = vmatpush.msra.mxu1 %v3263_v19  ;;  %v3601_v49 = vld [vmem:[#allocation22_spill] sm:$0xff] }
 0x47e   :  { %1974 = vmatpush.msra.mxu3 %v3257_v60  ;;  %1916 = vmatpush.msra.mxu0 %v3275_v34 }
 0x47f   :  { %1955 = vmatpush.msra.mxu2 %v3265_v24  ;;  %1936 = vmatpush.msra.mxu1 %v3277_v50 }
 0x480   :  { %1975 = vmatpush.msra.mxu3 %v3269_v27  ;;  %1917 = vmatpush.msra.mxu0 %v3586_v5 }
 0x481   :  { %1956 = vmatpush.msra.mxu2 %v3584_v32  ;;  %1937 = vmatpush.msra.mxu1 %v3587_v6 }
 0x482   :  { %v2221_v62 = vpop.eup %2220  ;;  %1976 = vmatpush.msra.mxu3 %v3585_v4  ;;  %1918 = vmatpush.msra.mxu0 %v3590_v17 }
 0x483   :  { %v1605_v0 = vmul.f32 %v2221_v62, %v1595_v63  ;;  %1957 = vmatpush.msra.mxu2 %v3588_v8  ;;  %1938 = vmatpush.msra.mxu1 %v3591_v20  ;;  %v1828_v40 = vld [vmem:[#allocation3] sm:$0x3] }
 0x484   :  { %1977 = vmatpush.msra.mxu3 %v3589_v13  ;;  %1919 = vmatpush.msra.mxu0 %v3311_v16  ;;  %v1830_v56 = vrot.slane %v1828_v40, 4 }
 0x485   :  { %1608 = vst [vmem:[#allocation12 + $0x8] sm:$0xc] %v1605_v0  ;;  %1958 = vmatpush.msra.mxu2 %v3592_v21  ;;  %1939 = vmatpush.msra.mxu1 %v3315_v38 }
 0x486   :  { %1607 = vst [vmem:[#allocation2 - $0x2] sm:$0xc] %v1605_v0  ;;  %1978 = vmatpush.msra.mxu3 %v3593_v48  ;;  %1920 = vmatpush.msra.mxu0 %v3595_v61 }
 0x487   :  { %1959 = vmatpush.msra.mxu2 %v3317_v29  ;;  %1940 = vmatpush.msra.mxu1 %v3596_v55  ;;  %v3598_v29 = vld [vmem:[#allocation17_spill] sm:$0xff] }
 0x488   :  { %1979 = vmatpush.msra.mxu3 %v3594_v43 }
 0x489   :  { %1960 = vmatpush.msra.mxu2 %v3597_v15 }
 0x48a   :  { %1980 = vmatpush.msra.mxu3 %v3333_v54 }
 0x48d   :  { %v1609_v14 = vld [vmem:[#allocation2] sm:$0x3] }
 0x48e   :  { %1690 = vmatmul.f32.vlgmr.msrb.gmra.mxu0 %v1609_v14  ;;  %1710 = vmatmul.f32.vlgmr.msrb.gmra.mxu1 %v1609_v14 }
 0x48f   :  { %1730 = vmatmul.f32.vlgmr.msrb.gmra.mxu2 %v1609_v14  ;;  %1750 = vmatmul.f32.vlgmr.msrb.gmra.mxu3 %v1609_v14 }
 0x50b   :  { %v1691_v16 = vpop.f32.mrf.mxu0  ;;  %v1711_v47 = vpop.f32.mrf.mxu1 }
 0x50c   :  { %v1758_v38 = vrot.slane %v1691_v16, 4  ;;  %v1759_v22 = vrot.slane %v1711_v47, 4 }
 0x50e   :  { %v1766_v60 = vadd.f32 %v1758_v38, %v3598_v29  ;;  %v1767_v19 = vadd.f32 %v1759_v22, %v3599_v11 }
 0x510   :  { %v2110_v24 = vmul.f32 -1.442695, %v1766_v60  ;;  %v2111_v27 = vmul.f32 -1.442695, %v1767_v19 }
 0x512   :  { %2222 = vpow2.f32 %v2110_v24  ;;  %v1751_v34 = vpop.f32.mrf.mxu3  ;;  %v1731_v59 = vpop.f32.mrf.mxu2 }
 0x513   :  { %2224 = vpow2.f32 %v2111_v27  ;;  %v1761_v50 = vrot.slane %v1751_v34, 4  ;;  %v1760_v7 = vrot.slane %v1731_v59, 4 }
 0x515   :  { %v1769_v10 = vadd.f32 %v1761_v50, %v3600_v3  ;;  %v1768_v2 = vadd.f32 %v1760_v7, %v3601_v49 }
 0x517   :  { %v2112_v12 = vmul.f32 -1.442695, %v1769_v10 }
 0x518   :  { %v2223_v42 = vpop.eup %2222 }
 0x519   :  { %v2225_v35 = vpop.eup %2224  ;;  %v1773_v54 = vadd.f32 1.0, %v2223_v42  ;;  %2226 = vpow2.f32 %v2112_v12 }
 0x51a   :  { %v1792_v30 = vadd.f32 1.0, %v2225_v35 }
 0x51b   :  { %2228 = vrcp.f32 %v1773_v54  ;;  %v1785_v26 = vand.u32 2147483648, %v1773_v54  ;;  %v1783_v51 = vand.u32 2147483647, %v1773_v54  ;;  %vm1779_vm10 = vweird.f32 %v1773_v54 }
 0x51c   :  { %2230 = vrcp.f32 %v1792_v30  ;;  %v1804_v39 = vand.u32 2147483648, %v1792_v30  ;;  %v1802_v18 = vand.u32 2147483647, %v1792_v30  ;;  %vm1798_vm11 = vweird.f32 %v1792_v30 }
 0x51d   :  { %v1786_v44 = vor.u32 1.1754944e-38, %v1785_v26  ;;  %vm1784_vm14 = vcmp.eq.f32.partialorder %v1783_v51, 8.507059e+37 }
 0x51e   :  { %v1805_v52 = vor.u32 1.1754944e-38, %v1804_v39  ;;  %vm1803_vm15 = vcmp.eq.f32.partialorder %v1802_v18, 8.507059e+37 }
 0x51f   :  { %v2227_v36 = vpop.eup %2226 }
 0x520   :  { %v1812_v37 = vadd.f32 1.0, %v2227_v36 }
 0x521   :  { %v2229_v9 = vpop.eup %2228 }
 0x522   :  { %v2231_v58 = vpop.eup %2230  ;;  %v1775_v23 = vmul.f32 %v2229_v9, %v1773_v54  ;;  %2232 = vrcp.f32 %v1812_v37  ;;  %vm1780_vm8 = vweird.f32 %v2229_v9  ;;  %v1824_v20 = vand.u32 2147483648, %v1812_v37 }
 0x523   :  { %v1794_v25 = vmul.f32 %v2231_v58, %v1792_v30  ;;  %2234 = vtanh.f32 %v1768_v2  ;;  %vm1799_vm9 = vweird.f32 %v2231_v58  ;;  %vm1781_vm12 = vmor %vm1779_vm10, %vm1780_vm8  ;;  %vm1818_vm1 = vweird.f32 %v1812_v37 }
 0x524   :  { %v1776_v28 = vsub.f32 1.0, %v1775_v23  ;;  %vm1800_vm13 = vmor %vm1798_vm11, %vm1799_vm9  ;;  %v1822_v21 = vand.u32 2147483647, %v1812_v37  ;;  %v1825_v43 = vor.u32 1.1754944e-38, %v1824_v20 }
 0x525   :  { %v1795_v31 = vsub.f32 1.0, %v1794_v25 }
 0x526   :  { %v1777_v33 = vmul.f32 %v2229_v9, %v1776_v28  ;;  %vm1823_vm3 = vcmp.eq.f32.partialorder %v1822_v21, 8.507059e+37 }
 0x527   :  { %v1796_v57 = vmul.f32 %v2231_v58, %v1795_v31 }
 0x528   :  { %v2233_v1 = vpop.eup %2232  ;;  %v1778_v41 = vadd.f32 %v2229_v9, %v1777_v33 }
 0x529   :  { %v1797_v45 = vadd.f32 %v2231_v58, %v1796_v57  ;;  %v1814_v46 = vmul.f32 %v2233_v1, %v1812_v37  ;;  %v2235_v62 = vpop.eup %2234  ;;  %vm1819_vm0 = vweird.f32 %v2233_v1 }
 0x52a   :  { %v1782_v53 = vsel %vm1781_vm12, %v2229_v9, %v1778_v41  ;;  %vm1820_vm2 = vmor %vm1818_vm1, %vm1819_vm0 }
 0x52b   :  { %v1787_v63 = vsel %vm1784_vm14, %v1786_v44, %v1782_v53  ;;  %v1801_v0 = vsel %vm1800_vm13, %v2231_v58, %v1797_v45  ;;  %v1815_v32 = vsub.f32 1.0, %v1814_v46 }
 0x52c   :  { %v1806_v4 = vsel %vm1803_vm15, %v1805_v52, %v1801_v0  ;;  %v1833_v5 = vmul.f32 %v2235_v62, %v1787_v63 }
 0x52d   :  { %v1832_v6 = vmul.f32 %v1830_v56, %v1806_v4  ;;  %v1816_v8 = vmul.f32 %v2233_v1, %v1815_v32 }
 0x52f   :  { %v1834_v13 = vadd.f32 %v1833_v5, %v1832_v6  ;;  %v1817_v17 = vadd.f32 %v2233_v1, %v1816_v8 }
 0x531   :  { %2236 = vtanh.f32 %v1834_v13  ;;  %1837 = vst [vmem:[#allocation3 - $0x4] sm:$0x30] %v1834_v13  ;;  %v1821_v48 = vsel %vm1820_vm2, %v2233_v1, %v1817_v17 }
 0x532   :  { %v1826_v61 = vsel %vm1823_vm3, %v1825_v43, %v1821_v48 }
 0x537   :  { %v2237_v14 = vpop.eup %2236 }
 0x538   :  { %v1836_v55 = vmul.f32 %v2237_v14, %v1826_v61  ;;  %v2059_v51 = vld [vmem:[#allocation3] sm:$0x3] }
 0x539   :  { %v2061_v45 = vrot.slane %v2059_v51, 2 }
 0x53a   :  { %1839 = vst [vmem:[#allocation12 + $0x8] sm:$0x30] %v1836_v55 }
 0x53b   :  { %1838 = vst [vmem:[#allocation2 - $0x4] sm:$0x30] %v1836_v55 }
 0x542   :  { %v1840_v15 = vld [vmem:[#allocation2] sm:$0x3] }
 0x543   :  { %1921 = vmatmul.f32.vlgmr.msra.gmra.mxu0 %v1840_v15  ;;  %1941 = vmatmul.f32.vlgmr.msra.gmra.mxu1 %v1840_v15 }
 0x544   :  { %1961 = vmatmul.f32.vlgmr.msra.gmra.mxu2 %v1840_v15  ;;  %1981 = vmatmul.f32.vlgmr.msra.gmra.mxu3 %v1840_v15 }
 0x5c0   :  { %v1922_v16 = vpop.f32.mrf.mxu0  ;;  %v1942_v47 = vpop.f32.mrf.mxu1 }
 0x5c1   :  { %v1989_v38 = vrot.slane %v1922_v16, 2  ;;  %v1990_v22 = vrot.slane %v1942_v47, 2 }
 0x5c3   :  { %v1997_v60 = vadd.f32 %v1989_v38, %v3598_v29  ;;  %v1998_v19 = vadd.f32 %v1990_v22, %v3599_v11 }
 0x5c5   :  { %v2113_v24 = vmul.f32 -1.442695, %v1997_v60  ;;  %v2114_v27 = vmul.f32 -1.442695, %v1998_v19 }
 0x5c7   :  { %2238 = vpow2.f32 %v2113_v24  ;;  %v1982_v34 = vpop.f32.mrf.mxu3  ;;  %v1962_v59 = vpop.f32.mrf.mxu2 }
 0x5c8   :  { %2240 = vpow2.f32 %v2114_v27  ;;  %v1992_v50 = vrot.slane %v1982_v34, 2  ;;  %v1991_v29 = vrot.slane %v1962_v59, 2 }
 0x5ca   :  { %v2000_v10 = vadd.f32 %v1992_v50, %v3600_v3  ;;  %v1999_v37 = vadd.f32 %v1991_v29, %v3601_v49 }
 0x5cc   :  { %v2115_v12 = vmul.f32 -1.442695, %v2000_v10 }
 0x5cd   :  { %v2239_v42 = vpop.eup %2238 }
 0x5ce   :  { %v2241_v35 = vpop.eup %2240  ;;  %v2004_v54 = vadd.f32 1.0, %v2239_v42  ;;  %2242 = vpow2.f32 %v2115_v12 }
 0x5cf   :  { %v2023_v30 = vadd.f32 1.0, %v2241_v35 }
 0x5d0   :  { %2244 = vrcp.f32 %v2004_v54  ;;  %v2016_v25 = vand.u32 2147483648, %v2004_v54  ;;  %v2014_v26 = vand.u32 2147483647, %v2004_v54  ;;  %vm2010_vm6 = vweird.f32 %v2004_v54 }
 0x5d1   :  { %2246 = vrcp.f32 %v2023_v30  ;;  %v2035_v28 = vand.u32 2147483648, %v2023_v30  ;;  %v2033_v33 = vand.u32 2147483647, %v2023_v30  ;;  %vm2029_vm7 = vweird.f32 %v2023_v30 }
 0x5d2   :  { %v2017_v49 = vor.u32 1.1754944e-38, %v2016_v25  ;;  %vm2015_vm10 = vcmp.eq.f32.partialorder %v2014_v26, 8.507059e+37 }
 0x5d3   :  { %v2036_v41 = vor.u32 1.1754944e-38, %v2035_v28  ;;  %vm2034_vm11 = vcmp.eq.f32.partialorder %v2033_v33, 8.507059e+37 }
 0x5d4   :  { %v2243_v7 = vpop.eup %2242 }
 0x5d5   :  { %v2043_v11 = vadd.f32 1.0, %v2243_v7 }
 0x5d6   :  { %v2245_v36 = vpop.eup %2244 }
 0x5d7   :  { %v2247_v9 = vpop.eup %2246  ;;  %v2006_v2 = vmul.f32 %v2245_v36, %v2004_v54  ;;  %2248 = vrcp.f32 %v2043_v11  ;;  %vm2011_vm4 = vweird.f32 %v2245_v36  ;;  %v2055_v6 = vand.u32 2147483648, %v2043_v11 }
 0x5d8   :  { %v2025_v58 = vmul.f32 %v2247_v9, %v2023_v30  ;;  %2250 = vtanh.f32 %v1999_v37  ;;  %vm2030_vm5 = vweird.f32 %v2247_v9  ;;  %vm2012_vm8 = vmor %vm2010_vm6, %vm2011_vm4  ;;  %vm2049_vm13 = vweird.f32 %v2043_v11 }
 0x5d9   :  { %v2007_v3 = vsub.f32 1.0, %v2006_v2  ;;  %vm2031_vm9 = vmor %vm2029_vm7, %vm2030_vm5  ;;  %v2053_v8 = vand.u32 2147483647, %v2043_v11  ;;  %v2056_v17 = vor.u32 1.1754944e-38, %v2055_v6 }
 0x5da   :  { %v2026_v23 = vsub.f32 1.0, %v2025_v58 }
 0x5db   :  { %v2008_v31 = vmul.f32 %v2245_v36, %v2007_v3  ;;  %vm2054_vm15 = vcmp.eq.f32.partialorder %v2053_v8, 8.507059e+37 }
 0x5dc   :  { %v2027_v39 = vmul.f32 %v2247_v9, %v2026_v23 }
 0x5dd   :  { %v2249_v57 = vpop.eup %2248  ;;  %v2009_v18 = vadd.f32 %v2245_v36, %v2008_v31 }
 0x5de   :  { %v2028_v40 = vadd.f32 %v2247_v9, %v2027_v39  ;;  %v2045_v1 = vmul.f32 %v2249_v57, %v2043_v11  ;;  %v2251_v46 = vpop.eup %2250  ;;  %vm2050_vm12 = vweird.f32 %v2249_v57 }
 0x5df   :  { %v2013_v44 = vsel %vm2012_vm8, %v2245_v36, %v2009_v18  ;;  %vm2051_vm14 = vmor %vm2049_vm13, %vm2050_vm12 }
 0x5e0   :  { %v2018_v52 = vsel %vm2015_vm10, %v2017_v49, %v2013_v44  ;;  %v2032_v53 = vsel %vm2031_vm9, %v2247_v9, %v2028_v40  ;;  %v2046_v56 = vsub.f32 1.0, %v2045_v1 }
 0x5e1   :  { %v2037_v62 = vsel %vm2034_vm11, %v2036_v41, %v2032_v53  ;;  %v2064_v63 = vmul.f32 %v2251_v46, %v2018_v52 }
 0x5e2   :  { %v2063_v0 = vmul.f32 %v2061_v45, %v2037_v62  ;;  %v2047_v32 = vmul.f32 %v2249_v57, %v2046_v56 }
 0x5e4   :  { %v2065_v4 = vadd.f32 %v2064_v63, %v2063_v0  ;;  %v2048_v5 = vadd.f32 %v2249_v57, %v2047_v32 }
 0x5e6   :  { %2252 = vtanh.f32 %v2065_v4  ;;  %2068 = vst [vmem:[#allocation3 - $0x6] sm:$0xc0] %v2065_v4  ;;  %v2052_v13 = vsel %vm2051_vm14, %v2249_v57, %v2048_v5 }
 0x5e7   :  { %v2057_v21 = vsel %vm2054_vm15, %v2056_v17, %v2052_v13 }
 0x5ec   :  { %v2253_v20 = vpop.eup %2252 }
 0x5ed   :  { %v2067_v48 = vmul.f32 %v2253_v20, %v2057_v21 }
 0x5ef   :  { %2069 = vst [vmem:[#allocation2 - $0x6] sm:$0xc0] %v2067_v48 }
 0x5f0   :  { %2070 = vst [vmem:[#allocation12 + $0x8] sm:$0xc0] %v2067_v48 }
 0x5f1   :  { %2083 = dma.vmem_to_hbm [thread:$0]  %s2076_s3, 256, %s2078_s13, [#allocation6], %s2386_s27, %s2386_s27, %s2387_s28  }
 0x5f2   :  { %2380 = dma.done.wait [#allocation6], 256  }
 0x5f3   :  { %2381 = vsyncadd [#allocation6], 4294967040 }
 0x5f4   :  { %2088 = vsyncpa [#allocation5], 1 }
 0x5f5   :  { %2089 = vsyncpa [#allocation8], 1 }
 0x5f6   :  { %2090 = vsyncpa [#allocation11], 1 }
 0x5f7   :  { %2091 = vsyncpa [#allocation6], 1 }

</bundles_post_ra>
